<compile_context>
chip_gen: v7x
topology: tpu7x:2x2x1
jax: 0.10.0
libtpu: 0.0.40
codegen_flags: <defaults>
</compile_context>

<pallas_src>
import functools

import jax
import jax.numpy as jnp
import numpy as np
from jax.experimental import pallas as pl
from jax.experimental.pallas import tpu as pltpu

LN_EPS = 1e-5          # nn.LayerNorm default eps
LEAKY_SLOPE = 0.01     # nn.LeakyReLU default negative_slope

# Packed per-channel parameter row indices (single (NUM_PROWS, max(E,H)) VMEM block).
(_BEMB, _G0, _BE0, _W0R, _W0I, _W1R, _W1I,
 _RB1, _IB1, _RB2, _IB2, _G1, _BE1, _BFC2, _BFC1) = range(15)
NUM_PROWS = 15


def _softshrink(v, lam):
    return jnp.where(v > lam, v - lam, jnp.where(v < -lam, v + lam, jnp.zeros_like(v)))


def _layernorm(h, gamma, beta):
    mu = jnp.mean(h, axis=-1, keepdims=True)
    var = jnp.mean(jnp.square(h - mu), axis=-1, keepdims=True)
    return (h - mu) * jax.lax.rsqrt(var + LN_EPS) * gamma + beta


def _make_kernel(E, H, R, rows, lambd):
    f32, bf16 = jnp.float32, jnp.bfloat16

    def kernel(x_ref, fc_ref, fs_ref, ic_ref, is_ref,
               wemb_ref, wfc1_ref, wfc2_ref, pv_ref, o_ref):
        def brow(r, nrows, width=E):
            # One hoisted sublane broadcast per packed-parameter row (bound once and
            # reused), replacing the old per-use sub-(8,128) slice + implicit
            # broadcast_in_dim relayout filler.
            return jnp.broadcast_to(pv_ref[r, :width], (nrows, width))

        # --- embedding Linear(E,E): bf16 operands, f32 MXU accumulation + LayerNorm ---
        h = jnp.dot(x_ref[...], wemb_ref[...], preferred_element_type=f32)
        h = h + brow(_BEMB, rows)
        h = _layernorm(h, brow(_G0, rows), brow(_BE0, rows))                 # (rows, E) f32

        # --- rfft(dim=seq, norm='ortho'): block-diagonal DFT as two f32 matmuls.
        # The spectral path stays in f32 (softshrink lambd ~ bf16 rounding error).
        xre = jnp.dot(fc_ref[...], h, preferred_element_type=f32)           # (R, E)
        xim = jnp.dot(fs_ref[...], h, preferred_element_type=f32)           # (R, E)

        # --- texfilter: complex affine -> ReLU -> complex affine -> softshrink ---
        w0r, w0i = brow(_W0R, R), brow(_W0I, R)
        w1r, w1i = brow(_W1R, R), brow(_W1I, R)
        o1r = jnp.maximum(xre * w0r - xim * w0i + brow(_RB1, R), 0.0)
        o1i = jnp.maximum(xim * w0r + xre * w0i + brow(_IB1, R), 0.0)
        o2r = _softshrink(o1r * w1r - o1i * w1i + brow(_RB2, R), lambd)
        o2i = _softshrink(o1i * w1r + o1r * w1i + brow(_IB2, R), lambd)

        # --- x = x * weight (complex), irfft as TWO accumulating matmuls (no concat) ---
        yre = xre * o2r - xim * o2i
        yim = xre * o2i + xim * o2r
        xt = (jnp.dot(ic_ref[...], yre, preferred_element_type=f32)
              + jnp.dot(is_ref[...], yim, preferred_element_type=f32))      # (rows, E)

        # --- LayerNorm1 (dropout == identity at inference) + MLP head ---
        xt = _layernorm(xt, brow(_G1, rows), brow(_BE1, rows))
        h1 = (jnp.dot(xt.astype(bf16), wfc1_ref[...], preferred_element_type=f32)
              + brow(_BFC1, rows, H))
        h1 = jnp.where(h1 >= 0.0, h1, LEAKY_SLOPE * h1)
        o_ref[...] = (jnp.dot(h1.astype(bf16), wfc2_ref[...], preferred_element_type=f32)
                      + brow(_BFC2, rows)).astype(o_ref.dtype)
    return kernel


def _dft_block_operators(N, Kp, BT):
    """Ortho rfft/irfft as real matmul operators, frequency-padded to Kp (multiple of 8)
    and made block-diagonal over BT batches so one MXU matmul per (cos/sin) half performs
    the whole batched transform with no in-kernel relayout.  Built host-side in f64,
    returned as f32 compile-time constants."""
    K = N // 2 + 1
    n = np.arange(N, dtype=np.float64)
    k = np.arange(Kp, dtype=np.float64)
    s = 1.0 / np.sqrt(N)
    valid = (np.arange(Kp) < K).astype(np.float64)           # zero out padded frequencies
    ang_f = 2.0 * np.pi * np.outer(k, n) / N                 # (Kp, N)
    fcos = np.cos(ang_f) * s * valid[:, None]
    fsin = -np.sin(ang_f) * s * valid[:, None]
    # Hermitian fold: DC (and Nyquist for even N) counted once, all other bins twice.
    fold = np.where((np.arange(Kp) == 0) |
                    ((N % 2 == 0) & (np.arange(Kp) == N // 2)), 1.0, 2.0) * valid
    ang_i = 2.0 * np.pi * np.outer(n, k) / N                 # (N, Kp)
    icos = np.cos(ang_i) * fold[None, :] * s
    isin = -np.sin(ang_i) * fold[None, :] * s
    # Make the sine rows/columns at DC and Nyquist EXACT zeros so the (non-Hermitian)
    # imaginary parts of Yf at those bins are discarded exactly, matching irfft
    # semantics (review correctness concern #2).
    fsin[0, :] = 0.0
    isin[:, 0] = 0.0
    if N % 2 == 0 and N // 2 < Kp:
        fsin[N // 2, :] = 0.0
        isin[:, N // 2] = 0.0
    eye = np.eye(BT)
    return (np.kron(eye, fcos).astype(np.float32),           # (BT*Kp, BT*N)
            np.kron(eye, fsin).astype(np.float32),           # (BT*Kp, BT*N)
            np.kron(eye, icos).astype(np.float32),           # (BT*N, BT*Kp)
            np.kron(eye, isin).astype(np.float32))           # (BT*N, BT*Kp)


def _pick_batch_tile(B):
    """Batch elements packed per grid step.

    v5e/v6e (1 TensorCore/chip): one grid step for the whole batch -> fewer fixed
    ~0.35us pipeline steps and a full 128-row MXU pass.  v7x (2 TensorCores/chip):
    keep >= 2 'parallel' grid steps so both cores get work.  Cap at 8 because the
    block-diagonal DFT operators (and their zero MXU work) grow as BT^2."""
    try:
        kind = jax.devices()[0].device_kind.lower()
    except Exception:
        kind = ""
    two_core = ("v7" in kind) or ("7x" in kind)
    bt = B // 2 if (two_core and B >= 2) else B
    bt = max(1, min(bt, 8))
    while B % bt:
        bt -= 1
    return bt


def seq_model_forward(x, p, *, lambd, batch_tile=None):
    """x: (B, E, N) float32 -> (B, E, N) float32 (SeqModel.forward, eval mode).
    Call under jax.jit so the packing/layout ops below fuse into one dispatch."""
    B, E, N = x.shape
    H = p["wfc1_t"].shape[1]
    BT = _pick_batch_tile(B) if batch_tile is None else batch_tile
    assert B % BT == 0, "batch size must be divisible by the batch tile"
    K = N // 2 + 1
    Kp = ((K + 7) // 8) * 8            # pad the frequency axis to a sublane multiple
    R = BT * Kp                        # rows of the real (== imag) half of the spectrum slab
    rows = BT * N                      # sublane-stacked activation rows per grid step

    # Host-side (numpy) compile-time constants: fused block-diagonal DFT operators, f32.
    fcos_np, fsin_np, icos_np, isin_np = _dft_block_operators(N, Kp, BT)
    fcos = jnp.asarray(fcos_np)
    fsin = jnp.asarray(fsin_np)
    icos = jnp.asarray(icos_np)
    isin = jnp.asarray(isin_np)

    # Pack every small per-channel vector into one (NUM_PROWS, max(E,H)) block.
    PW = max(E, H)

    def row(v):
        v = jnp.reshape(v, (1, -1))
        return jnp.pad(v, ((0, 0), (0, PW - v.shape[1])))

    pv = jnp.concatenate([
        row(p["bemb"]), row(p["g0"]), row(p["be0"]),
        row(p["w"][0]), row(p["w"][1]), row(p["w1"][0]), row(p["w1"][1]),
        row(p["rb1"]), row(p["ib1"]), row(p["rb2"]), row(p["ib2"]),
        row(p["g1"]), row(p["be1"]), row(p["bfc2"]), row(p["bfc1"]),
    ], axis=0).astype(jnp.float32)                                   # (NUM_PROWS, PW)

    wemb = p["wemb_t"].astype(jnp.bfloat16)
    wfc1 = p["wfc1_t"].astype(jnp.bfloat16)
    wfc2 = p["wfc2_t"].astype(jnp.bfloat16)

    # Layout plumbing only (fused under jit): present the kernel with a lane-dense
    # (B*N, E) bf16 slab so every load/store uses full 128-lane rows and the input DMA
    # is half the f32 size.
    x2d = jnp.transpose(x, (0, 2, 1)).reshape(B * N, E).astype(jnp.bfloat16)

    rep = lambda shape: pl.BlockSpec(shape, lambda i: (0, 0))        # grid-invariant block

    out2d = pl.pallas_call(
        _make_kernel(E, H, R, rows, lambd),
        out_shape=jax.ShapeDtypeStruct((B * N, E), jnp.float32),
        grid=(B // BT,),
        in_specs=[
            pl.BlockSpec((rows, E), lambda i: (i, 0)),   # activations: one batch tile / step
            rep((R, rows)),                              # rfft cos operator (f32)
            rep((R, rows)),                              # rfft -sin operator (f32)
            rep((rows, R)),                              # irfft cos operator (f32)
            rep((rows, R)),                              # irfft -sin operator (f32)
            rep((E, E)),                                 # embedding weight (in, out), bf16
            rep((E, H)),                                 # fc.0 weight (in, out), bf16
            rep((H, E)),                                 # fc.2 weight (in, out), bf16
            rep((NUM_PROWS, PW)),                        # packed per-channel params (f32)
        ],
        out_specs=pl.BlockSpec((rows, E), lambda i: (i, 0)),
        compiler_params=pltpu.CompilerParams(dimension_semantics=("parallel",)),
    )(x2d, fcos, fsin, icos, isin, wemb, wfc1, wfc2, pv)

    return jnp.transpose(out2d.reshape(B, N, E), (0, 2, 1))          # back to (B, E, N)


def init_params(key, embed_size, hidden_size, scale):
    E, H = embed_size, hidden_size
    ks = jax.random.split(key, 12)
    f32 = jnp.float32
    return {
        # nn.Linear weights stored already transposed to (in, out)
        "wemb_t": (jax.random.normal(ks[0], (E, E)) / np.sqrt(E)).astype(f32),
        "bemb":   (0.01 * jax.random.normal(ks[1], (1, E))).astype(f32),
        "g0": jnp.ones((1, E), f32), "be0": jnp.zeros((1, E), f32),
        "w":   (scale * jax.random.normal(ks[2], (2, E))).astype(f32),
        "w1":  (scale * jax.random.normal(ks[3], (2, E))).astype(f32),
        "rb1": (scale * jax.random.normal(ks[4], (1, E))).astype(f32),
        "ib1": (scale * jax.random.normal(ks[5], (1, E))).astype(f32),
        "rb2": (scale * jax.random.normal(ks[6], (1, E))).astype(f32),
        "ib2": (scale * jax.random.normal(ks[7], (1, E))).astype(f32),
        "g1": jnp.ones((1, E), f32), "be1": jnp.zeros((1, E), f32),
        "wfc1_t": (jax.random.normal(ks[8], (E, H)) / np.sqrt(E)).astype(f32),
        "bfc1":   (0.01 * jax.random.normal(ks[9], (1, H))).astype(f32),
        "wfc2_t": (jax.random.normal(ks[10], (H, E)) / np.sqrt(H)).astype(f32),
        "bfc2":   (0.01 * jax.random.normal(ks[11], (1, E))).astype(f32),
    }


def reference_forward(x, p, lambd):
    """Pure-JAX f32 reference (jnp.fft) mirroring the PyTorch forward in eval mode."""
    with jax.default_matmul_precision("highest"):
        B, E, N = x.shape
        xp = jnp.transpose(x, (0, 2, 1))
        h = xp @ p["wemb_t"] + p["bemb"]
        h = _layernorm(h, p["g0"], p["be0"])
        Xf = jnp.fft.rfft(h, axis=1, norm="ortho")
        xre, xim = jnp.real(Xf), jnp.imag(Xf)
        w0r, w0i = p["w"][0], p["w"][1]
        w1r, w1i = p["w1"][0], p["w1"][1]
        o1r = jax.nn.relu(xre * w0r - xim * w0i + p["rb1"])
        o1i = jax.nn.relu(xim * w0r + xre * w0i + p["ib1"])
        o2r = _softshrink(o1r * w1r - o1i * w1i + p["rb2"], lambd)
        o2i = _softshrink(o1i * w1r + o1r * w1i + p["ib2"], lambd)
        Yf = Xf * (o2r + 1j * o2i)
        xt = jnp.fft.irfft(Yf, n=N, axis=1, norm="ortho")
        xt = _layernorm(xt, p["g1"], p["be1"])
        h1 = xt @ p["wfc1_t"] + p["bfc1"]
        h1 = jnp.where(h1 >= 0.0, h1, LEAKY_SLOPE * h1)
        out = h1 @ p["wfc2_t"] + p["bfc2"]
        return jnp.transpose(out, (0, 2, 1))


if __name__ == "__main__":
    B, E, N, H = 8, 128, 16, 256        # batch, embed_size (=L), seq len (=N), hidden_size
    scale, sparsity_threshold = 0.02, 0.01
    key = jax.random.PRNGKey(0)
    kx, kp = jax.random.split(key)
    x = jax.random.normal(kx, (B, E, N), dtype=jnp.float32)   # module forward input (B, L, N)
    params = init_params(kp, E, H, scale)

    # jit the whole wrapper: constant-folds the DFT operators / pv packing and fuses the
    # layout transposes with the kernel launch into a single dispatch (perf-review item).
    fwd = jax.jit(functools.partial(seq_model_forward, lambd=sparsity_threshold))

    out = jax.block_until_ready(fwd(x, params))
    assert out.shape == (B, E, N) and bool(jnp.all(jnp.isfinite(out)))

    ref = reference_forward(x, params, sparsity_threshold)
    out_np, ref_np = np.asarray(out), np.asarray(ref)
    # bf16 operands on the dense Linear layers (f32 accumulation, f32 spectral path) vs
    # the all-f32 fft reference: a few-percent elementwise slack plus a tight aggregate
    # (relative Frobenius) bound.
    np.testing.assert_allclose(out_np, ref_np, rtol=5e-2, atol=5e-2)
    rel_rms = float(np.linalg.norm(out_np - ref_np) / np.linalg.norm(ref_np))
    assert rel_rms < 2.5e-2, f"relative RMS error too large: {rel_rms}"

    print("KERNEL_OK")
</pallas_src>

<mosaic_0001>
module attributes {stable_mosaic.version = 11 : i64} {
  func.func @kernel(%arg0: i32, %arg1: memref<128x128xbf16, #tpu.memory_space<vmem>>, %arg2: memref<128x128xf32, #tpu.memory_space<vmem>>, %arg3: memref<128x128xf32, #tpu.memory_space<vmem>>, %arg4: memref<128x128xf32, #tpu.memory_space<vmem>>, %arg5: memref<128x128xf32, #tpu.memory_space<vmem>>, %arg6: memref<128x128xbf16, #tpu.memory_space<vmem>>, %arg7: memref<128x256xbf16, #tpu.memory_space<vmem>>, %arg8: memref<256x128xbf16, #tpu.memory_space<vmem>>, %arg9: memref<15x256xf32, #tpu.memory_space<vmem>>, %arg10: memref<128x128xf32, #tpu.memory_space<vmem>>) attributes {dimension_semantics = [#tpu.dimension_semantics<parallel>], iteration_bounds = array<i64: 1>, scalar_prefetch = 0 : i64, scratch_operands = 0 : i64, tpu.core_type = #tpu.core_type<tc>, window_params = [{transform_indices = @transform_0, window_bounds = array<i64: 128, 128>}, {pipeline_mode = #tpu.pipeline_mode<synchronous>, transform_indices = @transform_1, window_bounds = array<i64: 128, 128>}, {pipeline_mode = #tpu.pipeline_mode<synchronous>, transform_indices = @transform_2, window_bounds = array<i64: 128, 128>}, {pipeline_mode = #tpu.pipeline_mode<synchronous>, transform_indices = @transform_3, window_bounds = array<i64: 128, 128>}, {pipeline_mode = #tpu.pipeline_mode<synchronous>, transform_indices = @transform_4, window_bounds = array<i64: 128, 128>}, {pipeline_mode = #tpu.pipeline_mode<synchronous>, transform_indices = @transform_5, window_bounds = array<i64: 128, 128>}, {pipeline_mode = #tpu.pipeline_mode<synchronous>, transform_indices = @transform_6, window_bounds = array<i64: 128, 256>}, {pipeline_mode = #tpu.pipeline_mode<synchronous>, transform_indices = @transform_7, window_bounds = array<i64: 256, 128>}, {pipeline_mode = #tpu.pipeline_mode<synchronous>, transform_indices = @transform_8, window_bounds = array<i64: 15, 256>}, {transform_indices = @transform_9, window_bounds = array<i64: 128, 128>}]} {
    %c0 = arith.constant 0 : index
    %c0_0 = arith.constant 0 : index
    %0 = vector.load %arg1[%c0, %c0_0] : memref<128x128xbf16, #tpu.memory_space<vmem>>, vector<128x128xbf16>
    %c0_1 = arith.constant 0 : index
    %c0_2 = arith.constant 0 : index
    %1 = vector.load %arg6[%c0_1, %c0_2] : memref<128x128xbf16, #tpu.memory_space<vmem>>, vector<128x128xbf16>
    %cst = arith.constant dense<0.000000e+00> : vector<128x128xf32>
    %2 = tpu.matmul %0, %1, %cst {dimension_numbers = #tpu.dot_dimension_numbers<[1], [0], [0], [1], [0, 0, 1, 1], [], []>} : vector<128x128xbf16>, vector<128x128xbf16>, vector<128x128xf32> -> vector<128x128xf32>
    %c0_3 = arith.constant 0 : index
    %c0_4 = arith.constant 0 : index
    %3 = vector.load %arg9[%c0_3, %c0_4] : memref<15x256xf32, #tpu.memory_space<vmem>>, vector<1x128xf32>
    %4 = vector.shape_cast %3 : vector<1x128xf32> to vector<128xf32>
    %5 = vector.shape_cast %4 : vector<128xf32> to vector<1x128xf32>
    %6 = vector.broadcast %5 : vector<1x128xf32> to vector<128x128xf32>
    %7 = arith.addf %2, %6 : vector<128x128xf32>
    %c1 = arith.constant 1 : index
    %c0_5 = arith.constant 0 : index
    %8 = vector.load %arg9[%c1, %c0_5] : memref<15x256xf32, #tpu.memory_space<vmem>>, vector<1x128xf32>
    %9 = vector.shape_cast %8 : vector<1x128xf32> to vector<128xf32>
    %10 = vector.shape_cast %9 : vector<128xf32> to vector<1x128xf32>
    %11 = vector.broadcast %10 : vector<1x128xf32> to vector<128x128xf32>
    %c2 = arith.constant 2 : index
    %c0_6 = arith.constant 0 : index
    %12 = vector.load %arg9[%c2, %c0_6] : memref<15x256xf32, #tpu.memory_space<vmem>>, vector<1x128xf32>
    %13 = vector.shape_cast %12 : vector<1x128xf32> to vector<128xf32>
    %14 = vector.shape_cast %13 : vector<128xf32> to vector<1x128xf32>
    %15 = vector.broadcast %14 : vector<1x128xf32> to vector<128x128xf32>
    %cst_7 = arith.constant dense<0.000000e+00> : vector<128xf32>
    %16 = vector.multi_reduction <add>, %7, %cst_7 [1] : vector<128x128xf32> to vector<128xf32>
    %17 = vector.shape_cast %16 : vector<128xf32> to vector<128x1xf32>
    %cst_8 = arith.constant 1.280000e+02 : f32
    %18 = vector.broadcast %cst_8 : f32 to vector<128x1xf32>
    %19 = arith.divf %17, %18 : vector<128x1xf32>
    %20 = vector.broadcast %19 : vector<128x1xf32> to vector<128x128xf32>
    %21 = arith.subf %7, %20 : vector<128x128xf32>
    %22 = arith.mulf %21, %21 : vector<128x128xf32>
    %cst_9 = arith.constant dense<0.000000e+00> : vector<128xf32>
    %23 = vector.multi_reduction <add>, %22, %cst_9 [1] : vector<128x128xf32> to vector<128xf32>
    %24 = vector.shape_cast %23 : vector<128xf32> to vector<128x1xf32>
    %cst_10 = arith.constant 1.280000e+02 : f32
    %25 = vector.broadcast %cst_10 : f32 to vector<128x1xf32>
    %26 = arith.divf %24, %25 : vector<128x1xf32>
    %27 = vector.broadcast %19 : vector<128x1xf32> to vector<128x128xf32>
    %28 = arith.subf %7, %27 : vector<128x128xf32>
    %cst_11 = arith.constant 9.99999974E-6 : f32
    %29 = vector.broadcast %cst_11 : f32 to vector<128x1xf32>
    %30 = arith.addf %26, %29 : vector<128x1xf32>
    %31 = math.rsqrt %30 : vector<128x1xf32>
    %32 = vector.broadcast %31 : vector<128x1xf32> to vector<128x128xf32>
    %33 = arith.mulf %28, %32 : vector<128x128xf32>
    %34 = arith.mulf %33, %11 : vector<128x128xf32>
    %35 = arith.addf %34, %15 : vector<128x128xf32>
    %c0_12 = arith.constant 0 : index
    %c0_13 = arith.constant 0 : index
    %36 = vector.load %arg2[%c0_12, %c0_13] : memref<128x128xf32, #tpu.memory_space<vmem>>, vector<128x128xf32>
    %cst_14 = arith.constant dense<0.000000e+00> : vector<128x128xf32>
    %37 = tpu.matmul %36, %35, %cst_14 {dimension_numbers = #tpu.dot_dimension_numbers<[1], [0], [0], [1], [0, 0, 1, 1], [], []>} : vector<128x128xf32>, vector<128x128xf32>, vector<128x128xf32> -> vector<128x128xf32>
    %c0_15 = arith.constant 0 : index
    %c0_16 = arith.constant 0 : index
    %38 = vector.load %arg3[%c0_15, %c0_16] : memref<128x128xf32, #tpu.memory_space<vmem>>, vector<128x128xf32>
    %cst_17 = arith.constant dense<0.000000e+00> : vector<128x128xf32>
    %39 = tpu.matmul %38, %35, %cst_17 {dimension_numbers = #tpu.dot_dimension_numbers<[1], [0], [0], [1], [0, 0, 1, 1], [], []>} : vector<128x128xf32>, vector<128x128xf32>, vector<128x128xf32> -> vector<128x128xf32>
    %c3 = arith.constant 3 : index
    %c0_18 = arith.constant 0 : index
    %40 = vector.load %arg9[%c3, %c0_18] : memref<15x256xf32, #tpu.memory_space<vmem>>, vector<1x128xf32>
    %41 = vector.shape_cast %40 : vector<1x128xf32> to vector<128xf32>
    %42 = vector.shape_cast %41 : vector<128xf32> to vector<1x128xf32>
    %43 = vector.broadcast %42 : vector<1x128xf32> to vector<128x128xf32>
    %c4 = arith.constant 4 : index
    %c0_19 = arith.constant 0 : index
    %44 = vector.load %arg9[%c4, %c0_19] : memref<15x256xf32, #tpu.memory_space<vmem>>, vector<1x128xf32>
    %45 = vector.shape_cast %44 : vector<1x128xf32> to vector<128xf32>
    %46 = vector.shape_cast %45 : vector<128xf32> to vector<1x128xf32>
    %47 = vector.broadcast %46 : vector<1x128xf32> to vector<128x128xf32>
    %c5 = arith.constant 5 : index
    %c0_20 = arith.constant 0 : index
    %48 = vector.load %arg9[%c5, %c0_20] : memref<15x256xf32, #tpu.memory_space<vmem>>, vector<1x128xf32>
    %49 = vector.shape_cast %48 : vector<1x128xf32> to vector<128xf32>
    %50 = vector.shape_cast %49 : vector<128xf32> to vector<1x128xf32>
    %51 = vector.broadcast %50 : vector<1x128xf32> to vector<128x128xf32>
    %c6 = arith.constant 6 : index
    %c0_21 = arith.constant 0 : index
    %52 = vector.load %arg9[%c6, %c0_21] : memref<15x256xf32, #tpu.memory_space<vmem>>, vector<1x128xf32>
    %53 = vector.shape_cast %52 : vector<1x128xf32> to vector<128xf32>
    %54 = vector.shape_cast %53 : vector<128xf32> to vector<1x128xf32>
    %55 = vector.broadcast %54 : vector<1x128xf32> to vector<128x128xf32>
    %56 = arith.mulf %37, %43 : vector<128x128xf32>
    %57 = arith.mulf %39, %47 : vector<128x128xf32>
    %58 = arith.subf %56, %57 : vector<128x128xf32>
    %c7 = arith.constant 7 : index
    %c0_22 = arith.constant 0 : index
    %59 = vector.load %arg9[%c7, %c0_22] : memref<15x256xf32, #tpu.memory_space<vmem>>, vector<1x128xf32>
    %60 = vector.shape_cast %59 : vector<1x128xf32> to vector<128xf32>
    %61 = vector.shape_cast %60 : vector<128xf32> to vector<1x128xf32>
    %62 = vector.broadcast %61 : vector<1x128xf32> to vector<128x128xf32>
    %63 = arith.addf %58, %62 : vector<128x128xf32>
    %cst_23 = arith.constant 0.000000e+00 : f32
    %64 = vector.broadcast %cst_23 : f32 to vector<128x128xf32>
    %65 = arith.maximumf %63, %64 : vector<128x128xf32>
    %66 = arith.mulf %39, %43 : vector<128x128xf32>
    %67 = arith.mulf %37, %47 : vector<128x128xf32>
    %68 = arith.addf %66, %67 : vector<128x128xf32>
    %c8 = arith.constant 8 : index
    %c0_24 = arith.constant 0 : index
    %69 = vector.load %arg9[%c8, %c0_24] : memref<15x256xf32, #tpu.memory_space<vmem>>, vector<1x128xf32>
    %70 = vector.shape_cast %69 : vector<1x128xf32> to vector<128xf32>
    %71 = vector.shape_cast %70 : vector<128xf32> to vector<1x128xf32>
    %72 = vector.broadcast %71 : vector<1x128xf32> to vector<128x128xf32>
    %73 = arith.addf %68, %72 : vector<128x128xf32>
    %cst_25 = arith.constant 0.000000e+00 : f32
    %74 = vector.broadcast %cst_25 : f32 to vector<128x128xf32>
    %75 = arith.maximumf %73, %74 : vector<128x128xf32>
    %76 = arith.mulf %65, %51 : vector<128x128xf32>
    %77 = arith.mulf %75, %55 : vector<128x128xf32>
    %78 = arith.subf %76, %77 : vector<128x128xf32>
    %c9 = arith.constant 9 : index
    %c0_26 = arith.constant 0 : index
    %79 = vector.load %arg9[%c9, %c0_26] : memref<15x256xf32, #tpu.memory_space<vmem>>, vector<1x128xf32>
    %80 = vector.shape_cast %79 : vector<1x128xf32> to vector<128xf32>
    %81 = vector.shape_cast %80 : vector<128xf32> to vector<1x128xf32>
    %82 = vector.broadcast %81 : vector<1x128xf32> to vector<128x128xf32>
    %83 = arith.addf %78, %82 : vector<128x128xf32>
    %cst_27 = arith.constant 0.00999999977 : f32
    %84 = vector.broadcast %cst_27 : f32 to vector<128x128xf32>
    %85 = arith.cmpf ogt, %83, %84 : vector<128x128xf32>
    %cst_28 = arith.constant 0.00999999977 : f32
    %86 = vector.broadcast %cst_28 : f32 to vector<128x128xf32>
    %87 = arith.subf %83, %86 : vector<128x128xf32>
    %cst_29 = arith.constant -0.00999999977 : f32
    %88 = vector.broadcast %cst_29 : f32 to vector<128x128xf32>
    %89 = arith.cmpf olt, %83, %88 : vector<128x128xf32>
    %cst_30 = arith.constant 0.00999999977 : f32
    %90 = vector.broadcast %cst_30 : f32 to vector<128x128xf32>
    %91 = arith.addf %83, %90 : vector<128x128xf32>
    %cst_31 = arith.constant 0.000000e+00 : f32
    %92 = vector.broadcast %cst_31 : f32 to vector<128x128xf32>
    %93 = arith.select %89, %91, %92 : vector<128x128xi1>, vector<128x128xf32>
    %94 = arith.select %85, %87, %93 : vector<128x128xi1>, vector<128x128xf32>
    %95 = arith.mulf %75, %51 : vector<128x128xf32>
    %96 = arith.mulf %65, %55 : vector<128x128xf32>
    %97 = arith.addf %95, %96 : vector<128x128xf32>
    %c10 = arith.constant 10 : index
    %c0_32 = arith.constant 0 : index
    %98 = vector.load %arg9[%c10, %c0_32] : memref<15x256xf32, #tpu.memory_space<vmem>>, vector<1x128xf32>
    %99 = vector.shape_cast %98 : vector<1x128xf32> to vector<128xf32>
    %100 = vector.shape_cast %99 : vector<128xf32> to vector<1x128xf32>
    %101 = vector.broadcast %100 : vector<1x128xf32> to vector<128x128xf32>
    %102 = arith.addf %97, %101 : vector<128x128xf32>
    %cst_33 = arith.constant 0.00999999977 : f32
    %103 = vector.broadcast %cst_33 : f32 to vector<128x128xf32>
    %104 = arith.cmpf ogt, %102, %103 : vector<128x128xf32>
    %cst_34 = arith.constant 0.00999999977 : f32
    %105 = vector.broadcast %cst_34 : f32 to vector<128x128xf32>
    %106 = arith.subf %102, %105 : vector<128x128xf32>
    %cst_35 = arith.constant -0.00999999977 : f32
    %107 = vector.broadcast %cst_35 : f32 to vector<128x128xf32>
    %108 = arith.cmpf olt, %102, %107 : vector<128x128xf32>
    %cst_36 = arith.constant 0.00999999977 : f32
    %109 = vector.broadcast %cst_36 : f32 to vector<128x128xf32>
    %110 = arith.addf %102, %109 : vector<128x128xf32>
    %cst_37 = arith.constant 0.000000e+00 : f32
    %111 = vector.broadcast %cst_37 : f32 to vector<128x128xf32>
    %112 = arith.select %108, %110, %111 : vector<128x128xi1>, vector<128x128xf32>
    %113 = arith.select %104, %106, %112 : vector<128x128xi1>, vector<128x128xf32>
    %114 = arith.mulf %37, %94 : vector<128x128xf32>
    %115 = arith.mulf %39, %113 : vector<128x128xf32>
    %116 = arith.subf %114, %115 : vector<128x128xf32>
    %117 = arith.mulf %37, %113 : vector<128x128xf32>
    %118 = arith.mulf %39, %94 : vector<128x128xf32>
    %119 = arith.addf %117, %118 : vector<128x128xf32>
    %c0_38 = arith.constant 0 : index
    %c0_39 = arith.constant 0 : index
    %120 = vector.load %arg4[%c0_38, %c0_39] : memref<128x128xf32, #tpu.memory_space<vmem>>, vector<128x128xf32>
    %cst_40 = arith.constant dense<0.000000e+00> : vector<128x128xf32>
    %121 = tpu.matmul %120, %116, %cst_40 {dimension_numbers = #tpu.dot_dimension_numbers<[1], [0], [0], [1], [0, 0, 1, 1], [], []>} : vector<128x128xf32>, vector<128x128xf32>, vector<128x128xf32> -> vector<128x128xf32>
    %c0_41 = arith.constant 0 : index
    %c0_42 = arith.constant 0 : index
    %122 = vector.load %arg5[%c0_41, %c0_42] : memref<128x128xf32, #tpu.memory_space<vmem>>, vector<128x128xf32>
    %cst_43 = arith.constant dense<0.000000e+00> : vector<128x128xf32>
    %123 = tpu.matmul %122, %119, %cst_43 {dimension_numbers = #tpu.dot_dimension_numbers<[1], [0], [0], [1], [0, 0, 1, 1], [], []>} : vector<128x128xf32>, vector<128x128xf32>, vector<128x128xf32> -> vector<128x128xf32>
    %124 = arith.addf %121, %123 : vector<128x128xf32>
    %c11 = arith.constant 11 : index
    %c0_44 = arith.constant 0 : index
    %125 = vector.load %arg9[%c11, %c0_44] : memref<15x256xf32, #tpu.memory_space<vmem>>, vector<1x128xf32>
    %126 = vector.shape_cast %125 : vector<1x128xf32> to vector<128xf32>
    %127 = vector.shape_cast %126 : vector<128xf32> to vector<1x128xf32>
    %128 = vector.broadcast %127 : vector<1x128xf32> to vector<128x128xf32>
    %c12 = arith.constant 12 : index
    %c0_45 = arith.constant 0 : index
    %129 = vector.load %arg9[%c12, %c0_45] : memref<15x256xf32, #tpu.memory_space<vmem>>, vector<1x128xf32>
    %130 = vector.shape_cast %129 : vector<1x128xf32> to vector<128xf32>
    %131 = vector.shape_cast %130 : vector<128xf32> to vector<1x128xf32>
    %132 = vector.broadcast %131 : vector<1x128xf32> to vector<128x128xf32>
    %cst_46 = arith.constant dense<0.000000e+00> : vector<128xf32>
    %133 = vector.multi_reduction <add>, %124, %cst_46 [1] : vector<128x128xf32> to vector<128xf32>
    %134 = vector.shape_cast %133 : vector<128xf32> to vector<128x1xf32>
    %cst_47 = arith.constant 1.280000e+02 : f32
    %135 = vector.broadcast %cst_47 : f32 to vector<128x1xf32>
    %136 = arith.divf %134, %135 : vector<128x1xf32>
    %137 = vector.broadcast %136 : vector<128x1xf32> to vector<128x128xf32>
    %138 = arith.subf %124, %137 : vector<128x128xf32>
    %139 = arith.mulf %138, %138 : vector<128x128xf32>
    %cst_48 = arith.constant dense<0.000000e+00> : vector<128xf32>
    %140 = vector.multi_reduction <add>, %139, %cst_48 [1] : vector<128x128xf32> to vector<128xf32>
    %141 = vector.shape_cast %140 : vector<128xf32> to vector<128x1xf32>
    %cst_49 = arith.constant 1.280000e+02 : f32
    %142 = vector.broadcast %cst_49 : f32 to vector<128x1xf32>
    %143 = arith.divf %141, %142 : vector<128x1xf32>
    %144 = vector.broadcast %136 : vector<128x1xf32> to vector<128x128xf32>
    %145 = arith.subf %124, %144 : vector<128x128xf32>
    %cst_50 = arith.constant 9.99999974E-6 : f32
    %146 = vector.broadcast %cst_50 : f32 to vector<128x1xf32>
    %147 = arith.addf %143, %146 : vector<128x1xf32>
    %148 = math.rsqrt %147 : vector<128x1xf32>
    %149 = vector.broadcast %148 : vector<128x1xf32> to vector<128x128xf32>
    %150 = arith.mulf %145, %149 : vector<128x128xf32>
    %151 = arith.mulf %150, %128 : vector<128x128xf32>
    %152 = arith.addf %151, %132 : vector<128x128xf32>
    %153 = arith.truncf %152 : vector<128x128xf32> to vector<128x128xbf16>
    %c0_51 = arith.constant 0 : index
    %c0_52 = arith.constant 0 : index
    %154 = vector.load %arg7[%c0_51, %c0_52] : memref<128x256xbf16, #tpu.memory_space<vmem>>, vector<128x256xbf16>
    %cst_53 = arith.constant dense<0.000000e+00> : vector<128x256xf32>
    %155 = tpu.matmul %153, %154, %cst_53 {dimension_numbers = #tpu.dot_dimension_numbers<[1], [0], [0], [1], [0, 0, 1, 1], [], []>} : vector<128x128xbf16>, vector<128x256xbf16>, vector<128x256xf32> -> vector<128x256xf32>
    %c14 = arith.constant 14 : index
    %c0_54 = arith.constant 0 : index
    %156 = vector.load %arg9[%c14, %c0_54] : memref<15x256xf32, #tpu.memory_space<vmem>>, vector<1x256xf32>
    %157 = vector.shape_cast %156 : vector<1x256xf32> to vector<256xf32>
    %158 = vector.shape_cast %157 : vector<256xf32> to vector<1x256xf32>
    %159 = vector.broadcast %158 : vector<1x256xf32> to vector<128x256xf32>
    %160 = arith.addf %155, %159 : vector<128x256xf32>
    %cst_55 = arith.constant 0.000000e+00 : f32
    %161 = vector.broadcast %cst_55 : f32 to vector<128x256xf32>
    %162 = arith.cmpf oge, %160, %161 : vector<128x256xf32>
    %cst_56 = arith.constant 0.00999999977 : f32
    %163 = vector.broadcast %cst_56 : f32 to vector<128x256xf32>
    %164 = arith.mulf %163, %160 : vector<128x256xf32>
    %165 = arith.select %162, %160, %164 : vector<128x256xi1>, vector<128x256xf32>
    %166 = arith.truncf %165 : vector<128x256xf32> to vector<128x256xbf16>
    %c0_57 = arith.constant 0 : index
    %c0_58 = arith.constant 0 : index
    %167 = vector.load %arg8[%c0_57, %c0_58] : memref<256x128xbf16, #tpu.memory_space<vmem>>, vector<256x128xbf16>
    %cst_59 = arith.constant dense<0.000000e+00> : vector<128x128xf32>
    %168 = tpu.matmul %166, %167, %cst_59 {dimension_numbers = #tpu.dot_dimension_numbers<[1], [0], [0], [1], [0, 0, 1, 1], [], []>} : vector<128x256xbf16>, vector<256x128xbf16>, vector<128x128xf32> -> vector<128x128xf32>
    %c13 = arith.constant 13 : index
    %c0_60 = arith.constant 0 : index
    %169 = vector.load %arg9[%c13, %c0_60] : memref<15x256xf32, #tpu.memory_space<vmem>>, vector<1x128xf32>
    %170 = vector.shape_cast %169 : vector<1x128xf32> to vector<128xf32>
    %171 = vector.shape_cast %170 : vector<128xf32> to vector<1x128xf32>
    %172 = vector.broadcast %171 : vector<1x128xf32> to vector<128x128xf32>
    %173 = arith.addf %168, %172 : vector<128x128xf32>
    %c0_61 = arith.constant 0 : index
    %c0_62 = arith.constant 0 : index
    %174 = vector.load %arg10[%c0_61, %c0_62] : memref<128x128xf32, #tpu.memory_space<vmem>>, vector<128x128xf32>
    tpu.vector_store %arg10[%c0_61, %c0_62], %173 {strides = array<i32>} : memref<128x128xf32, #tpu.memory_space<vmem>>, vector<128x128xf32>,
    return
  }
  func.func @transform_0(%arg0: i32) -> (i32, i32) {
    %c0_i32 = arith.constant 0 : i32
    %c0_i32_0 = arith.constant 0 : i32
    return %arg0, %c0_i32 : i32, i32
  }
  func.func @transform_1(%arg0: i32) -> (i32, i32) {
    %c0_i32 = arith.constant 0 : i32
    %c0_i32_0 = arith.constant 0 : i32
    %c0_i32_1 = arith.constant 0 : i32
    return %c0_i32, %c0_i32_0 : i32, i32
  }
  func.func @transform_2(%arg0: i32) -> (i32, i32) {
    %c0_i32 = arith.constant 0 : i32
    %c0_i32_0 = arith.constant 0 : i32
    %c0_i32_1 = arith.constant 0 : i32
    return %c0_i32, %c0_i32_0 : i32, i32
  }
  func.func @transform_3(%arg0: i32) -> (i32, i32) {
    %c0_i32 = arith.constant 0 : i32
    %c0_i32_0 = arith.constant 0 : i32
    %c0_i32_1 = arith.constant 0 : i32
    return %c0_i32, %c0_i32_0 : i32, i32
  }
  func.func @transform_4(%arg0: i32) -> (i32, i32) {
    %c0_i32 = arith.constant 0 : i32
    %c0_i32_0 = arith.constant 0 : i32
    %c0_i32_1 = arith.constant 0 : i32
    return %c0_i32, %c0_i32_0 : i32, i32
  }
  func.func @transform_5(%arg0: i32) -> (i32, i32) {
    %c0_i32 = arith.constant 0 : i32
    %c0_i32_0 = arith.constant 0 : i32
    %c0_i32_1 = arith.constant 0 : i32
    return %c0_i32, %c0_i32_0 : i32, i32
  }
  func.func @transform_6(%arg0: i32) -> (i32, i32) {
    %c0_i32 = arith.constant 0 : i32
    %c0_i32_0 = arith.constant 0 : i32
    %c0_i32_1 = arith.constant 0 : i32
    return %c0_i32, %c0_i32_0 : i32, i32
  }
  func.func @transform_7(%arg0: i32) -> (i32, i32) {
    %c0_i32 = arith.constant 0 : i32
    %c0_i32_0 = arith.constant 0 : i32
    %c0_i32_1 = arith.constant 0 : i32
    return %c0_i32, %c0_i32_0 : i32, i32
  }
  func.func @transform_8(%arg0: i32) -> (i32, i32) {
    %c0_i32 = arith.constant 0 : i32
    %c0_i32_0 = arith.constant 0 : i32
    %c0_i32_1 = arith.constant 0 : i32
    return %c0_i32, %c0_i32_0 : i32, i32
  }
  func.func @transform_9(%arg0: i32) -> (i32, i32) {
    %c0_i32 = arith.constant 0 : i32
    %c0_i32_0 = arith.constant 0 : i32
    return %arg0, %c0_i32 : i32, i32
  }
}

</mosaic_0001>

<bundles_post_ra>
// kernel: seq_model_forward.1
= control target key start
LH: loop header
LB: loop body
LE: loop exit
PB: predicated region body
PF: predicated region fallthrough
CT: control target
= control target key end

     0   :  { %s4815_s0 = inlined_call_operand.vmem [shape: bf16[128,128], index: 0, kind: input, shape index: {}]   ;;  %s4816_s1 = inlined_call_operand.vmem [shape: f32[128,128], index: 1, kind: input, shape index: {}]   ;;  %s4817_s2 = inlined_call_operand.vmem [shape: f32[128,128], index: 2, kind: input, shape index: {}]   ;;  %s4818_s3 = inlined_call_operand.vmem [shape: f32[128,128], index: 3, kind: input, shape index: {}]   ;;  %s4819_s4 = inlined_call_operand.vmem [shape: f32[128,128], index: 4, kind: input, shape index: {}]   ;;  %s4820_s5 = inlined_call_operand.vmem [shape: bf16[128,128], index: 5, kind: input, shape index: {}]   ;;  %s4821_s6 = inlined_call_operand.vmem [shape: bf16[128,256], index: 6, kind: input, shape index: {}]   ;;  %s4822_s7 = inlined_call_operand.vmem [shape: bf16[256,128], index: 7, kind: input, shape index: {}]   ;;  %s4823_s8 = inlined_call_operand.vmem [shape: f32[15,256], index: 8, kind: input, shape index: {}]   ;;  %s4824_s9 = inlined_call_operand.hbm [shape: f32[128,128], index: 9, kind: output, shape index: {}]  }
   0x1   :  { %v3218_v0 = vld [vmem:[%s4820_s5] sm:$0xff]   ;;  %v3219_v1 = vld [vmem:[%s4820_s5 + $0x8] sm:$0xff]   ;;  %v3220_v2 = vld [vmem:[%s4820_s5 + $0x10] sm:$0xff]  }
   0x2   :  { %2798 = vmatprep.subr.bf16.mxu0 %v3218_v0  ;;  %v3221_v3 = vld [vmem:[%s4820_s5 + $0x18] sm:$0xff]   ;;  %v3226_v4 = vld [vmem:[%s4815_s0] sm:$0xff]   ;;  %v3223_v6 = vld [vmem:[%s4820_s5 + $0x28] sm:$0xff]  }
   0x3   :  { %2799 = vmatpush3.bf16.msra.mxu0 %v3218_v0  ;;  %2814 = vmatprep.mubr.bf16.mxu0 %v3226_v4  ;;  %v3222_v5 = vld [vmem:[%s4820_s5 + $0x20] sm:$0xff]   ;;  %v3224_v7 = vld [vmem:[%s4820_s5 + $0x30] sm:$0xff]   ;;  %v3225_v8 = vld [vmem:[%s4820_s5 + $0x38] sm:$0xff]  }
   0x4   :  { %2800 = vmatprep.subr.bf16.mxu0 %v3219_v1  ;;  %v3227_v9 = vld [vmem:[%s4815_s0 + $0x8] sm:$0xff]   ;;  %v3228_v10 = vld [vmem:[%s4815_s0 + $0x10] sm:$0xff]  }
   0x7   :  { %2801 = vmatpush3.bf16.msra.mxu0 %v3219_v1 }
   0x8   :  { %2802 = vmatprep.subr.bf16.mxu0 %v3220_v2 }
   0xb   :  { %2803 = vmatpush3.bf16.msra.mxu0 %v3220_v2 }
   0xc   :  { %2804 = vmatprep.subr.bf16.mxu0 %v3221_v3 }
   0xf   :  { %2805 = vmatpush3.bf16.msra.mxu0 %v3221_v3 }
  0x10   :  { %2806 = vmatprep.subr.bf16.mxu0 %v3222_v5 }
  0x13   :  { %2807 = vmatpush3.bf16.msra.mxu0 %v3222_v5 }
  0x14   :  { %2808 = vmatprep.subr.bf16.mxu0 %v3223_v6 }
  0x17   :  { %2809 = vmatpush3.bf16.msra.mxu0 %v3223_v6 }
  0x18   :  { %2810 = vmatprep.subr.bf16.mxu0 %v3224_v7 }
  0x1b   :  { %2811 = vmatpush3.bf16.msra.mxu0 %v3224_v7 }
  0x1c   :  { %2812 = vmatprep.subr.bf16.mxu0 %v3225_v8 }
  0x1f   :  { %2813 = vmatpush3.bf16.msra.mxu0 %v3225_v8 }
  0x20   :  { %14 = vsyncpa [#allocation3], 0  ;;  %v3229_v11 = vld [vmem:[%s4815_s0 + $0x18] sm:$0xff]   ;;  %v3230_v12 = vld [vmem:[%s4815_s0 + $0x20] sm:$0xff]  }
  0x21   :  { %v3231_v13 = vld [vmem:[%s4815_s0 + $0x28] sm:$0xff]   ;;  %v3232_v14 = vld [vmem:[%s4815_s0 + $0x30] sm:$0xff]   ;;  %v3233_v15 = vld [vmem:[%s4815_s0 + $0x38] sm:$0xff]  }
  0x22   :  { %2815 = vmatmul.mubr.bf16.vlgmr.msra.gmra.mrb[0].mxu0 %v3227_v9  ;;  %v66_v16 = vld [vmem:[%s4823_s8] ss:$0 sm:$0xff] }
  0x23   :  { %2818 = vmatprep.mubr.bf16.mxu0 %v3228_v10 }
  0x2a   :  { %2819 = vmatmul.mubr.bf16.gmra.mrb[4].mxu0 %v3229_v11 }
  0x2b   :  { %2822 = vmatprep.mubr.bf16.mxu0 %v3230_v12 }
  0x32   :  { %2823 = vmatmul.mubr.bf16.gmra.mrb[8].mxu0 %v3231_v13 }
  0x33   :  { %2826 = vmatprep.mubr.bf16.mxu0 %v3232_v14 }
  0x3a   :  { %2827 = vmatmul.mubr.bf16.gmra.mrb[12].mxu0 %v3233_v15 }
  0xf5   :  { %v2816_v17 = vpop.f32.mrb[0].mxu0 }
  0xf6   :  { %v206_v18 = vadd.f32 %v2816_v17, %v66_v16  ;;  %v197_v19 = vpop.f32.mrb[1].mxu0 }
  0xf7   :  { %v198_v20 = vadd.f32 %v197_v19, %v66_v16  ;;  %v2817_v21 = vpop.f32.mrb[2].mxu0 }
  0xf8   :  { %266 = vadd.xlane.f32.xlu1 %v206_v18  ;;  %v200_v22 = vpop.f32.mrb[3].mxu0  ;;  %v209_v23 = vadd.f32 %v2817_v21, %v66_v16 }
  0xf9   :  { %262 = vadd.xlane.f32.xlu0 %v198_v20  ;;  %v201_v24 = vadd.f32 %v200_v22, %v66_v16 }
  0xfc   :  { %268 = vadd.xlane.f32.xlu1 %v209_v23 }
  0xfd   :  { %v2820_v25 = vpop.f32.mrb[4].mxu0  ;;  %264 = vadd.xlane.f32.xlu0 %v201_v24 }
  0xfe   :  { %v213_v26 = vpop.f32.mrb[5].mxu0  ;;  %v222_v31 = vadd.f32 %v2820_v25, %v66_v16 }
  0xff   :  { %v214_v27 = vadd.f32 %v213_v26, %v66_v16  ;;  %v2821_v28 = vpop.f32.mrb[6].mxu0 }
 0x100   :  { %v216_v29 = vpop.f32.mrb[7].mxu0  ;;  %v225_v32 = vadd.f32 %v2821_v28, %v66_v16 }
 0x101   :  { %v217_v30 = vadd.f32 %v216_v29, %v66_v16  ;;  %270 = vadd.xlane.f32.xlu0 %v214_v27 }
 0x103   :  { %272 = vadd.xlane.f32.xlu1 %v217_v30 }
 0x105   :  { %v2824_v33 = vpop.f32.mrb[8].mxu0  ;;  %274 = vadd.xlane.f32.xlu0 %v222_v31 }
 0x106   :  { %v229_v34 = vpop.f32.mrb[9].mxu0  ;;  %v3477_v39 = vadd.f32 %v2824_v33, %v66_v16 }
 0x107   :  { %v230_v35 = vadd.f32 %v229_v34, %v66_v16  ;;  %v2825_v36 = vpop.f32.mrb[10].mxu0  ;;  %276 = vadd.xlane.f32.xlu1 %v225_v32 }
 0x108   :  { %v232_v37 = vpop.f32.mrb[11].mxu0  ;;  %v3480_v40 = vadd.f32 %v2825_v36, %v66_v16 }
 0x109   :  { %v3475_v38 = vadd.f32 %v232_v37, %v66_v16  ;;  %278 = vadd.xlane.f32.xlu0 %v230_v35 }
 0x10b   :  { %280 = vadd.xlane.f32.xlu1 %v3475_v38 }
 0x10d   :  { %v2828_v41 = vpop.f32.mrb[12].mxu0  ;;  %282 = vadd.xlane.f32.xlu0 %v3477_v39 }
 0x10e   :  { %v245_v42 = vpop.f32.mrb[13].mxu0  ;;  %v3489_v47 = vadd.f32 %v2828_v41, %v66_v16 }
 0x10f   :  { %v3483_v43 = vadd.f32 %v245_v42, %v66_v16  ;;  %v2829_v44 = vpop.f32.mrb[14].mxu0  ;;  %284 = vadd.xlane.f32.xlu1 %v3480_v40 }
 0x110   :  { %v248_v45 = vpop.f32.mrb[15].mxu0  ;;  %v3492_v48 = vadd.f32 %v2829_v44, %v66_v16 }
 0x111   :  { %v3486_v46 = vadd.f32 %v248_v45, %v66_v16  ;;  %286 = vadd.xlane.f32.xlu0 %v3483_v43 }
 0x113   :  { %288 = vadd.xlane.f32.xlu1 %v3486_v46 }
 0x115   :  { %290 = vadd.xlane.f32.xlu0 %v3489_v47 }
 0x117   :  { %292 = vadd.xlane.f32.xlu1 %v3492_v48 }
 0x185   :  { %v267_v49 = vpop.xlane.xlu1 %266 }
 0x186   :  { %v263_v50 = vpop.xlane.xlu0 %262  ;;  %v297_v51 = vmul.f32 0.0078125, %v267_v49 }
 0x187   :  { %v295_v52 = vmul.f32 0.0078125, %v263_v50 }
 0x188   :  { %v3498_v56 = vsub.f32 %v206_v18, %v297_v51 }
 0x189   :  { %v3496_v53 = vsub.f32 %v198_v20, %v295_v52  ;;  %v269_v54 = vpop.xlane.xlu1 %268 }
 0x18a   :  { %v265_v55 = vpop.xlane.xlu0 %264  ;;  %v298_v57 = vmul.f32 0.0078125, %v269_v54  ;;  %v329_v0 = vmul.f32 %v3498_v56, %v3498_v56 }
 0x18b   :  { %v296_v58 = vmul.f32 0.0078125, %v265_v55  ;;  %v327_v59 = vmul.f32 %v3496_v53, %v3496_v53 }
 0x18c   :  { %v3504_v62 = vsub.f32 %v209_v23, %v298_v57 }
 0x18d   :  { %v3502_v60 = vsub.f32 %v201_v24, %v296_v58  ;;  %343 = vadd.xlane.f32.xlu0 %v327_v59 }
 0x18e   :  { %v271_v61 = vpop.xlane.xlu0 %270  ;;  %v330_v8 = vmul.f32 %v3504_v62, %v3504_v62 }
 0x18f   :  { %v299_v63 = vmul.f32 0.0078125, %v271_v61  ;;  %v328_v1 = vmul.f32 %v3502_v60, %v3502_v60 }
 0x190   :  { %v273_v2 = vpop.xlane.xlu1 %272 }
 0x191   :  { %v3510_v3 = vsub.f32 %v214_v27, %v299_v63  ;;  %v300_v4 = vmul.f32 0.0078125, %v273_v2  ;;  %347 = vadd.xlane.f32.xlu0 %v329_v0  ;;  %345 = vadd.xlane.f32.xlu1 %v328_v1 }
 0x192   :  { %v275_v5 = vpop.xlane.xlu0 %274 }
 0x193   :  { %v3512_v6 = vsub.f32 %v217_v30, %v300_v4  ;;  %v301_v7 = vmul.f32 0.0078125, %v275_v5  ;;  %v331_v9 = vmul.f32 %v3510_v3, %v3510_v3 }
 0x194   :  { %v277_v10 = vpop.xlane.xlu1 %276 }
 0x195   :  { %v3518_v11 = vsub.f32 %v222_v31, %v301_v7  ;;  %v302_v12 = vmul.f32 0.0078125, %v277_v10  ;;  %349 = vadd.xlane.f32.xlu1 %v330_v8  ;;  %351 = vadd.xlane.f32.xlu0 %v331_v9  ;;  %v332_v16 = vmul.f32 %v3512_v6, %v3512_v6 }
 0x196   :  { %v279_v13 = vpop.xlane.xlu0 %278 }
 0x197   :  { %v3520_v14 = vsub.f32 %v225_v32, %v302_v12  ;;  %v303_v15 = vmul.f32 0.0078125, %v279_v13  ;;  %v333_v17 = vmul.f32 %v3518_v11, %v3518_v11 }
 0x198   :  { %v281_v18 = vpop.xlane.xlu1 %280 }
 0x199   :  { %v3526_v19 = vsub.f32 %v230_v35, %v303_v15  ;;  %v304_v20 = vmul.f32 0.0078125, %v281_v18  ;;  %353 = vadd.xlane.f32.xlu1 %v332_v16  ;;  %355 = vadd.xlane.f32.xlu0 %v333_v17  ;;  %v334_v24 = vmul.f32 %v3520_v14, %v3520_v14 }
 0x19a   :  { %v283_v21 = vpop.xlane.xlu0 %282 }
 0x19b   :  { %v3529_v22 = vsub.f32 %v3475_v38, %v304_v20  ;;  %v305_v23 = vmul.f32 0.0078125, %v283_v21  ;;  %v335_v25 = vmul.f32 %v3526_v19, %v3526_v19 }
 0x19c   :  { %v285_v26 = vpop.xlane.xlu1 %284 }
 0x19d   :  { %v3536_v27 = vsub.f32 %v3477_v39, %v305_v23  ;;  %v306_v28 = vmul.f32 0.0078125, %v285_v26  ;;  %357 = vadd.xlane.f32.xlu1 %v334_v24  ;;  %359 = vadd.xlane.f32.xlu0 %v335_v25  ;;  %v336_v32 = vmul.f32 %v3529_v22, %v3529_v22  ;;  %v3577_v24 = vld [vmem:[%s4823_s8 + $0x1] ss:$0 sm:$0xff] }
 0x19e   :  { %v287_v29 = vpop.xlane.xlu0 %286 }
 0x19f   :  { %v3539_v30 = vsub.f32 %v3480_v40, %v306_v28  ;;  %v307_v31 = vmul.f32 0.0078125, %v287_v29  ;;  %v337_v33 = vmul.f32 %v3536_v27, %v3536_v27 }
 0x1a0   :  { %v289_v34 = vpop.xlane.xlu1 %288 }
 0x1a1   :  { %v3546_v35 = vsub.f32 %v3483_v43, %v307_v31  ;;  %v308_v36 = vmul.f32 0.0078125, %v289_v34  ;;  %361 = vadd.xlane.f32.xlu1 %v336_v32  ;;  %363 = vadd.xlane.f32.xlu0 %v337_v33  ;;  %v338_v40 = vmul.f32 %v3539_v30, %v3539_v30 }
 0x1a2   :  { %v291_v37 = vpop.xlane.xlu0 %290 }
 0x1a3   :  { %v3549_v38 = vsub.f32 %v3486_v46, %v308_v36  ;;  %v309_v39 = vmul.f32 0.0078125, %v291_v37  ;;  %v339_v41 = vmul.f32 %v3546_v35, %v3546_v35 }
 0x1a4   :  { %v293_v42 = vpop.xlane.xlu1 %292 }
 0x1a5   :  { %v3556_v44 = vsub.f32 %v3489_v47, %v309_v39  ;;  %v310_v43 = vmul.f32 0.0078125, %v293_v42  ;;  %365 = vadd.xlane.f32.xlu1 %v338_v40  ;;  %367 = vadd.xlane.f32.xlu0 %v339_v41  ;;  %v340_v46 = vmul.f32 %v3549_v38, %v3549_v38  ;;  %v471_v47 = vld [vmem:[%s4816_s1] sm:$0xff] }
 0x1a6   :  { %2862 = vmatprep.mubr.f32.mxu1 %v471_v47  ;;  %v3585_v39 = vld [vmem:[%s4823_s8 + $0x2] ss:$0 sm:$0xff] }
 0x1a7   :  { %v3559_v45 = vsub.f32 %v3492_v48, %v310_v43  ;;  %v341_v49 = vmul.f32 %v3556_v44, %v3556_v44  ;;  %v632_v48 = vld [vmem:[%s4817_s2] sm:$0xff] }
 0x1a8   :  { %2918 = vmatprep.mubr.f32.mxu0 %v632_v48 }
 0x1a9   :  { %369 = vadd.xlane.f32.xlu1 %v340_v46  ;;  %371 = vadd.xlane.f32.xlu0 %v341_v49  ;;  %v342_v50 = vmul.f32 %v3559_v45, %v3559_v45 }
 0x1ad   :  { %373 = vadd.xlane.f32.xlu1 %v342_v50 }
 0x21a   :  { %v344_v51 = vpop.xlane.xlu0 %343 }
 0x21b   :  { %v375_v52 = vmul.f32 0.0078125, %v344_v51 }
 0x21d   :  { %v391_v54 = vadd.f32 1e-05, %v375_v52 }
 0x21e   :  { %v346_v55 = vpop.xlane.xlu1 %345  ;;  %v348_v57 = vpop.xlane.xlu0 %347 }
 0x21f   :  { %3274 = vrsqrt.f32 %v391_v54  ;;  %v376_v58 = vmul.f32 0.0078125, %v346_v55  ;;  %v377_v59 = vmul.f32 0.0078125, %v348_v57 }
 0x221   :  { %v392_v61 = vadd.f32 1e-05, %v376_v58  ;;  %v393_v63 = vadd.f32 1e-05, %v377_v59 }
 0x222   :  { %v350_v0 = vpop.xlane.xlu1 %349  ;;  %v352_v1 = vpop.xlane.xlu0 %351 }
 0x223   :  { %3276 = vrsqrt.f32 %v392_v61  ;;  %v378_v2 = vmul.f32 0.0078125, %v350_v0  ;;  %v379_v4 = vmul.f32 0.0078125, %v352_v1 }
 0x224   :  { %3278 = vrsqrt.f32 %v393_v63 }
 0x225   :  { %v394_v5 = vadd.f32 1e-05, %v378_v2  ;;  %v395_v7 = vadd.f32 1e-05, %v379_v4 }
 0x226   :  { %v354_v8 = vpop.xlane.xlu1 %353  ;;  %v356_v9 = vpop.xlane.xlu0 %355 }
 0x227   :  { %3280 = vrsqrt.f32 %v394_v5  ;;  %v380_v10 = vmul.f32 0.0078125, %v354_v8  ;;  %v381_v12 = vmul.f32 0.0078125, %v356_v9 }
 0x228   :  { %3282 = vrsqrt.f32 %v395_v7 }
 0x229   :  { %v3275_v13 = vpop.eup %3274  ;;  %v396_v15 = vadd.f32 1e-05, %v380_v10  ;;  %v397_v16 = vadd.f32 1e-05, %v381_v12 }
 0x22a   :  { %v423_v17 = vmul.f32 %v3275_v13, %v3496_v53  ;;  %v358_v18 = vpop.xlane.xlu1 %357  ;;  %v360_v20 = vpop.xlane.xlu0 %359 }
 0x22b   :  { %3284 = vrsqrt.f32 %v396_v15  ;;  %v382_v21 = vmul.f32 0.0078125, %v358_v18  ;;  %v383_v23 = vmul.f32 0.0078125, %v360_v20 }
 0x22c   :  { %3286 = vrsqrt.f32 %v397_v16  ;;  %v439_v53 = vmul.f32 %v423_v17, %v3577_v24 }
 0x22d   :  { %v3277_v25 = vpop.eup %3276  ;;  %v398_v26 = vadd.f32 1e-05, %v382_v21  ;;  %v399_v28 = vadd.f32 1e-05, %v383_v23 }
 0x22e   :  { %v3279_v29 = vpop.eup %3278  ;;  %v424_v31 = vmul.f32 %v3277_v25, %v3502_v60  ;;  %v362_v32 = vpop.xlane.xlu1 %361 }
 0x22f   :  { %v364_v33 = vpop.xlane.xlu0 %363  ;;  %v425_v34 = vmul.f32 %v3279_v29, %v3498_v56  ;;  %3288 = vrsqrt.f32 %v398_v26  ;;  %v384_v36 = vmul.f32 0.0078125, %v362_v32  ;;  %v455_v56 = vadd.f32 %v439_v53, %v3585_v39 }
 0x230   :  { %v385_v37 = vmul.f32 0.0078125, %v364_v33  ;;  %3290 = vrsqrt.f32 %v399_v28  ;;  %v440_v40 = vmul.f32 %v424_v31, %v3577_v24 }
 0x231   :  { %v3281_v41 = vpop.eup %3280  ;;  %v400_v42 = vadd.f32 1e-05, %v384_v36  ;;  %v441_v48 = vmul.f32 %v425_v34, %v3577_v24 }
 0x232   :  { %v401_v60 = vadd.f32 1e-05, %v385_v37  ;;  %v3283_v43 = vpop.eup %3282  ;;  %v426_v46 = vmul.f32 %v3281_v41, %v3504_v62  ;;  %v366_v49 = vpop.xlane.xlu1 %365  ;;  %v456_v47 = vadd.f32 %v440_v40, %v3585_v39 }
 0x233   :  { %v368_v50 = vpop.xlane.xlu0 %367  ;;  %v427_v51 = vmul.f32 %v3283_v43, %v3510_v3  ;;  %3292 = vrsqrt.f32 %v400_v42  ;;  %v386_v52 = vmul.f32 0.0078125, %v366_v49  ;;  %v457_v3 = vadd.f32 %v441_v48, %v3585_v39 }
 0x234   :  { %v387_v54 = vmul.f32 0.0078125, %v368_v50  ;;  %3294 = vrsqrt.f32 %v401_v60  ;;  %v3054_v55 = vpack.c.bf16 %v456_v47, %v455_v56  ;;  %v442_v57 = vmul.f32 %v426_v46, %v3577_v24 }
 0x235   :  { %v3285_v58 = vpop.eup %3284  ;;  %v402_v59 = vadd.f32 1e-05, %v386_v52  ;;  %v443_v61 = vmul.f32 %v427_v51, %v3577_v24 }
 0x236   :  { %v403_v62 = vadd.f32 1e-05, %v387_v54  ;;  %v3287_v63 = vpop.eup %3286  ;;  %v428_v0 = vmul.f32 %v3285_v58, %v3512_v6  ;;  %v370_v1 = vpop.xlane.xlu1 %369  ;;  %3055 = vmatprep.subr.bf16.mxu1 %v3054_v55  ;;  %3087 = vmatprep.subr.bf16.mxu0 %v3054_v55  ;;  %v458_v4 = vadd.f32 %v442_v57, %v3585_v39 }
 0x237   :  { %v372_v2 = vpop.xlane.xlu0 %371  ;;  %v429_v5 = vmul.f32 %v3287_v63, %v3518_v11  ;;  %3296 = vrsqrt.f32 %v402_v59  ;;  %v388_v7 = vmul.f32 0.0078125, %v370_v1  ;;  %3057 = vmatpush3.bf16.msra.mxu1 %v3054_v55  ;;  %3089 = vmatpush3.bf16.msra.mxu0 %v3054_v55  ;;  %v459_v15 = vadd.f32 %v443_v61, %v3585_v39  ;;  %v472_v63 = vld [vmem:[%s4816_s1 + $0x8] sm:$0xff]  ;;  %v474_v1 = vld [vmem:[%s4816_s1 + $0x18] sm:$0xff] }
 0x238   :  { %v389_v8 = vmul.f32 0.0078125, %v372_v2  ;;  %3298 = vrsqrt.f32 %v403_v62  ;;  %v3058_v9 = vpack.c.bf16 %v458_v4, %v457_v3  ;;  %v444_v10 = vmul.f32 %v428_v0, %v3577_v24  ;;  %v473_v0 = vld [vmem:[%s4816_s1 + $0x10] sm:$0xff]  ;;  %v635_v2 = vld [vmem:[%s4817_s2 + $0x18] sm:$0xff]  ;;  %v475_v3 = vld [vmem:[%s4816_s1 + $0x20] sm:$0xff] }
 0x239   :  { %v3289_v6 = vpop.eup %3288  ;;  %v404_v12 = vadd.f32 1e-05, %v388_v7  ;;  %v445_v20 = vmul.f32 %v429_v5, %v3577_v24  ;;  %v636_v4 = vld [vmem:[%s4817_s2 + $0x20] sm:$0xff]  ;;  %v476_v5 = vld [vmem:[%s4816_s1 + $0x28] sm:$0xff] }
 0x23a   :  { %v405_v13 = vadd.f32 1e-05, %v389_v8  ;;  %v3291_v16 = vpop.eup %3290  ;;  %v430_v17 = vmul.f32 %v3289_v6, %v3520_v14  ;;  %v374_v18 = vpop.xlane.xlu1 %373  ;;  %3059 = vmatprep.subr.bf16.mxu1 %v3058_v9  ;;  %3091 = vmatprep.subr.bf16.mxu0 %v3058_v9  ;;  %v460_v11 = vadd.f32 %v444_v10, %v3585_v39  ;;  %v637_v7 = vld [vmem:[%s4817_s2 + $0x28] sm:$0xff]  ;;  %v477_v8 = vld [vmem:[%s4816_s1 + $0x30] sm:$0xff]  ;;  %v478_v10 = vld [vmem:[%s4816_s1 + $0x38] sm:$0xff] }
 0x23b   :  { %v431_v21 = vmul.f32 %v3291_v16, %v3526_v19  ;;  %3300 = vrsqrt.f32 %v404_v12  ;;  %v390_v23 = vmul.f32 0.0078125, %v374_v18  ;;  %3061 = vmatpush3.bf16.msra.mxu1 %v3058_v9  ;;  %3093 = vmatpush3.bf16.msra.mxu0 %v3058_v9  ;;  %v461_v33 = vadd.f32 %v445_v20, %v3585_v39  ;;  %v638_v9 = vld [vmem:[%s4817_s2 + $0x30] sm:$0xff]  ;;  %v639_v6 = vld [vmem:[%s4817_s2 + $0x38] sm:$0xff]  ;;  %v479_v12 = vld [vmem:[%s4816_s1 + $0x40] sm:$0xff] }
 0x23c   :  { %3302 = vrsqrt.f32 %v405_v13  ;;  %v3062_v25 = vpack.c.bf16 %v460_v11, %v459_v15  ;;  %v446_v26 = vmul.f32 %v430_v17, %v3577_v24  ;;  %v640_v13 = vld [vmem:[%s4817_s2 + $0x40] sm:$0xff]  ;;  %v480_v15 = vld [vmem:[%s4816_s1 + $0x48] sm:$0xff]  ;;  %v481_v17 = vld [vmem:[%s4816_s1 + $0x50] sm:$0xff] }
 0x23d   :  { %v3293_v28 = vpop.eup %3292  ;;  %v406_v29 = vadd.f32 1e-05, %v390_v23  ;;  %v447_v14 = vmul.f32 %v431_v21, %v3577_v24  ;;  %v641_v16 = vld [vmem:[%s4817_s2 + $0x48] sm:$0xff]  ;;  %v642_v18 = vld [vmem:[%s4817_s2 + $0x50] sm:$0xff]  ;;  %v482_v11 = vld [vmem:[%s4816_s1 + $0x58] sm:$0xff] }
 0x23e   :  { %v3295_v31 = vpop.eup %3294  ;;  %v432_v32 = vmul.f32 %v3293_v28, %v3529_v22  ;;  %3063 = vmatprep.subr.bf16.mxu1 %v3062_v25  ;;  %3095 = vmatprep.subr.bf16.mxu0 %v3062_v25  ;;  %v462_v19 = vadd.f32 %v446_v26, %v3585_v39  ;;  %v643_v20 = vld [vmem:[%s4817_s2 + $0x58] sm:$0xff]  ;;  %v483_v21 = vld [vmem:[%s4816_s1 + $0x60] sm:$0xff]  ;;  %v645_v26 = vld [vmem:[%s4817_s2 + $0x68] sm:$0xff] }
 0x23f   :  { %v433_v53 = vmul.f32 %v3295_v31, %v3536_v27  ;;  %3304 = vrsqrt.f32 %v406_v29  ;;  %3065 = vmatpush3.bf16.msra.mxu1 %v3062_v25  ;;  %3097 = vmatpush3.bf16.msra.mxu0 %v3062_v25  ;;  %v463_v40 = vadd.f32 %v447_v14, %v3585_v39  ;;  %v644_v23 = vld [vmem:[%s4817_s2 + $0x60] sm:$0xff]  ;;  %v484_v25 = vld [vmem:[%s4816_s1 + $0x68] sm:$0xff]  ;;  %v485_v28 = vld [vmem:[%s4816_s1 + $0x70] sm:$0xff] }
 0x240   :  { %v3066_v34 = vpack.c.bf16 %v462_v19, %v461_v33  ;;  %v448_v36 = vmul.f32 %v432_v32, %v3577_v24  ;;  %v646_v29 = vld [vmem:[%s4817_s2 + $0x70] sm:$0xff]  ;;  %v486_v14 = vld [vmem:[%s4816_s1 + $0x78] sm:$0xff]  ;;  %v3724_v32 = vld [vmem:[%s4823_s8 + $0x3] ss:$0 sm:$0xff] }
 0x241   :  { %v3297_v37 = vpop.eup %3296  ;;  %v449_v60 = vmul.f32 %v433_v53, %v3577_v24  ;;  %v647_v31 = vld [vmem:[%s4817_s2 + $0x78] sm:$0xff]  ;;  %v3729_v33 = vld [vmem:[%s4823_s8 + $0x4] ss:$0 sm:$0xff] }
 0x242   :  { %v3299_v41 = vpop.eup %3298  ;;  %v434_v22 = vmul.f32 %v3297_v37, %v3539_v30  ;;  %3067 = vmatprep.subr.bf16.mxu1 %v3066_v34  ;;  %3099 = vmatprep.subr.bf16.mxu0 %v3066_v34  ;;  %v464_v42 = vadd.f32 %v448_v36, %v3585_v39 }
 0x243   :  { %v435_v27 = vmul.f32 %v3299_v41, %v3546_v35  ;;  %3069 = vmatpush3.bf16.msra.mxu1 %v3066_v34  ;;  %3101 = vmatpush3.bf16.msra.mxu0 %v3066_v34  ;;  %v465_v30 = vadd.f32 %v449_v60, %v3585_v39  ;;  %v3755_v60 = vld [vmem:[%s4823_s8 + $0x10] ss:$0 sm:$0xff] }
 0x244   :  { %v3070_v43 = vpack.c.bf16 %v464_v42, %v463_v40  ;;  %v450_v46 = vmul.f32 %v434_v22, %v3577_v24  ;;  %v3750_v42 = vld [vmem:[%s4823_s8 + $0x7] ss:$0 sm:$0xff] }
 0x245   :  { %v3301_v49 = vpop.eup %3300  ;;  %v451_v50 = vmul.f32 %v435_v27, %v3577_v24 }
 0x246   :  { %v3303_v56 = vpop.eup %3302  ;;  %v436_v47 = vmul.f32 %v3301_v49, %v3549_v38  ;;  %3071 = vmatprep.subr.bf16.mxu1 %v3070_v43  ;;  %3103 = vmatprep.subr.bf16.mxu0 %v3070_v43  ;;  %v466_v48 = vadd.f32 %v450_v46, %v3585_v39 }
 0x247   :  { %v437_v51 = vmul.f32 %v3303_v56, %v3556_v44  ;;  %3073 = vmatpush3.bf16.msra.mxu1 %v3070_v43  ;;  %3105 = vmatpush3.bf16.msra.mxu0 %v3070_v43  ;;  %v467_v55 = vadd.f32 %v451_v50, %v3585_v39 }
 0x248   :  { %v3074_v35 = vpack.c.bf16 %v466_v48, %v465_v30  ;;  %v452_v52 = vmul.f32 %v436_v47, %v3577_v24 }
 0x249   :  { %v3305_v54 = vpop.eup %3304  ;;  %v453_v58 = vmul.f32 %v437_v51, %v3577_v24 }
 0x24a   :  { %v438_v57 = vmul.f32 %v3305_v54, %v3559_v45  ;;  %3075 = vmatprep.subr.bf16.mxu1 %v3074_v35  ;;  %3107 = vmatprep.subr.bf16.mxu0 %v3074_v35  ;;  %v468_v38 = vadd.f32 %v452_v52, %v3585_v39 }
 0x24b   :  { %3077 = vmatpush3.bf16.msra.mxu1 %v3074_v35  ;;  %3109 = vmatpush3.bf16.msra.mxu0 %v3074_v35  ;;  %v469_v62 = vadd.f32 %v453_v58, %v3585_v39  ;;  %v3782_v58 = vld [vmem:[%s4823_s8 + $0x5] ss:$0 sm:$0xff] }
 0x24c   :  { %v3078_v59 = vpack.c.bf16 %v468_v38, %v467_v55  ;;  %v454_v44 = vmul.f32 %v438_v57, %v3577_v24  ;;  %v633_v24 = vld [vmem:[%s4817_s2 + $0x8] sm:$0xff] }
 0x24e   :  { %3079 = vmatprep.subr.bf16.mxu1 %v3078_v59  ;;  %3111 = vmatprep.subr.bf16.mxu0 %v3078_v59  ;;  %v470_v61 = vadd.f32 %v454_v44, %v3585_v39  ;;  %v634_v39 = vld [vmem:[%s4817_s2 + $0x10] sm:$0xff] }
 0x24f   :  { %3081 = vmatpush3.bf16.msra.mxu1 %v3078_v59  ;;  %3113 = vmatpush3.bf16.msra.mxu0 %v3078_v59  ;;  %v3787_v59 = vld [vmem:[%s4823_s8 + $0x6] ss:$0 sm:$0xff] }
 0x250   :  { %v3082_v45 = vpack.c.bf16 %v470_v61, %v469_v62 }
 0x252   :  { %3083 = vmatprep.subr.bf16.mxu1 %v3082_v45  ;;  %3115 = vmatprep.subr.bf16.mxu0 %v3082_v45 }
 0x253   :  { %3085 = vmatpush3.bf16.msra.mxu1 %v3082_v45  ;;  %3117 = vmatpush3.bf16.msra.mxu0 %v3082_v45 }
 0x256   :  { %2863 = vmatmul.mubr.f32.vlgmr.msra.gmra.mrb[0].mxu1 %v472_v63  ;;  %2919 = vmatmul.mubr.f32.vlgmr.msra.gmra.mrb[16].mxu0 %v633_v24 }
 0x257   :  { %2865 = vmatprep.mubr.f32.mxu1 %v473_v0  ;;  %2921 = vmatprep.mubr.f32.mxu0 %v634_v39 }
 0x25a   :  { %2866 = vmatmul.mubr.f32.gmra.mrb[2].mxu1 %v474_v1  ;;  %2922 = vmatmul.mubr.f32.gmra.mrb[18].mxu0 %v635_v2 }
 0x25b   :  { %2868 = vmatprep.mubr.f32.mxu1 %v475_v3  ;;  %2924 = vmatprep.mubr.f32.mxu0 %v636_v4 }
 0x25e   :  { %2869 = vmatmul.mubr.f32.gmra.mrb[4].mxu1 %v476_v5  ;;  %2925 = vmatmul.mubr.f32.gmra.mrb[20].mxu0 %v637_v7 }
 0x25f   :  { %2871 = vmatprep.mubr.f32.mxu1 %v477_v8  ;;  %2927 = vmatprep.mubr.f32.mxu0 %v638_v9 }
 0x262   :  { %2872 = vmatmul.mubr.f32.gmra.mrb[6].mxu1 %v478_v10  ;;  %2928 = vmatmul.mubr.f32.gmra.mrb[22].mxu0 %v639_v6 }
 0x263   :  { %2874 = vmatprep.mubr.f32.mxu1 %v479_v12  ;;  %2930 = vmatprep.mubr.f32.mxu0 %v640_v13 }
 0x266   :  { %2875 = vmatmul.mubr.f32.gmra.mrb[8].mxu1 %v480_v15  ;;  %2931 = vmatmul.mubr.f32.gmra.mrb[24].mxu0 %v641_v16  ;;  %v3816_v15 = vld [vmem:[%s4823_s8 + $0x11] ss:$0 sm:$0xff]  ;;  %v3821_v16 = vld [vmem:[%s4823_s8 + $0x12] ss:$0 sm:$0xff] }
 0x267   :  { %2877 = vmatprep.mubr.f32.mxu1 %v481_v17  ;;  %2933 = vmatprep.mubr.f32.mxu0 %v642_v18 }
 0x26a   :  { %2878 = vmatmul.mubr.f32.gmra.mrb[10].mxu1 %v482_v11  ;;  %2934 = vmatmul.mubr.f32.gmra.mrb[26].mxu0 %v643_v20 }
 0x26b   :  { %2880 = vmatprep.mubr.f32.mxu1 %v483_v21  ;;  %2936 = vmatprep.mubr.f32.mxu0 %v644_v23 }
 0x26e   :  { %2881 = vmatmul.mubr.f32.gmra.mrb[12].mxu1 %v484_v25  ;;  %2937 = vmatmul.mubr.f32.gmra.mrb[28].mxu0 %v645_v26 }
 0x26f   :  { %2883 = vmatprep.mubr.f32.mxu1 %v485_v28  ;;  %2939 = vmatprep.mubr.f32.mxu0 %v646_v29 }
 0x272   :  { %2884 = vmatmul.mubr.f32.gmra.mrb[14].mxu1 %v486_v14  ;;  %2940 = vmatmul.mubr.f32.gmra.mrb[30].mxu0 %v647_v31 }
 0x329   :  { %v3731_v19 = vpop.f32.mrb[0].mxu1  ;;  %v3733_v53 = vpop.f32.mrb[16].mxu0 }
 0x32a   :  { %v798_v34 = vmul.f32 %v3731_v19, %v3724_v32  ;;  %v895_v36 = vmul.f32 %v3731_v19, %v3729_v33  ;;  %v814_v37 = vmul.f32 %v3733_v53, %v3729_v33  ;;  %v879_v40 = vmul.f32 %v3733_v53, %v3724_v32  ;;  %v3743_v41 = vpop.f32.mrb[1].mxu1  ;;  %v3745_v22 = vpop.f32.mrb[17].mxu0 }
 0x32b   :  { %v797_v27 = vmul.f32 %v3724_v32, %v3743_v41  ;;  %v894_v43 = vmul.f32 %v3729_v33, %v3743_v41  ;;  %v813_v46 = vmul.f32 %v3729_v33, %v3745_v22  ;;  %v878_v49 = vmul.f32 %v3724_v32, %v3745_v22 }
 0x32c   :  { %v830_v50 = vsub.f32 %v798_v34, %v814_v37  ;;  %v911_v56 = vadd.f32 %v895_v36, %v879_v40 }
 0x32d   :  { %v829_v47 = vsub.f32 %v797_v27, %v813_v46  ;;  %v910_v30 = vadd.f32 %v894_v43, %v878_v49  ;;  %v3765_v48 = vpop.f32.mrb[2].mxu1  ;;  %v3767_v51 = vpop.f32.mrb[18].mxu0 }
 0x32e   :  { %v847_v35 = vadd.f32 %v3750_v42, %v830_v50  ;;  %v928_v52 = vadd.f32 %v3755_v60, %v911_v56  ;;  %v800_v54 = vmul.f32 %v3765_v48, %v3724_v32  ;;  %v897_v55 = vmul.f32 %v3765_v48, %v3729_v33  ;;  %v3775_v57 = vpop.f32.mrb[3].mxu1  ;;  %v3777_v38 = vpop.f32.mrb[19].mxu0 }
 0x32f   :  { %v846_v44 = vadd.f32 %v3750_v42, %v829_v47  ;;  %v927_v62 = vadd.f32 %v3755_v60, %v910_v30  ;;  %v816_v61 = vmul.f32 %v3767_v51, %v3729_v33  ;;  %v881_v45 = vmul.f32 %v3767_v51, %v3724_v32 }
 0x330   :  { %v863_v63 = vmax.f32 %v847_v35, 0.0  ;;  %v944_v24 = vmax.f32 %v928_v52, 0.0  ;;  %v3797_v0 = vmul.f32 %v3724_v32, %v3775_v57  ;;  %v896_v39 = vmul.f32 %v3729_v33, %v3775_v57 }
 0x331   :  { %v862_v1 = vmax.f32 %v846_v44, 0.0  ;;  %v943_v2 = vmax.f32 %v927_v62, 0.0  ;;  %v832_v3 = vsub.f32 %v800_v54, %v816_v61  ;;  %v913_v4 = vadd.f32 %v897_v55, %v881_v45  ;;  %v3801_v5 = vpop.f32.mrb[4].mxu1  ;;  %v3803_v7 = vpop.f32.mrb[20].mxu0 }
 0x332   :  { %v960_v8 = vmul.f32 %v863_v63, %v3782_v58  ;;  %v976_v9 = vmul.f32 %v944_v24, %v3787_v59  ;;  %v1121_v10 = vmul.f32 %v944_v24, %v3782_v58  ;;  %v1137_v6 = vmul.f32 %v863_v63, %v3787_v59  ;;  %v3809_v12 = vpop.f32.mrb[5].mxu1  ;;  %v3811_v13 = vpop.f32.mrb[21].mxu0 }
 0x333   :  { %v959_v17 = vmul.f32 %v862_v1, %v3782_v58  ;;  %v975_v18 = vmul.f32 %v943_v2, %v3787_v59  ;;  %v1120_v11 = vmul.f32 %v943_v2, %v3782_v58  ;;  %v1136_v20 = vmul.f32 %v862_v1, %v3787_v59 }
 0x334   :  { %v992_v21 = vsub.f32 %v960_v8, %v976_v9  ;;  %v1153_v23 = vadd.f32 %v1137_v6, %v1121_v10  ;;  %v849_v25 = vadd.f32 %v3750_v42, %v832_v3  ;;  %v930_v26 = vadd.f32 %v3755_v60, %v913_v4 }
 0x335   :  { %v991_v28 = vsub.f32 %v959_v17, %v975_v18  ;;  %v1152_v29 = vadd.f32 %v1136_v20, %v1120_v11  ;;  %v815_v14 = vmul.f32 %v3729_v33, %v3777_v38  ;;  %v880_v31 = vmul.f32 %v3724_v32, %v3777_v38  ;;  %v3833_v34 = vpop.f32.mrb[6].mxu1  ;;  %v3835_v36 = vpop.f32.mrb[22].mxu0 }
 0x336   :  { %v1009_v37 = vadd.f32 %v3816_v15, %v992_v21  ;;  %v1170_v40 = vadd.f32 %v3821_v16, %v1153_v23  ;;  %v865_v27 = vmax.f32 %v849_v25, 0.0  ;;  %v946_v43 = vmax.f32 %v930_v26, 0.0  ;;  %v3839_v46 = vpop.f32.mrb[7].mxu1  ;;  %v3841_v49 = vpop.f32.mrb[23].mxu0 }
 0x337   :  { %v1008_v50 = vadd.f32 %v3816_v15, %v991_v28  ;;  %v1169_v56 = vadd.f32 %v3821_v16, %v1152_v29  ;;  %v831_v47 = vsub.f32 %v3797_v0, %v815_v14  ;;  %v912_v30 = vadd.f32 %v896_v39, %v880_v31 }
 0x338   :  { %vm1025_vm0 = vcmp.gt.f32.partialorder %v1009_v37, 0.01  ;;  %v2526_v35 = vadd.f32 -0.01, %v1009_v37  ;;  %vm1057_vm1 = vcmp.lt.f32.partialorder %v1009_v37, -0.01  ;;  %v962_v52 = vmul.f32 %v865_v27, %v3782_v58 }
 0x339   :  { %v1073_v54 = vadd.f32 0.01, %v1009_v37  ;;  %vm1186_vm2 = vcmp.gt.f32.partialorder %v1170_v40, 0.01  ;;  %v2542_v55 = vadd.f32 -0.01, %v1170_v40  ;;  %v978_v44 = vmul.f32 %v946_v43, %v3787_v59 }
 0x33a   :  { %vm1218_vm3 = vcmp.lt.f32.partialorder %v1170_v40, -0.01  ;;  %v1234_v62 = vadd.f32 0.01, %v1170_v40  ;;  %vm1024_vm4 = vcmp.gt.f32.partialorder %v1008_v50, 0.01  ;;  %v1123_v61 = vmul.f32 %v946_v43, %v3782_v58 }
 0x33b   :  { %v1089_v45 = vsel %vm1057_vm1, %v1073_v54, 0.0  ;;  %v2525_v63 = vadd.f32 -0.01, %v1008_v50  ;;  %vm1056_vm5 = vcmp.lt.f32.partialorder %v1008_v50, -0.01  ;;  %v994_v24 = vsub.f32 %v962_v52, %v978_v44  ;;  %v3849_v0 = vpop.f32.mrb[8].mxu1 }
 0x33c   :  { %v1105_v39 = vsel %vm1025_vm0, %v2526_v35, %v1089_v45  ;;  %v1250_v1 = vsel %vm1218_vm3, %v1234_v62, 0.0  ;;  %v1072_v2 = vadd.f32 0.01, %v1008_v50  ;;  %vm1185_vm6 = vcmp.gt.f32.partialorder %v1169_v56, 0.01  ;;  %v3852_v3 = vpop.f32.mrb[24].mxu0 }
 0x33d   :  { %v1266_v4 = vsel %vm1186_vm2, %v2542_v55, %v1250_v1  ;;  %v3856_v8 = vmul.f32 %v3731_v19, %v1105_v39  ;;  %v3859_v9 = vmul.f32 %v3733_v53, %v1105_v39  ;;  %v2541_v10 = vadd.f32 -0.01, %v1169_v56  ;;  %v3861_v6 = vpop.f32.mrb[9].mxu1  ;;  %v3863_v17 = vpop.f32.mrb[25].mxu0 }
 0x33e   :  { %v3866_v18 = vmul.f32 %v3733_v53, %v1266_v4  ;;  %v3869_v11 = vmul.f32 %v3731_v19, %v1266_v4  ;;  %v1088_v20 = vsel %vm1056_vm5, %v1072_v2, 0.0  ;;  %vm1217_vm7 = vcmp.lt.f32.partialorder %v1169_v56, -0.01  ;;  %v3872_v21 = vpop.f32.mrb[10].mxu1  ;;  %v3874_v23 = vpop.f32.mrb[26].mxu0 }
 0x33f   :  { %4825 = vst [vmem:[#allocation5_spill] sm:$0xff] %v3856_v8  ;;  %v1104_v25 = vsel %vm1024_vm4, %v2525_v63, %v1088_v20  ;;  %v1233_v26 = vadd.f32 0.01, %v1169_v56  ;;  %v1011_v28 = vadd.f32 %v3816_v15, %v994_v24  ;;  %v1139_v29 = vmul.f32 %v865_v27, %v3787_v59  ;;  %v3879_v14 = vpop.f32.mrb[11].mxu1  ;;  %v3881_v53 = vpop.f32.mrb[27].mxu0 }
 0x340   :  { %4826 = vst [vmem:[#allocation6_spill] sm:$0xff] %v3866_v18  ;;  %v3884_v19 = vmul.f32 %v1104_v25, %v3743_v41  ;;  %v3887_v31 = vmul.f32 %v1104_v25, %v3745_v22  ;;  %v848_v37 = vadd.f32 %v3750_v42, %v831_v47  ;;  %v929_v40 = vadd.f32 %v3755_v60, %v912_v30 }
 0x341   :  { %v1249_v43 = vsel %vm1217_vm7, %v1233_v26, 0.0  ;;  %vm1027_vm8 = vcmp.gt.f32.partialorder %v1011_v28, 0.01  ;;  %v2528_v50 = vadd.f32 -0.01, %v1011_v28  ;;  %v1155_v35 = vadd.f32 %v1139_v29, %v1123_v61  ;;  %v3891_v52 = vpop.f32.mrb[12].mxu1 }
 0x342   :  { %4827 = vst [vmem:[#allocation7_spill] sm:$0xff] %v3884_v19  ;;  %v1265_v27 = vsel %vm1185_vm6, %v2541_v10, %v1249_v43  ;;  %vm1059_vm9 = vcmp.lt.f32.partialorder %v1011_v28, -0.01  ;;  %v1075_v54 = vadd.f32 0.01, %v1011_v28  ;;  %v864_v55 = vmax.f32 %v848_v37, 0.0 }
 0x343   :  { %v3894_v44 = vpop.f32.mrb[28].mxu0  ;;  %v3897_v62 = vmul.f32 %v1265_v27, %v3745_v22  ;;  %v3900_v47 = vmul.f32 %v1265_v27, %v3743_v41  ;;  %v1172_v30 = vadd.f32 %v3821_v16, %v1155_v35  ;;  %v945_v45 = vmax.f32 %v929_v40, 0.0  ;;  %v3903_v63 = vpop.f32.mrb[13].mxu1  ;;  %v1393_v35 = vld [vmem:[%s4819_s4] sm:$0xff] }
 0x344   :  { %v3905_v61 = vpop.f32.mrb[29].mxu0  ;;  %v1091_v56 = vsel %vm1059_vm9, %v1075_v54, 0.0  ;;  %v961_v24 = vmul.f32 %v864_v55, %v3782_v58  ;;  %v1138_v39 = vmul.f32 %v864_v55, %v3787_v59  ;;  %v802_v1 = vmul.f32 %v3801_v5, %v3724_v32  ;;  %2974 = vmatprep.mubr.f32.mxu1 %v1393_v35 }
 0x345   :  { %4828 = vst [vmem:[#allocation8_spill] sm:$0xff] %v3897_v62  ;;  %v1107_v22 = vsel %vm1027_vm8, %v2528_v50, %v1091_v56  ;;  %vm1188_vm10 = vcmp.gt.f32.partialorder %v1172_v30, 0.01  ;;  %v2544_v41 = vadd.f32 -0.01, %v1172_v30  ;;  %v977_v20 = vmul.f32 %v945_v45, %v3787_v59  ;;  %v3919_v25 = vpop.f32.mrb[14].mxu1 }
 0x346   :  { %vm1220_vm11 = vcmp.lt.f32.partialorder %v1172_v30, -0.01  ;;  %v1236_v2 = vadd.f32 0.01, %v1172_v30  ;;  %v3913_v4 = vmul.f32 %v3765_v48, %v1107_v22  ;;  %v3916_v10 = vmul.f32 %v3767_v51, %v1107_v22  ;;  %v3921_v26 = vpop.f32.mrb[30].mxu0  ;;  %v3930_v43 = vpop.f32.mrb[15].mxu1 }
 0x347   :  { %v1122_v29 = vmul.f32 %v945_v45, %v3782_v58  ;;  %v899_v28 = vmul.f32 %v3801_v5, %v3729_v33  ;;  %v818_v37 = vmul.f32 %v3803_v7, %v3729_v33  ;;  %v883_v40 = vmul.f32 %v3803_v7, %v3724_v32  ;;  %v3932_v50 = vpop.f32.mrb[31].mxu0 }
 0x348   :  { %4829 = vst [vmem:[#allocation9_spill] sm:$0xff] %v3913_v4  ;;  %4830 = vst [vmem:[#allocation10_spill] sm:$0xff] %v3916_v10  ;;  %v1252_v27 = vsel %vm1220_vm11, %v1236_v2, 0.0  ;;  %v993_v54 = vsub.f32 %v961_v24, %v977_v20  ;;  %v801_v55 = vmul.f32 %v3724_v32, %v3809_v12  ;;  %v898_v45 = vmul.f32 %v3729_v33, %v3809_v12 }
 0x349   :  { %v1268_v56 = vsel %vm1188_vm10, %v2544_v41, %v1252_v27  ;;  %v1154_v22 = vadd.f32 %v1138_v39, %v1122_v29  ;;  %v834_v4 = vsub.f32 %v802_v1, %v818_v37  ;;  %v915_v8 = vadd.f32 %v899_v28, %v883_v40 }
 0x34a   :  { %v3943_v18 = vmul.f32 %v3767_v51, %v1268_v56  ;;  %v3946_v19 = vmul.f32 %v3765_v48, %v1268_v56  ;;  %v1010_v24 = vadd.f32 %v3816_v15, %v993_v54  ;;  %v817_v2 = vmul.f32 %v3729_v33, %v3811_v13 }
 0x34b   :  { %v1171_v20 = vadd.f32 %v3821_v16, %v1154_v22  ;;  %v851_v35 = vadd.f32 %v3750_v42, %v834_v4  ;;  %v932_v30 = vadd.f32 %v3755_v60, %v915_v8  ;;  %v882_v39 = vmul.f32 %v3724_v32, %v3811_v13 }
 0x34c   :  { %4831 = vst [vmem:[#allocation11_spill] sm:$0xff] %v3943_v18  ;;  %vm1026_vm12 = vcmp.gt.f32.partialorder %v1010_v24, 0.01  ;;  %v2527_v51 = vadd.f32 -0.01, %v1010_v24  ;;  %v833_v1 = vsub.f32 %v801_v55, %v817_v2  ;;  %v804_v54 = vmul.f32 %v3833_v34, %v3724_v32 }
 0x34d   :  { %vm1058_vm13 = vcmp.lt.f32.partialorder %v1010_v24, -0.01  ;;  %v1074_v48 = vadd.f32 0.01, %v1010_v24  ;;  %vm1187_vm14 = vcmp.gt.f32.partialorder %v1171_v20, 0.01  ;;  %v914_v29 = vadd.f32 %v898_v45, %v882_v39 }
 0x34e   :  { %v2543_v41 = vadd.f32 -0.01, %v1171_v20  ;;  %vm1219_vm15 = vcmp.lt.f32.partialorder %v1171_v20, -0.01  ;;  %v1235_v28 = vadd.f32 0.01, %v1171_v20  ;;  %v850_v4 = vadd.f32 %v3750_v42, %v833_v1 }
 0x34f   :  { %v867_v37 = vmax.f32 %v851_v35, 0.0  ;;  %v948_v40 = vmax.f32 %v932_v30, 0.0  ;;  %v1090_v27 = vsel %vm1058_vm13, %v1074_v48, 0.0  ;;  %v931_v8 = vadd.f32 %v3755_v60, %v914_v29 }
 0x350   :  { %v1106_v56 = vsel %vm1026_vm12, %v2527_v51, %v1090_v27  ;;  %v1251_v22 = vsel %vm1219_vm15, %v1235_v28, 0.0  ;;  %v866_v48 = vmax.f32 %v850_v4, 0.0  ;;  %v820_v28 = vmul.f32 %v3835_v36, %v3729_v33 }
 0x351   :  { %v964_v55 = vmul.f32 %v867_v37, %v3782_v58  ;;  %v980_v2 = vmul.f32 %v948_v40, %v3787_v59  ;;  %v1267_v45 = vsel %vm1187_vm14, %v2543_v41, %v1251_v22  ;;  %v3964_v20 = vmul.f32 %v1106_v56, %v3775_v57 }
 0x352   :  { %v3967_v35 = vmul.f32 %v1106_v56, %v3777_v38  ;;  %v1125_v30 = vmul.f32 %v948_v40, %v3782_v58  ;;  %v3971_v39 = vmul.f32 %v1267_v45, %v3777_v38  ;;  %v3974_v24 = vmul.f32 %v1267_v45, %v3775_v57 }
 0x353   :  { %4832 = vst [vmem:[#allocation12_spill] sm:$0xff] %v3964_v20  ;;  %v996_v51 = vsub.f32 %v964_v55, %v980_v2  ;;  %v1141_v1 = vmul.f32 %v867_v37, %v3787_v59  ;;  %v947_v29 = vmax.f32 %v931_v8, 0.0  ;;  %v901_v41 = vmul.f32 %v3833_v34, %v3729_v33 }
 0x354   :  { %4833 = vst [vmem:[#allocation13_spill] sm:$0xff] %v3971_v39  ;;  %v885_v38 = vmul.f32 %v3835_v36, %v3724_v32  ;;  %v803_v57 = vmul.f32 %v3724_v32, %v3839_v46  ;;  %v963_v56 = vmul.f32 %v866_v48, %v3782_v58  ;;  %v1140_v8 = vmul.f32 %v866_v48, %v3787_v59 }
 0x355   :  { %v1013_v27 = vadd.f32 %v3816_v15, %v996_v51  ;;  %v1157_v40 = vadd.f32 %v1141_v1, %v1125_v30  ;;  %v979_v37 = vmul.f32 %v947_v29, %v3787_v59  ;;  %v1124_v4 = vmul.f32 %v947_v29, %v3782_v58 }
 0x356   :  { %v836_v51 = vsub.f32 %v804_v54, %v820_v28  ;;  %v917_v18 = vadd.f32 %v901_v41, %v885_v38 }
 0x357   :  { %vm1029_vm0 = vcmp.gt.f32.partialorder %v1013_v27, 0.01  ;;  %v2530_v22 = vadd.f32 -0.01, %v1013_v27  ;;  %vm1061_vm1 = vcmp.lt.f32.partialorder %v1013_v27, -0.01  ;;  %v1174_v55 = vadd.f32 %v3821_v16, %v1157_v40 }
 0x358   :  { %v1077_v2 = vadd.f32 0.01, %v1013_v27  ;;  %v995_v45 = vsub.f32 %v963_v56, %v979_v37  ;;  %v1156_v30 = vadd.f32 %v1140_v8, %v1124_v4  ;;  %v853_v10 = vadd.f32 %v3750_v42, %v836_v51 }
 0x359   :  { %vm1190_vm2 = vcmp.gt.f32.partialorder %v1174_v55, 0.01  ;;  %v2546_v1 = vadd.f32 -0.01, %v1174_v55  ;;  %vm1222_vm3 = vcmp.lt.f32.partialorder %v1174_v55, -0.01  ;;  %v934_v40 = vadd.f32 %v3755_v60, %v917_v18 }
 0x35a   :  { %v1093_v20 = vsel %vm1061_vm1, %v1077_v2, 0.0  ;;  %v1238_v39 = vadd.f32 0.01, %v1174_v55  ;;  %v1012_v62 = vadd.f32 %v3816_v15, %v995_v45  ;;  %v1173_v29 = vadd.f32 %v3821_v16, %v1156_v30 }
 0x35b   :  { %v1109_v48 = vsel %vm1029_vm0, %v2530_v22, %v1093_v20  ;;  %v900_v56 = vmul.f32 %v3729_v33, %v3839_v46  ;;  %v869_v22 = vmax.f32 %v853_v10, 0.0  ;;  %v950_v45 = vmax.f32 %v934_v40, 0.0 }
 0x35c   :  { %v1254_v54 = vsel %vm1222_vm3, %v1238_v39, 0.0  ;;  %v3999_v28 = vmul.f32 %v3801_v5, %v1109_v48  ;;  %v4002_v41 = vmul.f32 %v3803_v7, %v1109_v48  ;;  %vm1028_vm4 = vcmp.gt.f32.partialorder %v1012_v62, 0.01 }
 0x35d   :  { %v1270_v38 = vsel %vm1190_vm2, %v2546_v1, %v1254_v54  ;;  %v2529_v37 = vadd.f32 -0.01, %v1012_v62  ;;  %vm1060_vm5 = vcmp.lt.f32.partialorder %v1012_v62, -0.01  ;;  %v1076_v20 = vadd.f32 0.01, %v1012_v62 }
 0x35e   :  { %4834 = vst [vmem:[#allocation14_spill] sm:$0xff] %v3999_v28  ;;  %4835 = vst [vmem:[#allocation15_spill] sm:$0xff] %v4002_v41  ;;  %v4006_v27 = vmul.f32 %v3803_v7, %v1270_v38  ;;  %v4009_v18 = vmul.f32 %v3801_v5, %v1270_v38  ;;  %vm1189_vm6 = vcmp.gt.f32.partialorder %v1173_v29, 0.01  ;;  %v2545_v39 = vadd.f32 -0.01, %v1173_v29 }
 0x35f   :  { %v1092_v4 = vsel %vm1060_vm5, %v1076_v20, 0.0  ;;  %vm1221_vm7 = vcmp.lt.f32.partialorder %v1173_v29, -0.01  ;;  %v1237_v8 = vadd.f32 0.01, %v1173_v29  ;;  %v819_v55 = vmul.f32 %v3729_v33, %v3841_v49 }
 0x360   :  { %4836 = vst [vmem:[#allocation16_spill] sm:$0xff] %v4006_v27  ;;  %v1108_v2 = vsel %vm1028_vm4, %v2529_v37, %v1092_v4  ;;  %v884_v62 = vmul.f32 %v3724_v32, %v3841_v49  ;;  %v966_v51 = vmul.f32 %v869_v22, %v3782_v58  ;;  %v982_v10 = vmul.f32 %v950_v45, %v3787_v59 }
 0x361   :  { %v1253_v30 = vsel %vm1221_vm7, %v1237_v8, 0.0  ;;  %v4016_v7 = vmul.f32 %v1108_v2, %v3809_v12  ;;  %v4019_v5 = vmul.f32 %v1108_v2, %v3811_v13  ;;  %v1127_v29 = vmul.f32 %v950_v45, %v3782_v58 }
 0x362   :  { %v1269_v1 = vsel %vm1189_vm6, %v2545_v39, %v1253_v30  ;;  %v1143_v48 = vmul.f32 %v869_v22, %v3787_v59  ;;  %v835_v38 = vsub.f32 %v803_v57, %v819_v55  ;;  %v916_v37 = vadd.f32 %v900_v56, %v884_v62 }
 0x363   :  { %4837 = vst [vmem:[#allocation17_spill] sm:$0xff] %v4016_v7  ;;  %v4026_v40 = vmul.f32 %v1269_v1, %v3811_v13  ;;  %v4029_v54 = vmul.f32 %v1269_v1, %v3809_v12  ;;  %v998_v20 = vsub.f32 %v966_v51, %v982_v10  ;;  %v806_v8 = vmul.f32 %v3849_v0, %v3724_v32 }
 0x364   :  { %v1159_v4 = vadd.f32 %v1143_v48, %v1127_v29  ;;  %v903_v39 = vmul.f32 %v3849_v0, %v3729_v33  ;;  %v852_v2 = vadd.f32 %v3750_v42, %v835_v38  ;;  %v933_v22 = vadd.f32 %v3755_v60, %v916_v37 }
 0x365   :  { %4838 = vst [vmem:[#allocation18_spill] sm:$0xff] %v4026_v40  ;;  %v822_v13 = vmul.f32 %v3852_v3, %v3729_v33  ;;  %v887_v12 = vmul.f32 %v3852_v3, %v3724_v32  ;;  %v1015_v57 = vadd.f32 %v3816_v15, %v998_v20  ;;  %v805_v45 = vmul.f32 %v3724_v32, %v3861_v6 }
 0x366   :  { %v1176_v56 = vadd.f32 %v3821_v16, %v1159_v4  ;;  %v902_v55 = vmul.f32 %v3729_v33, %v3861_v6  ;;  %v868_v62 = vmax.f32 %v852_v2, 0.0  ;;  %v949_v30 = vmax.f32 %v933_v22, 0.0 }
 0x367   :  { %v838_v51 = vsub.f32 %v806_v8, %v822_v13  ;;  %v919_v1 = vadd.f32 %v903_v39, %v887_v12  ;;  %vm1031_vm8 = vcmp.gt.f32.partialorder %v1015_v57, 0.01  ;;  %v2532_v10 = vadd.f32 -0.01, %v1015_v57 }
 0x368   :  { %vm1063_vm9 = vcmp.lt.f32.partialorder %v1015_v57, -0.01  ;;  %v821_v29 = vmul.f32 %v3729_v33, %v3863_v17  ;;  %v1079_v48 = vadd.f32 0.01, %v1015_v57  ;;  %vm1192_vm10 = vcmp.gt.f32.partialorder %v1176_v56, 0.01 }
 0x369   :  { %v2548_v38 = vadd.f32 -0.01, %v1176_v56  ;;  %v965_v37 = vmul.f32 %v868_v62, %v3782_v58  ;;  %vm1224_vm11 = vcmp.lt.f32.partialorder %v1176_v56, -0.01  ;;  %v1240_v20 = vadd.f32 0.01, %v1176_v56 }
 0x36a   :  { %v981_v4 = vmul.f32 %v949_v30, %v3787_v59  ;;  %v1126_v2 = vmul.f32 %v949_v30, %v3782_v58  ;;  %v1095_v22 = vsel %vm1063_vm9, %v1079_v48, 0.0  ;;  %v1142_v8 = vmul.f32 %v868_v62, %v3787_v59 }
 0x36b   :  { %v855_v39 = vadd.f32 %v3750_v42, %v838_v51  ;;  %v936_v13 = vadd.f32 %v3755_v60, %v919_v1  ;;  %v1111_v12 = vsel %vm1031_vm8, %v2532_v10, %v1095_v22  ;;  %v1256_v28 = vsel %vm1224_vm11, %v1240_v20, 0.0 }
 0x36c   :  { %v997_v27 = vsub.f32 %v965_v37, %v981_v4  ;;  %v837_v7 = vsub.f32 %v805_v45, %v821_v29  ;;  %v1272_v40 = vsel %vm1192_vm10, %v2548_v38, %v1256_v28  ;;  %v4057_v41 = vmul.f32 %v3833_v34, %v1111_v12 }
 0x36d   :  { %v4060_v56 = vmul.f32 %v3835_v36, %v1111_v12  ;;  %v1158_v30 = vadd.f32 %v1142_v8, %v1126_v2  ;;  %v4063_v48 = vmul.f32 %v3835_v36, %v1272_v40  ;;  %v4066_v62 = vmul.f32 %v3833_v34, %v1272_v40 }
 0x36e   :  { %4839 = vst [vmem:[#allocation19_spill] sm:$0xff] %v4057_v41  ;;  %v1014_v57 = vadd.f32 %v3816_v15, %v997_v27  ;;  %v871_v51 = vmax.f32 %v855_v39, 0.0  ;;  %v952_v45 = vmax.f32 %v936_v13, 0.0  ;;  %v854_v28 = vadd.f32 %v3750_v42, %v837_v7 }
 0x36f   :  { %4840 = vst [vmem:[#allocation20_spill] sm:$0xff] %v4063_v48  ;;  %v1175_v1 = vadd.f32 %v3821_v16, %v1158_v30  ;;  %v886_v10 = vmul.f32 %v3724_v32, %v3863_v17  ;;  %v808_v12 = vmul.f32 %v3872_v21, %v3724_v32 }
 0x370   :  { %vm1030_vm12 = vcmp.gt.f32.partialorder %v1014_v57, 0.01  ;;  %v2531_v29 = vadd.f32 -0.01, %v1014_v57  ;;  %vm1062_vm13 = vcmp.lt.f32.partialorder %v1014_v57, -0.01  ;;  %v968_v36 = vmul.f32 %v871_v51, %v3782_v58 }
 0x371   :  { %v1078_v38 = vadd.f32 0.01, %v1014_v57  ;;  %vm1191_vm14 = vcmp.gt.f32.partialorder %v1175_v1, 0.01  ;;  %v2547_v34 = vadd.f32 -0.01, %v1175_v1  ;;  %v984_v40 = vmul.f32 %v952_v45, %v3787_v59 }
 0x372   :  { %vm1223_vm15 = vcmp.lt.f32.partialorder %v1175_v1, -0.01  ;;  %v1239_v27 = vadd.f32 0.01, %v1175_v1  ;;  %v1129_v37 = vmul.f32 %v952_v45, %v3782_v58  ;;  %v1145_v20 = vmul.f32 %v871_v51, %v3787_v59 }
 0x373   :  { %v1094_v7 = vsel %vm1062_vm13, %v1078_v38, 0.0  ;;  %v1000_v4 = vsub.f32 %v968_v36, %v984_v40  ;;  %v870_v2 = vmax.f32 %v854_v28, 0.0  ;;  %v918_v22 = vadd.f32 %v902_v55, %v886_v10 }
 0x374   :  { %v1110_v8 = vsel %vm1030_vm12, %v2531_v29, %v1094_v7  ;;  %v1255_v39 = vsel %vm1223_vm15, %v1239_v27, 0.0  ;;  %v1161_v13 = vadd.f32 %v1145_v20, %v1129_v37  ;;  %v824_v37 = vmul.f32 %v3874_v23, %v3729_v33 }
 0x375   :  { %v1271_v30 = vsel %vm1191_vm14, %v2547_v34, %v1255_v39  ;;  %v4081_v41 = vmul.f32 %v1110_v8, %v3839_v46  ;;  %v4084_v1 = vmul.f32 %v1110_v8, %v3841_v49  ;;  %v1017_v51 = vadd.f32 %v3816_v15, %v1000_v4 }
 0x376   :  { %v4088_v45 = vmul.f32 %v1271_v30, %v3841_v49  ;;  %v4091_v55 = vmul.f32 %v1271_v30, %v3839_v46  ;;  %v1178_v57 = vadd.f32 %v3821_v16, %v1161_v13  ;;  %v935_v28 = vadd.f32 %v3755_v60, %v918_v22 }
 0x377   :  { %4841 = vst [vmem:[#allocation21_spill] sm:$0xff] %v4081_v41  ;;  %vm1033_vm0 = vcmp.gt.f32.partialorder %v1017_v51, 0.01  ;;  %v2534_v10 = vadd.f32 -0.01, %v1017_v51  ;;  %v967_v29 = vmul.f32 %v870_v2, %v3782_v58  ;;  %v1144_v34 = vmul.f32 %v870_v2, %v3787_v59 }
 0x378   :  { %vm1065_vm1 = vcmp.lt.f32.partialorder %v1017_v51, -0.01  ;;  %v1081_v36 = vadd.f32 0.01, %v1017_v51  ;;  %vm1194_vm2 = vcmp.gt.f32.partialorder %v1178_v57, 0.01  ;;  %v905_v46 = vmul.f32 %v3872_v21, %v3729_v33 }
 0x379   :  { %v2550_v38 = vadd.f32 -0.01, %v1178_v57  ;;  %vm1226_vm3 = vcmp.lt.f32.partialorder %v1178_v57, -0.01  ;;  %v1242_v49 = vadd.f32 0.01, %v1178_v57  ;;  %v889_v20 = vmul.f32 %v3874_v23, %v3724_v32 }
 0x37a   :  { %v951_v40 = vmax.f32 %v935_v28, 0.0  ;;  %v1097_v27 = vsel %vm1065_vm1, %v1081_v36, 0.0  ;;  %v807_v7 = vmul.f32 %v3724_v32, %v3879_v14  ;;  %v840_v57 = vsub.f32 %v808_v12, %v824_v37 }
 0x37b   :  { %v1113_v4 = vsel %vm1033_vm0, %v2534_v10, %v1097_v27  ;;  %v1258_v22 = vsel %vm1226_vm3, %v1242_v49, 0.0  ;;  %v921_v27 = vadd.f32 %v905_v46, %v889_v20  ;;  %v907_v37 = vmul.f32 %v3891_v52, %v3729_v33 }
 0x37c   :  { %v983_v2 = vmul.f32 %v951_v40, %v3787_v59  ;;  %v1128_v8 = vmul.f32 %v951_v40, %v3782_v58  ;;  %v1274_v39 = vsel %vm1194_vm2, %v2550_v38, %v1258_v22  ;;  %v4109_v13 = vmul.f32 %v3849_v0, %v1113_v4 }
 0x37d   :  { %v4112_v30 = vmul.f32 %v3852_v3, %v1113_v4  ;;  %v4115_v28 = vmul.f32 %v3852_v3, %v1274_v39  ;;  %v4118_v36 = vmul.f32 %v3849_v0, %v1274_v39  ;;  %v857_v49 = vadd.f32 %v3750_v42, %v840_v57 }
 0x37e   :  { %4842 = vst [vmem:[#allocation22_spill] sm:$0xff] %v4109_v13  ;;  %v999_v51 = vsub.f32 %v967_v29, %v983_v2  ;;  %v1160_v10 = vadd.f32 %v1144_v34, %v1128_v8  ;;  %v904_v38 = vmul.f32 %v3729_v33, %v3879_v14  ;;  %v823_v40 = vmul.f32 %v3729_v33, %v3881_v53 }
 0x37f   :  { %4843 = vst [vmem:[#allocation23_spill] sm:$0xff] %v4115_v28  ;;  %v888_v3 = vmul.f32 %v3724_v32, %v3881_v53  ;;  %v810_v0 = vmul.f32 %v3891_v52, %v3724_v32  ;;  %v873_v29 = vmax.f32 %v857_v49, 0.0  ;;  %v938_v34 = vadd.f32 %v3755_v60, %v921_v27 }
 0x380   :  { %v1016_v4 = vadd.f32 %v3816_v15, %v999_v51  ;;  %v1177_v12 = vadd.f32 %v3821_v16, %v1160_v10  ;;  %v839_v46 = vsub.f32 %v807_v7, %v823_v40  ;;  %v826_v40 = vmul.f32 %v3894_v44, %v3729_v33 }
 0x381   :  { %v920_v22 = vadd.f32 %v904_v38, %v888_v3  ;;  %v970_v39 = vmul.f32 %v873_v29, %v3782_v58  ;;  %v954_v51 = vmax.f32 %v938_v34, 0.0  ;;  %v1147_v10 = vmul.f32 %v873_v29, %v3787_v59 }
 0x382   :  { %vm1032_vm4 = vcmp.gt.f32.partialorder %v1016_v4, 0.01  ;;  %v2533_v20 = vadd.f32 -0.01, %v1016_v4  ;;  %vm1064_vm5 = vcmp.lt.f32.partialorder %v1016_v4, -0.01  ;;  %v856_v7 = vadd.f32 %v3750_v42, %v839_v46 }
 0x383   :  { %v1080_v2 = vadd.f32 0.01, %v1016_v4  ;;  %vm1193_vm6 = vcmp.gt.f32.partialorder %v1177_v12, 0.01  ;;  %v2549_v8 = vadd.f32 -0.01, %v1177_v12  ;;  %v937_v27 = vadd.f32 %v3755_v60, %v920_v22 }
 0x384   :  { %vm1225_vm7 = vcmp.lt.f32.partialorder %v1177_v12, -0.01  ;;  %v1241_v57 = vadd.f32 0.01, %v1177_v12  ;;  %v986_v13 = vmul.f32 %v954_v51, %v3787_v59  ;;  %v1131_v28 = vmul.f32 %v954_v51, %v3782_v58 }
 0x385   :  { %v1096_v49 = vsel %vm1064_vm5, %v1080_v2, 0.0  ;;  %v872_v34 = vmax.f32 %v856_v7, 0.0  ;;  %v953_v2 = vmax.f32 %v937_v27, 0.0  ;;  %v842_v51 = vsub.f32 %v810_v0, %v826_v40 }
 0x386   :  { %v1112_v38 = vsel %vm1032_vm4, %v2533_v20, %v1096_v49  ;;  %v1257_v3 = vsel %vm1225_vm7, %v1241_v57, 0.0  ;;  %v1002_v4 = vsub.f32 %v970_v39, %v986_v13  ;;  %v1163_v20 = vadd.f32 %v1147_v10, %v1131_v28 }
 0x387   :  { %v1273_v48 = vsel %vm1193_vm6, %v2549_v8, %v1257_v3  ;;  %v4144_v12 = vmul.f32 %v1112_v38, %v3861_v6  ;;  %v4147_v29 = vmul.f32 %v1112_v38, %v3863_v17  ;;  %v969_v57 = vmul.f32 %v872_v34, %v3782_v58 }
 0x388   :  { %v4150_v46 = vmul.f32 %v1273_v48, %v3863_v17  ;;  %v4153_v22 = vmul.f32 %v1273_v48, %v3861_v6  ;;  %v1146_v8 = vmul.f32 %v872_v34, %v3787_v59  ;;  %v1019_v49 = vadd.f32 %v3816_v15, %v1002_v4 }
 0x389   :  { %4844 = vst [vmem:[#allocation24_spill] sm:$0xff] %v4144_v12  ;;  %v1180_v38 = vadd.f32 %v3821_v16, %v1163_v20  ;;  %v891_v7 = vmul.f32 %v3894_v44, %v3724_v32  ;;  %v809_v17 = vmul.f32 %v3724_v32, %v3903_v63  ;;  %v985_v6 = vmul.f32 %v953_v2, %v3787_v59 }
 0x38a   :  { %4845 = vst [vmem:[#allocation25_spill] sm:$0xff] %v4150_v46  ;;  %v1130_v48 = vmul.f32 %v953_v2, %v3782_v58  ;;  %v859_v13 = vadd.f32 %v3750_v42, %v842_v51  ;;  %v906_v28 = vmul.f32 %v3729_v33, %v3903_v63  ;;  %vm1035_vm8 = vcmp.gt.f32.partialorder %v1019_v49, 0.01 }
 0x38b   :  { %v2536_v0 = vadd.f32 -0.01, %v1019_v49  ;;  %vm1067_vm9 = vcmp.lt.f32.partialorder %v1019_v49, -0.01  ;;  %v923_v39 = vadd.f32 %v907_v37, %v891_v7  ;;  %v1083_v10 = vadd.f32 0.01, %v1019_v49 }
 0x38c   :  { %vm1196_vm10 = vcmp.gt.f32.partialorder %v1180_v38, 0.01  ;;  %v2552_v27 = vadd.f32 -0.01, %v1180_v38  ;;  %v1001_v40 = vsub.f32 %v969_v57, %v985_v6  ;;  %vm1228_vm11 = vcmp.lt.f32.partialorder %v1180_v38, -0.01 }
 0x38d   :  { %v1244_v3 = vadd.f32 0.01, %v1180_v38  ;;  %v1162_v34 = vadd.f32 %v1146_v8, %v1130_v48  ;;  %v875_v4 = vmax.f32 %v859_v13, 0.0  ;;  %v1099_v20 = vsel %vm1067_vm9, %v1083_v10, 0.0 }
 0x38e   :  { %v1018_v2 = vadd.f32 %v3816_v15, %v1001_v40  ;;  %v940_v51 = vadd.f32 %v3755_v60, %v923_v39  ;;  %v825_v12 = vmul.f32 %v3729_v33, %v3905_v61  ;;  %v1115_v46 = vsel %vm1035_vm8, %v2536_v0, %v1099_v20 }
 0x38f   :  { %v1260_v41 = vsel %vm1228_vm11, %v1244_v3, 0.0  ;;  %v1179_v37 = vadd.f32 %v3821_v16, %v1162_v34  ;;  %v972_v7 = vmul.f32 %v875_v4, %v3782_v58  ;;  %v4176_v38 = vmul.f32 %v3872_v21, %v1115_v46 }
 0x390   :  { %v1276_v57 = vsel %vm1196_vm10, %v2552_v27, %v1260_v41  ;;  %v4179_v8 = vmul.f32 %v3874_v23, %v1115_v46  ;;  %vm1034_vm12 = vcmp.gt.f32.partialorder %v1018_v2, 0.01  ;;  %v2535_v49 = vadd.f32 -0.01, %v1018_v2 }
 0x391   :  { %v4182_v6 = vmul.f32 %v3874_v23, %v1276_v57  ;;  %v4185_v48 = vmul.f32 %v3872_v21, %v1276_v57  ;;  %vm1066_vm13 = vcmp.lt.f32.partialorder %v1018_v2, -0.01  ;;  %v1082_v13 = vadd.f32 0.01, %v1018_v2 }
 0x392   :  { %vm1195_vm14 = vcmp.gt.f32.partialorder %v1179_v37, 0.01  ;;  %v2551_v0 = vadd.f32 -0.01, %v1179_v37  ;;  %v1149_v41 = vmul.f32 %v875_v4, %v3787_v59  ;;  %vm1227_vm15 = vcmp.lt.f32.partialorder %v1179_v37, -0.01 }
 0x393   :  { %v1243_v39 = vadd.f32 0.01, %v1179_v37  ;;  %v956_v10 = vmax.f32 %v940_v51, 0.0  ;;  %v841_v27 = vsub.f32 %v809_v17, %v825_v12  ;;  %v1098_v46 = vsel %vm1066_vm13, %v1082_v13, 0.0 }
 0x394   :  { %v890_v40 = vmul.f32 %v3724_v32, %v3905_v61  ;;  %v1361_v23 = vadd.f32 %v3887_v31, %v3900_v47  ;;  %v1362_v21 = vadd.f32 %v3859_v9, %v3869_v11  ;;  %v1114_v3 = vsel %vm1034_vm12, %v2535_v49, %v1098_v46 }
 0x395   :  { %v1259_v34 = vsel %vm1227_vm15, %v1243_v39, 0.0  ;;  %v988_v20 = vmul.f32 %v956_v10, %v3787_v59  ;;  %v1133_v4 = vmul.f32 %v956_v10, %v3782_v58  ;;  %v4198_v12 = vmul.f32 %v1114_v3, %v3879_v14 }
 0x396   :  { %v1275_v37 = vsel %vm1195_vm14, %v2551_v0, %v1259_v34  ;;  %v4201_v17 = vmul.f32 %v1114_v3, %v3881_v53  ;;  %v858_v51 = vadd.f32 %v3750_v42, %v841_v27  ;;  %v922_v57 = vadd.f32 %v906_v28, %v890_v40 }
 0x397   :  { %v4205_v31 = vmul.f32 %v1275_v37, %v3881_v53  ;;  %v4208_v9 = vmul.f32 %v1275_v37, %v3879_v14  ;;  %v1004_v11 = vsub.f32 %v972_v7, %v988_v20  ;;  %v1165_v47 = vadd.f32 %v1149_v41, %v1133_v4 }
 0x398   :  { %v874_v2 = vmax.f32 %v858_v51, 0.0  ;;  %v3118_v49 = vpack.c.bf16 %v1362_v21, %v1361_v23  ;;  %v812_v13 = vmul.f32 %v3919_v25, %v3724_v32  ;;  %v909_v10 = vmul.f32 %v3919_v25, %v3729_v33 }
 0x399   :  { %v1021_v0 = vadd.f32 %v3816_v15, %v1004_v11  ;;  %v1182_v39 = vadd.f32 %v3821_v16, %v1165_v47  ;;  %v828_v53 = vmul.f32 %v3921_v26, %v3729_v33  ;;  %v939_v14 = vadd.f32 %v3755_v60, %v922_v57 }
 0x39a   :  { %v971_v7 = vmul.f32 %v874_v2, %v3782_v58  ;;  %v1148_v28 = vmul.f32 %v874_v2, %v3787_v59  ;;  %3119 = vmatprep.subr.bf16.mxu1 %v3118_v49  ;;  %v893_v41 = vmul.f32 %v3921_v26, %v3724_v32  ;;  %v811_v51 = vmul.f32 %v3724_v32, %v3930_v43 }
 0x39b   :  { %vm1037_vm0 = vcmp.gt.f32.partialorder %v1021_v0, 0.01  ;;  %v2538_v27 = vadd.f32 -0.01, %v1021_v0  ;;  %vm1069_vm1 = vcmp.lt.f32.partialorder %v1021_v0, -0.01  ;;  %3121 = vmatpush3.bf16.msra.mxu1 %v3118_v49  ;;  %v844_v46 = vsub.f32 %v812_v13, %v828_v53 }
 0x39c   :  { %v1085_v40 = vadd.f32 0.01, %v1021_v0  ;;  %vm1198_vm2 = vcmp.gt.f32.partialorder %v1182_v39, 0.01  ;;  %v2554_v23 = vadd.f32 -0.01, %v1182_v39  ;;  %v925_v21 = vadd.f32 %v909_v10, %v893_v41 }
 0x39d   :  { %vm1230_vm3 = vcmp.lt.f32.partialorder %v1182_v39, -0.01  ;;  %v1246_v3 = vadd.f32 0.01, %v1182_v39  ;;  %v955_v34 = vmax.f32 %v939_v14, 0.0  ;;  %v861_v20 = vadd.f32 %v3750_v42, %v844_v46 }
 0x39e   :  { %v1101_v4 = vsel %vm1069_vm1, %v1085_v40, 0.0  ;;  %v942_v37 = vadd.f32 %v3755_v60, %v925_v21  ;;  %v908_v11 = vmul.f32 %v3729_v33, %v3930_v43 }
 0x39f   :  { %v1117_v47 = vsel %vm1037_vm0, %v2538_v27, %v1101_v4  ;;  %v1262_v2 = vsel %vm1230_vm3, %v1246_v3, 0.0  ;;  %v987_v57 = vmul.f32 %v955_v34, %v3787_v59  ;;  %v1132_v49 = vmul.f32 %v955_v34, %v3782_v58  ;;  %v3338_v27 = vld [vmem:[%s4823_s8 + $0x4] ss:$0 sm:$0xff]  ;;  %v4846_v34 = vld [vmem:[#allocation10_spill] sm:$0xff] }
 0x3a0   :  { %v1278_v13 = vsel %vm1198_vm2, %v2554_v23, %v1262_v2  ;;  %v4233_v39 = vmul.f32 %v3891_v52, %v1117_v47  ;;  %v4236_v42 = vmul.f32 %v3894_v44, %v1117_v47  ;;  %v877_v60 = vmax.f32 %v861_v20, 0.0 }
 0x3a1   :  { %v4239_v32 = vmul.f32 %v3894_v44, %v1278_v13  ;;  %v4242_v33 = vmul.f32 %v3891_v52, %v1278_v13  ;;  %v1003_v0 = vsub.f32 %v971_v7, %v987_v57  ;;  %v1164_v10 = vadd.f32 %v1148_v28, %v1132_v49  ;;  %v3339_v52 = vld [vmem:[%s4823_s8 + $0x3] ss:$0 sm:$0xff] }
 0x3a2   :  { %v958_v53 = vmax.f32 %v942_v37, 0.0  ;;  %v974_v14 = vmul.f32 %v877_v60, %v3782_v58  ;;  %v1151_v41 = vmul.f32 %v877_v60, %v3787_v59  ;;  %v827_v46 = vmul.f32 %v3338_v27, %v3932_v50 }
 0x3a3   :  { %v1020_v40 = vadd.f32 %v3816_v15, %v1003_v0  ;;  %v1181_v44 = vadd.f32 %v3821_v16, %v1164_v10  ;;  %v892_v7 = vmul.f32 %v3339_v52, %v3932_v50  ;;  %v1363_v28 = vadd.f32 %v3967_v35, %v3974_v24 }
 0x3a4   :  { %v990_v23 = vmul.f32 %v958_v53, %v3787_v59  ;;  %v1135_v21 = vmul.f32 %v958_v53, %v3782_v58  ;;  %v843_v3 = vsub.f32 %v811_v51, %v827_v46  ;;  %v1364_v20 = vadd.f32 %v4846_v34, %v3946_v19  ;;  %v3340_v59 = vld [vmem:[%s4823_s8 + $0x7] ss:$0 sm:$0xff]  ;;  %v3341_v19 = vld [vmem:[%s4823_s8 + $0x10] ss:$0 sm:$0xff] }
 0x3a5   :  { %vm1036_vm4 = vcmp.gt.f32.partialorder %v1020_v40, 0.01  ;;  %v2537_v4 = vadd.f32 -0.01, %v1020_v40  ;;  %vm1068_vm5 = vcmp.lt.f32.partialorder %v1020_v40, -0.01  ;;  %v924_v37 = vadd.f32 %v908_v11, %v892_v7 }
 0x3a6   :  { %v1084_v47 = vadd.f32 0.01, %v1020_v40  ;;  %vm1197_vm6 = vcmp.gt.f32.partialorder %v1181_v44, 0.01  ;;  %v2553_v2 = vadd.f32 -0.01, %v1181_v44  ;;  %v1006_v57 = vsub.f32 %v974_v14, %v990_v23 }
 0x3a7   :  { %vm1229_vm7 = vcmp.lt.f32.partialorder %v1181_v44, -0.01  ;;  %v1245_v49 = vadd.f32 0.01, %v1181_v44  ;;  %v1167_v13 = vadd.f32 %v1151_v41, %v1135_v21  ;;  %v860_v58 = vadd.f32 %v3340_v59, %v843_v3  ;;  %v3342_v44 = vld [vmem:[%s4823_s8 + $0x5] ss:$0 sm:$0xff] }
 0x3a8   :  { %v1100_v35 = vsel %vm1068_vm5, %v1084_v47, 0.0  ;;  %v1023_v24 = vadd.f32 %v3816_v15, %v1006_v57  ;;  %v941_v51 = vadd.f32 %v3341_v19, %v924_v37  ;;  %v3122_v11 = vpack.c.bf16 %v1364_v20, %v1363_v28  ;;  %v4847_v34 = vld [vmem:[#allocation15_spill] sm:$0xff] }
 0x3a9   :  { %v1116_v60 = vsel %vm1036_vm4, %v2537_v4, %v1100_v35  ;;  %v1261_v0 = vsel %vm1229_vm7, %v1245_v49, 0.0  ;;  %v1184_v10 = vadd.f32 %v3821_v16, %v1167_v13  ;;  %v876_v53 = vmax.f32 %v860_v58, 0.0 }
 0x3aa   :  { %v1277_v14 = vsel %vm1197_vm6, %v2553_v2, %v1261_v0  ;;  %v4273_v41 = vmul.f32 %v1116_v60, %v3903_v63  ;;  %v1357_v27 = vmul.f32 %v1116_v60, %v3905_v61  ;;  %vm1039_vm8 = vcmp.gt.f32.partialorder %v1023_v24, 0.01  ;;  %3123 = vmatprep.subr.bf16.mxu1 %v3122_v11 }
 0x3ab   :  { %v4277_v15 = vmul.f32 %v1277_v14, %v3905_v61  ;;  %v1341_v46 = vmul.f32 %v1277_v14, %v3903_v63  ;;  %v2540_v40 = vadd.f32 -0.01, %v1023_v24  ;;  %vm1071_vm9 = vcmp.lt.f32.partialorder %v1023_v24, -0.01  ;;  %3125 = vmatpush3.bf16.msra.mxu1 %v3122_v11  ;;  %v3343_v61 = vld [vmem:[%s4823_s8 + $0x6] ss:$0 sm:$0xff] }
 0x3ac   :  { %v1087_v52 = vadd.f32 0.01, %v1023_v24  ;;  %vm1200_vm10 = vcmp.gt.f32.partialorder %v1184_v10, 0.01  ;;  %v2556_v16 = vadd.f32 -0.01, %v1184_v10  ;;  %v973_v7 = vmul.f32 %v3342_v44, %v876_v53 }
 0x3ad   :  { %vm1232_vm11 = vcmp.lt.f32.partialorder %v1184_v10, -0.01  ;;  %v1248_v28 = vadd.f32 0.01, %v1184_v10  ;;  %v957_v23 = vmax.f32 %v941_v51, 0.0  ;;  %v1150_v21 = vmul.f32 %v3343_v61, %v876_v53 }
 0x3ae   :  { %v1103_v63 = vsel %vm1071_vm9, %v1087_v52, 0.0  ;;  %v1365_v3 = vadd.f32 %v4019_v5, %v4029_v54  ;;  %v1366_v20 = vadd.f32 %v4847_v34, %v4009_v18  ;;  %v1367_v4 = vadd.f32 %v4084_v1, %v4091_v55  ;;  %v3345_v51 = vld [vmem:[%s4823_s8 + $0x12] ss:$0 sm:$0xff]  ;;  %v4853_v52 = vld [vmem:[#allocation12_spill] sm:$0xff] }
 0x3af   :  { %v1119_v37 = vsel %vm1039_vm8, %v2540_v40, %v1103_v63  ;;  %v1264_v47 = vsel %vm1232_vm11, %v1248_v28, 0.0  ;;  %v989_v2 = vmul.f32 %v3343_v61, %v957_v23  ;;  %v1134_v57 = vmul.f32 %v3342_v44, %v957_v23  ;;  %v4854_v44 = vld [vmem:[#allocation11_spill] sm:$0xff]  ;;  %v4856_v23 = vld [vmem:[#allocation18_spill] sm:$0xff]  ;;  %v4857_v61 = vld [vmem:[#allocation17_spill] sm:$0xff] }
 0x3b0   :  { %v1280_v49 = vsel %vm1200_vm10, %v2556_v16, %v1264_v47  ;;  %v4295_v13 = vmul.f32 %v3919_v25, %v1119_v37  ;;  %v1360_v59 = vmul.f32 %v3921_v26, %v1119_v37  ;;  %v3126_v58 = vpack.c.bf16 %v1366_v20, %v1365_v3  ;;  %v4858_v20 = vld [vmem:[#allocation16_spill] sm:$0xff] }
 0x3b1   :  { %v4299_v5 = vmul.f32 %v3921_v26, %v1280_v49  ;;  %v1344_v18 = vmul.f32 %v3919_v25, %v1280_v49  ;;  %v1005_v54 = vsub.f32 %v973_v7, %v989_v2  ;;  %v1166_v1 = vadd.f32 %v1150_v21, %v1134_v57  ;;  %v3344_v26 = vld [vmem:[%s4823_s8 + $0x11] ss:$0 sm:$0xff]  ;;  %v4855_v7 = vld [vmem:[#allocation9_spill] sm:$0xff] }
 0x3b2   :  { %3127 = vmatprep.subr.bf16.mxu1 %v3126_v58  ;;  %v1368_v55 = vadd.f32 %v4060_v56, %v4066_v62  ;;  %v1369_v35 = vadd.f32 %v4147_v29, %v4153_v22  ;;  %v1370_v24 = vadd.f32 %v4112_v30, %v4118_v36  ;;  %v1371_v19 = vadd.f32 %v4201_v17, %v4208_v9 }
 0x3b3   :  { %v1022_v25 = vadd.f32 %v3344_v26, %v1005_v54  ;;  %v1183_v11 = vadd.f32 %v3345_v51, %v1166_v1  ;;  %3129 = vmatpush3.bf16.msra.mxu1 %v3126_v58  ;;  %v1372_v56 = vadd.f32 %v4179_v8, %v4185_v48  ;;  %v1373_v62 = vadd.f32 %v1357_v27, %v1341_v46  ;;  %v4848_v8 = vld [vmem:[#allocation8_spill] sm:$0xff]  ;;  %v4849_v48 = vld [vmem:[#allocation7_spill] sm:$0xff]  ;;  %v4850_v27 = vld [vmem:[#allocation6_spill] sm:$0xff] }
 0x3b4   :  { %v3130_v29 = vpack.c.bf16 %v1368_v55, %v1367_v4  ;;  %v3134_v30 = vpack.c.bf16 %v1370_v24, %v1369_v35  ;;  %v1374_v36 = vadd.f32 %v4236_v42, %v4242_v33  ;;  %v1376_v22 = vadd.f32 %v1360_v59, %v1344_v18  ;;  %v4851_v46 = vld [vmem:[#allocation5_spill] sm:$0xff]  ;;  %v4859_v4 = vld [vmem:[#allocation14_spill] sm:$0xff]  ;;  %v4861_v55 = vld [vmem:[#allocation20_spill] sm:$0xff] }
 0x3b5   :  { %vm1038_vm12 = vcmp.gt.f32.partialorder %v1022_v25, 0.01  ;;  %v2539_v17 = vadd.f32 -0.01, %v1022_v25  ;;  %vm1070_vm13 = vcmp.lt.f32.partialorder %v1022_v25, -0.01  ;;  %v3138_v9 = vpack.c.bf16 %v1372_v56, %v1371_v19 }
 0x3b6   :  { %v1086_v60 = vadd.f32 0.01, %v1022_v25  ;;  %vm1199_vm14 = vcmp.gt.f32.partialorder %v1183_v11, 0.01  ;;  %v2555_v0 = vadd.f32 -0.01, %v1183_v11  ;;  %3131 = vmatprep.subr.bf16.mxu1 %v3130_v29  ;;  %v3142_v10 = vpack.c.bf16 %v1374_v36, %v1373_v62 }
 0x3b7   :  { %vm1231_vm15 = vcmp.lt.f32.partialorder %v1183_v11, -0.01  ;;  %v1247_v53 = vadd.f32 0.01, %v1183_v11  ;;  %3133 = vmatpush3.bf16.msra.mxu1 %v3130_v29  ;;  %v1313_v14 = vsub.f32 %v4849_v48, %v4848_v8  ;;  %v1314_v40 = vsub.f32 %v4851_v46, %v4850_v27  ;;  %v4852_v33 = vld [vmem:[#allocation13_spill] sm:$0xff]  ;;  %v4862_v35 = vld [vmem:[#allocation19_spill] sm:$0xff] }
 0x3b8   :  { %v1102_v42 = vsel %vm1070_vm13, %v1086_v60, 0.0  ;;  %3135 = vmatprep.subr.bf16.mxu1 %v3134_v30  ;;  %v1315_v16 = vsub.f32 %v4853_v52, %v4852_v33  ;;  %v1316_v28 = vsub.f32 %v4855_v7, %v4854_v44  ;;  %v1317_v21 = vsub.f32 %v4857_v61, %v4856_v23  ;;  %v4860_v54 = vld [vmem:[#allocation21_spill] sm:$0xff]  ;;  %v4864_v26 = vld [vmem:[#allocation24_spill] sm:$0xff]  ;;  %v4865_v51 = vld [vmem:[#allocation23_spill] sm:$0xff] }
 0x3b9   :  { %v1118_v63 = vsel %vm1038_vm12, %v2539_v17, %v1102_v42  ;;  %v1263_v3 = vsel %vm1231_vm15, %v1247_v53, 0.0  ;;  %v3150_v34 = vpack.c.bf16 %v1314_v40, %v1313_v14  ;;  %v1318_v37 = vsub.f32 %v4859_v4, %v4858_v20  ;;  %v4863_v19 = vld [vmem:[#allocation25_spill] sm:$0xff]  ;;  %v4866_v11 = vld [vmem:[#allocation22_spill] sm:$0xff]  ;;  %v1407_v14 = vld [vmem:[%s4819_s4 + $0x70] sm:$0xff] }
 0x3ba   :  { %v1279_v47 = vsel %vm1199_vm14, %v2555_v0, %v1263_v3  ;;  %v1295_v2 = vmul.f32 %v1118_v63, %v3930_v43  ;;  %v1359_v57 = vmul.f32 %v1118_v63, %v3932_v50  ;;  %v3154_v49 = vpack.c.bf16 %v1316_v28, %v1315_v16  ;;  %v1405_v8 = vld [vmem:[%s4819_s4 + $0x60] sm:$0xff]  ;;  %v1406_v48 = vld [vmem:[%s4819_s4 + $0x68] sm:$0xff]  ;;  %v1408_v27 = vld [vmem:[%s4819_s4 + $0x78] sm:$0xff] }
 0x3bb   :  { %v1311_v59 = vmul.f32 %v1279_v47, %v3932_v50  ;;  %v1343_v58 = vmul.f32 %v1279_v47, %v3930_v43  ;;  %3137 = vmatpush3.bf16.msra.mxu1 %v3134_v30  ;;  %v3158_v18 = vpack.c.bf16 %v1318_v37, %v1317_v21  ;;  %v1319_v1 = vsub.f32 %v4860_v54, %v4088_v45  ;;  %v1377_v46 = vld [vmem:[%s4818_s3] sm:$0xff]  ;;  %v1378_v40 = vld [vmem:[%s4818_s3 + $0x8] sm:$0xff]  ;;  %v1379_v42 = vld [vmem:[%s4818_s3 + $0x10] sm:$0xff] }
 0x3bc   :  { %3139 = vmatprep.subr.bf16.mxu1 %v3138_v9  ;;  %v1320_v24 = vsub.f32 %v4862_v35, %v4861_v55  ;;  %v1321_v25 = vsub.f32 %v4864_v26, %v4863_v19  ;;  %v1322_v56 = vsub.f32 %v4866_v11, %v4865_v51  ;;  %v1323_v50 = vsub.f32 %v4198_v12, %v4205_v31  ;;  %v1380_v33 = vld [vmem:[%s4818_s3 + $0x18] sm:$0xff]  ;;  %v1381_v52 = vld [vmem:[%s4818_s3 + $0x20] sm:$0xff]  ;;  %v1382_v16 = vld [vmem:[%s4818_s3 + $0x28] sm:$0xff] }
 0x3bd   :  { %v1375_v62 = vadd.f32 %v1359_v57, %v1343_v58  ;;  %v1324_v43 = vsub.f32 %v4176_v38, %v4182_v6  ;;  %v1325_v45 = vsub.f32 %v4273_v41, %v4277_v15  ;;  %v1326_v29 = vsub.f32 %v4233_v39, %v4239_v32  ;;  %v1394_v38 = vld [vmem:[%s4819_s4 + $0x8] sm:$0xff]  ;;  %v1395_v6 = vld [vmem:[%s4819_s4 + $0x10] sm:$0xff]  ;;  %v1396_v39 = vld [vmem:[%s4819_s4 + $0x18] sm:$0xff] }
 0x3be   :  { %v3162_v30 = vpack.c.bf16 %v1320_v24, %v1319_v1  ;;  %v3166_v36 = vpack.c.bf16 %v1322_v56, %v1321_v25  ;;  %v1327_v17 = vsub.f32 %v1295_v2, %v1311_v59  ;;  %v1328_v60 = vsub.f32 %v4295_v13, %v4299_v5  ;;  %v1397_v32 = vld [vmem:[%s4819_s4 + $0x20] sm:$0xff]  ;;  %v1398_v41 = vld [vmem:[%s4819_s4 + $0x28] sm:$0xff]  ;;  %v1399_v15 = vld [vmem:[%s4819_s4 + $0x30] sm:$0xff] }
 0x3bf   :  { %3141 = vmatpush3.bf16.msra.mxu1 %v3138_v9  ;;  %v3146_v0 = vpack.c.bf16 %v1376_v22, %v1375_v62  ;;  %v3170_v53 = vpack.c.bf16 %v1324_v43, %v1323_v50  ;;  %v3174_v12 = vpack.c.bf16 %v1326_v29, %v1325_v45  ;;  %v1400_v13 = vld [vmem:[%s4819_s4 + $0x38] sm:$0xff]  ;;  %v1401_v5 = vld [vmem:[%s4819_s4 + $0x40] sm:$0xff]  ;;  %v1402_v22 = vld [vmem:[%s4819_s4 + $0x48] sm:$0xff] }
 0x3c0   :  { %3143 = vmatprep.subr.bf16.mxu1 %v3142_v10  ;;  %v3178_v31 = vpack.c.bf16 %v1328_v60, %v1327_v17  ;;  %v1403_v9 = vld [vmem:[%s4819_s4 + $0x50] sm:$0xff]  ;;  %v1384_v7 = vld [vmem:[%s4818_s3 + $0x38] sm:$0xff]  ;;  %v1385_v28 = vld [vmem:[%s4818_s3 + $0x40] sm:$0xff] }
 0x3c1   :  { %v1383_v44 = vld [vmem:[%s4818_s3 + $0x30] sm:$0xff]  ;;  %v1386_v23 = vld [vmem:[%s4818_s3 + $0x48] sm:$0xff]  ;;  %v1388_v21 = vld [vmem:[%s4818_s3 + $0x58] sm:$0xff] }
 0x3c2   :  { %v1387_v61 = vld [vmem:[%s4818_s3 + $0x50] sm:$0xff]  ;;  %v1389_v63 = vld [vmem:[%s4818_s3 + $0x60] sm:$0xff]  ;;  %v1390_v3 = vld [vmem:[%s4818_s3 + $0x68] sm:$0xff] }
 0x3c3   :  { %3145 = vmatpush3.bf16.msra.mxu1 %v3142_v10  ;;  %v1404_v10 = vld [vmem:[%s4819_s4 + $0x58] sm:$0xff]  ;;  %v3234_v25 = vld [vmem:[%s4821_s6] ss:$8 sps:$4 sm:$0xff]   ;;  %v3236_v51 = vld [vmem:[%s4821_s6 + $0x4] ss:$8 sps:$4 sm:$0xff]  }
 0x3c4   :  { %3147 = vmatprep.subr.bf16.mxu1 %v3146_v0  ;;  %v1392_v20 = vld [vmem:[%s4818_s3 + $0x78] sm:$0xff]  ;;  %2026 = vmatprep.subr.bf16.mxu0 %v3236_v51 }
 0x3c5   :  { %v3239_v11 = vld [vmem:[%s4821_s6 + $0x14] ss:$8 sps:$4 sm:$0xff]   ;;  %2027 = vmatpush1.bf16.msra.mxu0 %v3234_v25  ;;  %v3237_v56 = vld [vmem:[%s4821_s6 + $0x10] ss:$8 sps:$4 sm:$0xff]  }
 0x3c6   :  { %2028 = vmatprep.subr.bf16.mxu0 %v3239_v11 }
 0x3c7   :  { %3149 = vmatpush3.bf16.msra.mxu1 %v3146_v0 }
 0x3c8   :  { %3151 = vmatprep.subr.bf16.mxu1 %v3150_v34 }
 0x3c9   :  { %2029 = vmatpush1.bf16.msra.mxu0 %v3237_v56 }
 0x3ca   :  { %2975 = vmatmul.mubr.f32.vlgmr.msra.gmra.mrb[16].mxu1 %v1394_v38 }
 0x3cb   :  { %3153 = vmatpush3.bf16.msra.mxu1 %v3150_v34  ;;  %2977 = vmatprep.mubr.f32.mxu1 %v1395_v6  ;;  %v1391_v34 = vld [vmem:[%s4818_s3 + $0x70] sm:$0xff] }
 0x3cc   :  { %3155 = vmatprep.subr.bf16.mxu1 %v3154_v49 }
 0x3ce   :  { %2978 = vmatmul.mubr.f32.gmra.mrb[18].mxu1 %v1396_v39 }
 0x3cf   :  { %3157 = vmatpush3.bf16.msra.mxu1 %v3154_v49  ;;  %2980 = vmatprep.mubr.f32.mxu1 %v1397_v32 }
 0x3d0   :  { %3159 = vmatprep.subr.bf16.mxu1 %v3158_v18 }
 0x3d2   :  { %2981 = vmatmul.mubr.f32.gmra.mrb[20].mxu1 %v1398_v41 }
 0x3d3   :  { %3161 = vmatpush3.bf16.msra.mxu1 %v3158_v18  ;;  %2983 = vmatprep.mubr.f32.mxu1 %v1399_v15 }
 0x3d4   :  { %3163 = vmatprep.subr.bf16.mxu1 %v3162_v30 }
 0x3d6   :  { %2984 = vmatmul.mubr.f32.gmra.mrb[22].mxu1 %v1400_v13 }
 0x3d7   :  { %3165 = vmatpush3.bf16.msra.mxu1 %v3162_v30  ;;  %2986 = vmatprep.mubr.f32.mxu1 %v1401_v5 }
 0x3d8   :  { %3167 = vmatprep.subr.bf16.mxu1 %v3166_v36 }
 0x3da   :  { %2987 = vmatmul.mubr.f32.gmra.mrb[24].mxu1 %v1402_v22 }
 0x3db   :  { %3169 = vmatpush3.bf16.msra.mxu1 %v3166_v36  ;;  %2989 = vmatprep.mubr.f32.mxu1 %v1403_v9 }
 0x3dc   :  { %3171 = vmatprep.subr.bf16.mxu1 %v3170_v53 }
 0x3de   :  { %2990 = vmatmul.mubr.f32.gmra.mrb[26].mxu1 %v1404_v10 }
 0x3df   :  { %3173 = vmatpush3.bf16.msra.mxu1 %v3170_v53  ;;  %2992 = vmatprep.mubr.f32.mxu1 %v1405_v8 }
 0x3e0   :  { %3175 = vmatprep.subr.bf16.mxu1 %v3174_v12 }
 0x3e2   :  { %2993 = vmatmul.mubr.f32.gmra.mrb[28].mxu1 %v1406_v48 }
 0x3e3   :  { %3177 = vmatpush3.bf16.msra.mxu1 %v3174_v12  ;;  %2995 = vmatprep.mubr.f32.mxu1 %v1407_v14 }
 0x3e4   :  { %3179 = vmatprep.subr.bf16.mxu1 %v3178_v31 }
 0x3e6   :  { %2996 = vmatmul.mubr.f32.gmra.mrb[30].mxu1 %v1408_v27 }
 0x3e7   :  { %3181 = vmatpush3.bf16.msra.mxu1 %v3178_v31  ;;  %3030 = vmatprep.mubr.f32.mxu1 %v1377_v46 }
 0x3ea   :  { %3031 = vmatmul.mubr.f32.vlgmr.msra.gmra.mrb[16].mxu1 %v1378_v40 }
 0x3eb   :  { %3033 = vmatprep.mubr.f32.mxu1 %v1379_v42 }
 0x3ee   :  { %3034 = vmatmul.mubr.f32.gmra.mrb[18].mxu1 %v1380_v33 }
 0x3ef   :  { %3036 = vmatprep.mubr.f32.mxu1 %v1381_v52 }
 0x3f2   :  { %3037 = vmatmul.mubr.f32.gmra.mrb[20].mxu1 %v1382_v16 }
 0x3f3   :  { %3039 = vmatprep.mubr.f32.mxu1 %v1383_v44 }
 0x3f6   :  { %3040 = vmatmul.mubr.f32.gmra.mrb[22].mxu1 %v1384_v7 }
 0x3f7   :  { %3042 = vmatprep.mubr.f32.mxu1 %v1385_v28 }
 0x3fa   :  { %3043 = vmatmul.mubr.f32.gmra.mrb[24].mxu1 %v1386_v23 }
 0x3fb   :  { %3045 = vmatprep.mubr.f32.mxu1 %v1387_v61 }
 0x3fe   :  { %3046 = vmatmul.mubr.f32.gmra.mrb[26].mxu1 %v1388_v21 }
 0x3ff   :  { %3048 = vmatprep.mubr.f32.mxu1 %v1389_v63 }
 0x402   :  { %3049 = vmatmul.mubr.f32.gmra.mrb[28].mxu1 %v1390_v3 }
 0x403   :  { %3051 = vmatprep.mubr.f32.mxu1 %v1391_v34 }
 0x406   :  { %3052 = vmatmul.mubr.f32.gmra.mrb[30].mxu1 %v1392_v20 }
 0x4bd   :  { %v3032_v4 = vpop.f32.mrb[16].mxu1 }
 0x4be   :  { %1703 = vadd.xlane.f32.xlu1 %v3032_v4  ;;  %v1620_v37 = vpop.f32.mrb[17].mxu1 }
 0x4bf   :  { %1701 = vadd.xlane.f32.xlu0 %v1620_v37 }
 0x4c1   :  { %v3035_v47 = vpop.f32.mrb[18].mxu1 }
 0x4c2   :  { %1707 = vadd.xlane.f32.xlu1 %v3035_v47  ;;  %v1630_v2 = vpop.f32.mrb[19].mxu1 }
 0x4c3   :  { %1705 = vadd.xlane.f32.xlu0 %v1630_v2 }
 0x4c5   :  { %v3038_v57 = vpop.f32.mrb[20].mxu1 }
 0x4c6   :  { %1711 = vadd.xlane.f32.xlu1 %v3038_v57  ;;  %v1640_v49 = vpop.f32.mrb[21].mxu1 }
 0x4c7   :  { %1709 = vadd.xlane.f32.xlu0 %v1640_v49 }
 0x4c9   :  { %v3041_v59 = vpop.f32.mrb[22].mxu1 }
 0x4ca   :  { %1715 = vadd.xlane.f32.xlu1 %v3041_v59  ;;  %v1650_v58 = vpop.f32.mrb[23].mxu1 }
 0x4cb   :  { %1713 = vadd.xlane.f32.xlu0 %v1650_v58 }
 0x4cd   :  { %v4449_v18 = vpop.f32.mrb[24].mxu1 }
 0x4ce   :  { %1719 = vadd.xlane.f32.xlu1 %v4449_v18  ;;  %v4452_v54 = vpop.f32.mrb[25].mxu1 }
 0x4cf   :  { %1717 = vadd.xlane.f32.xlu0 %v4452_v54 }
 0x4d1   :  { %v4455_v1 = vpop.f32.mrb[26].mxu1 }
 0x4d2   :  { %1723 = vadd.xlane.f32.xlu1 %v4455_v1  ;;  %v4458_v55 = vpop.f32.mrb[27].mxu1 }
 0x4d3   :  { %1721 = vadd.xlane.f32.xlu0 %v4458_v55 }
 0x4d5   :  { %v4461_v35 = vpop.f32.mrb[28].mxu1 }
 0x4d6   :  { %1727 = vadd.xlane.f32.xlu1 %v4461_v35  ;;  %v4464_v24 = vpop.f32.mrb[29].mxu1 }
 0x4d7   :  { %1725 = vadd.xlane.f32.xlu0 %v4464_v24 }
 0x4d9   :  { %v4467_v19 = vpop.f32.mrb[30].mxu1 }
 0x4da   :  { %1731 = vadd.xlane.f32.xlu1 %v4467_v19  ;;  %v4470_v26 = vpop.f32.mrb[31].mxu1 }
 0x4db   :  { %1729 = vadd.xlane.f32.xlu0 %v4470_v26 }
 0x54b   :  { %v1704_v50 = vpop.xlane.xlu1 %1703 }
 0x54c   :  { %v1734_v62 = vmul.f32 0.0078125, %v1704_v50  ;;  %v1702_v43 = vpop.xlane.xlu0 %1701 }
 0x54d   :  { %v1733_v45 = vmul.f32 0.0078125, %v1702_v43  ;;  %v3242_v43 = vld [vmem:[%s4821_s6 + $0x24] ss:$8 sps:$4 sm:$0xff]  }
 0x54e   :  { %v4485_v29 = vsub.f32 %v3032_v4, %v1734_v62  ;;  %2030 = vmatprep.subr.bf16.mxu0 %v3242_v43 }
 0x54f   :  { %v4487_v30 = vsub.f32 %v1620_v37, %v1733_v45  ;;  %v1708_v36 = vpop.xlane.xlu1 %1707  ;;  %v3243_v45 = vld [vmem:[%s4821_s6 + $0x30] ss:$8 sps:$4 sm:$0xff]  }
 0x550   :  { %v1736_v17 = vmul.f32 0.0078125, %v1708_v36  ;;  %v1706_v60 = vpop.xlane.xlu0 %1705  ;;  %v1766_v0 = vmul.f32 %v4485_v29, %v4485_v29  ;;  %v3248_v36 = vld [vmem:[%s4821_s6 + $0x44] ss:$8 sps:$4 sm:$0xff]  }
 0x551   :  { %v1735_v53 = vmul.f32 0.0078125, %v1706_v60  ;;  %v1765_v12 = vmul.f32 %v4487_v30, %v4487_v30  ;;  %v3251_v60 = vld [vmem:[%s4821_s6 + $0x54] ss:$8 sps:$4 sm:$0xff]  }
 0x552   :  { %v4493_v31 = vsub.f32 %v3035_v47, %v1736_v17  ;;  %1783 = vadd.xlane.f32.xlu1 %v1766_v0  ;;  %v3246_v17 = vld [vmem:[%s4821_s6 + $0x40] ss:$8 sps:$4 sm:$0xff]   ;;  %v3370_v0 = vmov 0  }
 0x553   :  { %v4495_v38 = vsub.f32 %v1630_v2, %v1735_v53  ;;  %v1712_v6 = vpop.xlane.xlu1 %1711  ;;  %1781 = vadd.xlane.f32.xlu0 %v1765_v12  ;;  %2058 = vmatprep.mubr.bf16.mxu0 %v3370_v0  ;;  %v3249_v53 = vld [vmem:[%s4821_s6 + $0x50] ss:$8 sps:$4 sm:$0xff]   ;;  %v3254_v12 = vld [vmem:[%s4821_s6 + $0x64] ss:$8 sps:$4 sm:$0xff]  }
 0x554   :  { %v1738_v39 = vmul.f32 0.0078125, %v1712_v6  ;;  %v1710_v32 = vpop.xlane.xlu0 %1709  ;;  %v1768_v41 = vmul.f32 %v4493_v31, %v4493_v31  ;;  %v3252_v6 = vld [vmem:[%s4821_s6 + $0x60] ss:$8 sps:$4 sm:$0xff]  }
 0x555   :  { %v1737_v15 = vmul.f32 0.0078125, %v1710_v32  ;;  %v1767_v13 = vmul.f32 %v4495_v38, %v4495_v38  ;;  %v3255_v32 = vld [vmem:[%s4821_s6 + $0x70] ss:$8 sps:$4 sm:$0xff]  }
 0x556   :  { %v4501_v5 = vsub.f32 %v3038_v57, %v1738_v39  ;;  %1787 = vadd.xlane.f32.xlu1 %v1768_v41  ;;  %v3257_v39 = vld [vmem:[%s4821_s6 + $0x74] ss:$8 sps:$4 sm:$0xff]   ;;  %v3258_v41 = vld [vmem:[%s4822_s7 + $0x40] sm:$0xff]  }
 0x557   :  { %v4503_v22 = vsub.f32 %v1640_v49, %v1737_v15  ;;  %v1716_v9 = vpop.xlane.xlu1 %1715  ;;  %1785 = vadd.xlane.f32.xlu0 %v1767_v13  ;;  %v4600_v15 = vld [vmem:[%s4822_s7] sm:$0xff]   ;;  %v4605_v13 = vld [vmem:[%s4822_s7 + $0x48] sm:$0xff]   ;;  %3182 = vmatprep.subr.bf16.mxu1 %v3258_v41 }
 0x558   :  { %v1740_v10 = vmul.f32 0.0078125, %v1716_v9  ;;  %v1714_v8 = vpop.xlane.xlu0 %1713  ;;  %v1770_v48 = vmul.f32 %v4501_v5, %v4501_v5  ;;  %3190 = vmatpush3.bf16.msra.mxu1 %v4600_v15  ;;  %v4612_v9 = vld [vmem:[%s4822_s7 + $0x8] sm:$0xff]  }
 0x559   :  { %v1739_v14 = vmul.f32 0.0078125, %v1714_v8  ;;  %v1769_v27 = vmul.f32 %v4503_v22, %v4503_v22  ;;  %3183 = vmatprep.subr.bf16.mxu1 %v4605_v13  ;;  %v4624_v8 = vld [vmem:[%s4822_s7 + $0x10] sm:$0xff]  }
 0x55a   :  { %v4509_v46 = vsub.f32 %v3041_v59, %v1740_v10  ;;  %1791 = vadd.xlane.f32.xlu1 %v1770_v48  ;;  %v4617_v10 = vld [vmem:[%s4822_s7 + $0x50] sm:$0xff]   ;;  %v4629_v48 = vld [vmem:[%s4822_s7 + $0x58] sm:$0xff]  }
 0x55b   :  { %v4511_v40 = vsub.f32 %v1650_v58, %v1739_v14  ;;  %v1720_v42 = vpop.xlane.xlu1 %1719  ;;  %1789 = vadd.xlane.f32.xlu0 %v1769_v27  ;;  %v4636_v14 = vld [vmem:[%s4822_s7 + $0x18] sm:$0xff]   ;;  %v4641_v27 = vld [vmem:[%s4822_s7 + $0x60] sm:$0xff]  }
 0x55c   :  { %v1742_v33 = vmul.f32 0.0078125, %v1720_v42  ;;  %v1718_v52 = vpop.xlane.xlu0 %1717  ;;  %v1772_v16 = vmul.f32 %v4509_v46, %v4509_v46  ;;  %3191 = vmatpush3.bf16.msra.mxu1 %v4612_v9  ;;  %v4648_v42 = vld [vmem:[%s4822_s7 + $0x20] sm:$0xff]  }
 0x55d   :  { %v1741_v44 = vmul.f32 0.0078125, %v1718_v52  ;;  %v1771_v7 = vmul.f32 %v4511_v40, %v4511_v40  ;;  %3184 = vmatprep.subr.bf16.mxu1 %v4617_v10 }
 0x55e   :  { %v4518_v28 = vsub.f32 %v4449_v18, %v1742_v33  ;;  %1795 = vadd.xlane.f32.xlu1 %v1772_v16 }
 0x55f   :  { %v4521_v23 = vsub.f32 %v4452_v54, %v1741_v44  ;;  %v1724_v61 = vpop.xlane.xlu1 %1723  ;;  %1793 = vadd.xlane.f32.xlu0 %v1771_v7 }
 0x560   :  { %v1744_v21 = vmul.f32 0.0078125, %v1724_v61  ;;  %v1722_v63 = vpop.xlane.xlu0 %1721  ;;  %v1774_v3 = vmul.f32 %v4518_v28, %v4518_v28  ;;  %3192 = vmatpush3.bf16.msra.mxu1 %v4624_v8 }
 0x561   :  { %v1743_v34 = vmul.f32 0.0078125, %v1722_v63  ;;  %v1773_v20 = vmul.f32 %v4521_v23, %v4521_v23  ;;  %3185 = vmatprep.subr.bf16.mxu1 %v4629_v48 }
 0x562   :  { %v4528_v4 = vsub.f32 %v4455_v1, %v1744_v21  ;;  %1799 = vadd.xlane.f32.xlu1 %v1774_v3 }
 0x563   :  { %v4531_v37 = vsub.f32 %v4458_v55, %v1743_v34  ;;  %v1728_v47 = vpop.xlane.xlu1 %1727  ;;  %1797 = vadd.xlane.f32.xlu0 %v1773_v20 }
 0x564   :  { %v1746_v2 = vmul.f32 0.0078125, %v1728_v47  ;;  %v1726_v57 = vpop.xlane.xlu0 %1725  ;;  %v1776_v49 = vmul.f32 %v4528_v4, %v4528_v4  ;;  %3193 = vmatpush3.bf16.msra.mxu1 %v4636_v14 }
 0x565   :  { %v1745_v59 = vmul.f32 0.0078125, %v1726_v57  ;;  %v1775_v58 = vmul.f32 %v4531_v37, %v4531_v37  ;;  %3186 = vmatprep.subr.bf16.mxu1 %v4641_v27 }
 0x566   :  { %v4538_v18 = vsub.f32 %v4461_v35, %v1746_v2  ;;  %1803 = vadd.xlane.f32.xlu1 %v1776_v49 }
 0x567   :  { %v4541_v54 = vsub.f32 %v4464_v24, %v1745_v59  ;;  %v1732_v1 = vpop.xlane.xlu1 %1731  ;;  %1801 = vadd.xlane.f32.xlu0 %v1775_v58 }
 0x568   :  { %v1748_v55 = vmul.f32 0.0078125, %v1732_v1  ;;  %v1730_v25 = vpop.xlane.xlu0 %1729  ;;  %v1778_v51 = vmul.f32 %v4538_v18, %v4538_v18  ;;  %3194 = vmatpush3.bf16.msra.mxu1 %v4648_v42 }
 0x569   :  { %v1747_v11 = vmul.f32 0.0078125, %v1730_v25  ;;  %v1777_v56 = vmul.f32 %v4541_v54, %v4541_v54 }
 0x56a   :  { %v4548_v50 = vsub.f32 %v4467_v19, %v1748_v55  ;;  %1807 = vadd.xlane.f32.xlu1 %v1778_v51  ;;  %v3240_v19 = vld [vmem:[%s4821_s6 + $0x20] ss:$8 sps:$4 sm:$0xff]  }
 0x56b   :  { %v4551_v35 = vsub.f32 %v4470_v26, %v1747_v11  ;;  %1805 = vadd.xlane.f32.xlu0 %v1777_v56  ;;  %v3245_v26 = vld [vmem:[%s4821_s6 + $0x34] ss:$8 sps:$4 sm:$0xff]   ;;  %2031 = vmatpush1.bf16.msra.mxu0 %v3240_v19 }
 0x56c   :  { %v1780_v24 = vmul.f32 %v4548_v50, %v4548_v50  ;;  %2032 = vmatprep.subr.bf16.mxu0 %v3245_v26 }
 0x56d   :  { %v1779_v62 = vmul.f32 %v4551_v35, %v4551_v35 }
 0x56e   :  { %1811 = vadd.xlane.f32.xlu1 %v1780_v24  ;;  %v4654_v24 = vld [vmem:[%s4823_s8 + $0x13] ss:$0 sm:$0xff] }
 0x56f   :  { %1809 = vadd.xlane.f32.xlu0 %v1779_v62  ;;  %2033 = vmatpush1.bf16.msra.mxu0 %v3243_v45  ;;  %v4661_v45 = vld [vmem:[%s4823_s8 + $0x14] ss:$0 sm:$0xff] }
 0x570   :  { %2034 = vmatprep.subr.bf16.mxu0 %v3248_v36 }
 0x573   :  { %2035 = vmatpush1.bf16.msra.mxu0 %v3246_v17 }
 0x574   :  { %2036 = vmatprep.subr.bf16.mxu0 %v3251_v60 }
 0x577   :  { %2037 = vmatpush1.bf16.msra.mxu0 %v3249_v53 }
 0x578   :  { %2038 = vmatprep.subr.bf16.mxu0 %v3254_v12 }
 0x57b   :  { %2039 = vmatpush1.bf16.msra.mxu0 %v3252_v6 }
 0x57c   :  { %2040 = vmatprep.subr.bf16.mxu0 %v3257_v39 }
 0x57f   :  { %2041 = vmatpush1.bf16.msra.mxu0 %v3255_v32 }
 0x580   :  { %2734 = vmatprep.subr.bf16.mxu0 %v3258_v41 }
 0x5df   :  { %v1784_v33 = vpop.xlane.xlu1 %1783 }
 0x5e0   :  { %v1814_v52 = vmul.f32 0.0078125, %v1784_v33  ;;  %v1782_v16 = vpop.xlane.xlu0 %1781 }
 0x5e1   :  { %v1813_v44 = vmul.f32 0.0078125, %v1782_v16 }
 0x5e2   :  { %v1830_v7 = vadd.f32 1e-05, %v1814_v52 }
 0x5e3   :  { %v1829_v61 = vadd.f32 1e-05, %v1813_v44  ;;  %v1788_v21 = vpop.xlane.xlu1 %1787 }
 0x5e4   :  { %3306 = vrsqrt.f32 %v1830_v7  ;;  %v1816_v63 = vmul.f32 0.0078125, %v1788_v21  ;;  %v1786_v3 = vpop.xlane.xlu0 %1785 }
 0x5e5   :  { %3308 = vrsqrt.f32 %v1829_v61  ;;  %v1815_v34 = vmul.f32 0.0078125, %v1786_v3 }
 0x5e6   :  { %v1832_v20 = vadd.f32 1e-05, %v1816_v63 }
 0x5e7   :  { %v1831_v47 = vadd.f32 1e-05, %v1815_v34  ;;  %v1792_v2 = vpop.xlane.xlu1 %1791 }
 0x5e8   :  { %3310 = vrsqrt.f32 %v1832_v20  ;;  %v1818_v57 = vmul.f32 0.0078125, %v1792_v2  ;;  %v1790_v49 = vpop.xlane.xlu0 %1789 }
 0x5e9   :  { %3312 = vrsqrt.f32 %v1831_v47  ;;  %v1817_v59 = vmul.f32 0.0078125, %v1790_v49 }
 0x5ea   :  { %v1834_v58 = vadd.f32 1e-05, %v1818_v57 }
 0x5eb   :  { %v1833_v1 = vadd.f32 1e-05, %v1817_v59  ;;  %v1796_v55 = vpop.xlane.xlu1 %1795 }
 0x5ec   :  { %3314 = vrsqrt.f32 %v1834_v58  ;;  %v1820_v25 = vmul.f32 0.0078125, %v1796_v55  ;;  %v1794_v51 = vpop.xlane.xlu0 %1793 }
 0x5ed   :  { %3316 = vrsqrt.f32 %v1833_v1  ;;  %v1819_v11 = vmul.f32 0.0078125, %v1794_v51 }
 0x5ee   :  { %v3307_v56 = vpop.eup %3306  ;;  %v1836_v26 = vadd.f32 1e-05, %v1820_v25 }
 0x5ef   :  { %v3309_v62 = vpop.eup %3308  ;;  %v1862_v43 = vmul.f32 %v3307_v56, %v4485_v29  ;;  %v1835_v17 = vadd.f32 1e-05, %v1819_v11  ;;  %v1800_v60 = vpop.xlane.xlu1 %1799 }
 0x5f0   :  { %v1861_v19 = vmul.f32 %v3309_v62, %v4487_v30  ;;  %v1798_v6 = vpop.xlane.xlu0 %1797  ;;  %3318 = vrsqrt.f32 %v1836_v26  ;;  %v1822_v30 = vmul.f32 0.0078125, %v1800_v60 }
 0x5f1   :  { %v1878_v36 = vmul.f32 %v1862_v43, %v4654_v24  ;;  %3320 = vrsqrt.f32 %v1835_v17  ;;  %v1821_v52 = vmul.f32 0.0078125, %v1798_v6 }
 0x5f2   :  { %v3311_v53 = vpop.eup %3310  ;;  %v1877_v12 = vmul.f32 %v1861_v19, %v4654_v24  ;;  %v1838_v63 = vadd.f32 1e-05, %v1822_v30 }
 0x5f3   :  { %v3313_v39 = vpop.eup %3312  ;;  %v1894_v32 = vadd.f32 %v1878_v36, %v4661_v45  ;;  %v1864_v29 = vmul.f32 %v3311_v53, %v4493_v31  ;;  %v1837_v3 = vadd.f32 1e-05, %v1821_v52  ;;  %v1804_v34 = vpop.xlane.xlu1 %1803 }
 0x5f4   :  { %v1893_v41 = vadd.f32 %v1877_v12, %v4661_v45  ;;  %v1863_v33 = vmul.f32 %v3313_v39, %v4495_v38  ;;  %v1802_v31 = vpop.xlane.xlu0 %1801  ;;  %3322 = vrsqrt.f32 %v1838_v63  ;;  %v1824_v57 = vmul.f32 0.0078125, %v1804_v34 }
 0x5f5   :  { %v1880_v61 = vmul.f32 %v1864_v29, %v4654_v24  ;;  %3324 = vrsqrt.f32 %v1837_v3  ;;  %v1823_v49 = vmul.f32 0.0078125, %v1802_v31 }
 0x5f6   :  { %v3315_v16 = vpop.eup %3314  ;;  %v1909_v44 = vpack.c.bf16 %v1894_v32, %v1893_v41  ;;  %v1879_v7 = vmul.f32 %v1863_v33, %v4654_v24 }
 0x5f7   :  { %v3317_v21 = vpop.eup %3316  ;;  %v1896_v20 = vadd.f32 %v1880_v61, %v4661_v45  ;;  %v1866_v2 = vmul.f32 %v3315_v16, %v4501_v5  ;;  %v1839_v5 = vadd.f32 1e-05, %v1823_v49  ;;  %v1808_v25 = vpop.xlane.xlu1 %1807 }
 0x5f8   :  { %2059 = vmatmul.mubr.bf16.vlgmr.msra.gmra.mrb[32].mxu0 %v1909_v44  ;;  %v1895_v38 = vadd.f32 %v1879_v7, %v4661_v45  ;;  %v1865_v47 = vmul.f32 %v3317_v21, %v4503_v22  ;;  %v1840_v22 = vadd.f32 1e-05, %v1824_v57 }
 0x5f9   :  { %2068 = vmatprep.mubr.bf16.mxu0 %v3370_v0  ;;  %2735 = vmatpush3.bf16.msra.mxu0 %v4600_v15  ;;  %v1882_v1 = vmul.f32 %v1866_v2, %v4654_v24 }
 0x5fa   :  { %2736 = vmatprep.subr.bf16.mxu0 %v4605_v13  ;;  %v3319_v59 = vpop.eup %3318  ;;  %v1910_v58 = vpack.c.bf16 %v1896_v20, %v1895_v38  ;;  %v1881_v15 = vmul.f32 %v1865_v47, %v4654_v24  ;;  %v1806_v13 = vpop.xlane.xlu0 %1805  ;;  %3326 = vrsqrt.f32 %v1840_v22 }
 0x5fb   :  { %v3321_v55 = vpop.eup %3320  ;;  %v1898_v51 = vadd.f32 %v1882_v1, %v4661_v45  ;;  %v1868_v56 = vmul.f32 %v3319_v59, %v4509_v46  ;;  %3328 = vrsqrt.f32 %v1839_v5  ;;  %v1825_v62 = vmul.f32 0.0078125, %v1806_v13  ;;  %v1812_v17 = vpop.xlane.xlu1 %1811  ;;  %v3273_v5 = vld [vmem:[%s4822_s7 + $0x38] sm:$0xff]  }
 0x5fc   :  { %v1867_v11 = vmul.f32 %v3321_v55, %v4511_v40 }
 0x5fd   :  { %2737 = vmatpush3.bf16.msra.mxu0 %v4612_v9  ;;  %v1897_v9 = vadd.f32 %v1881_v15, %v4661_v45  ;;  %v1884_v26 = vmul.f32 %v1868_v56, %v4654_v24  ;;  %v1841_v46 = vadd.f32 1e-05, %v1825_v62 }
 0x5fe   :  { %2738 = vmatprep.subr.bf16.mxu0 %v4617_v10  ;;  %v1826_v10 = vmul.f32 0.0078125, %v1808_v25  ;;  %v3323_v43 = vpop.eup %3322  ;;  %v1936_v25 = vlaneseq }
 0x5ff   :  { %v1911_v19 = vpack.c.bf16 %v1898_v51, %v1897_v9  ;;  %v3325_v36 = vpop.eup %3324  ;;  %v1900_v60 = vadd.f32 %v1884_v26, %v4661_v45  ;;  %v1870_v12 = vmul.f32 %v3323_v43, %v4518_v28  ;;  %v2557_v51 = vld [vmem:[%s4823_s8 + $0x16] ss:$8 sm:$0x3] }
 0x600   :  { %2069 = vmatmul.mubr.bf16.gmra.mrb[36].mxu0 %v1910_v58  ;;  %v1842_v40 = vadd.f32 1e-05, %v1826_v10  ;;  %v1869_v53 = vmul.f32 %v3325_v36, %v4521_v23  ;;  %v1937_v13 = vshrl.u32 %v1936_v25, 7 }
 0x601   :  { %2078 = vmatprep.mubr.bf16.mxu0 %v3370_v0  ;;  %2739 = vmatpush3.bf16.msra.mxu0 %v4624_v8  ;;  %v1883_v8 = vmul.f32 %v1867_v11, %v4654_v24  ;;  %v1886_v30 = vmul.f32 %v1870_v12, %v4654_v24 }
 0x602   :  { %2740 = vmatprep.subr.bf16.mxu0 %v4629_v48  ;;  %v1810_v48 = vpop.xlane.xlu0 %1809  ;;  %3330 = vrsqrt.f32 %v1842_v40  ;;  %v1885_v29 = vmul.f32 %v1869_v53, %v4654_v24  ;;  %v1938_v9 = vsub.s32 0, %v1937_v13  ;;  %v1942_v11 = vsub.s32 1, %v1937_v13 }
 0x603   :  { %3332 = vrsqrt.f32 %v1841_v46  ;;  %v1827_v6 = vmul.f32 0.0078125, %v1810_v48  ;;  %v1902_v28 = vadd.f32 %v1886_v30, %v4661_v45 }
 0x604   :  { %v3327_v39 = vpop.eup %3326  ;;  %v1901_v23 = vadd.f32 %v1885_v29, %v4661_v45  ;;  %v4746_v56 = vrot.slane %v2557_v51, %v1938_v9  ;;  %v4748_v10 = vrot.slane %v2557_v51, %v1942_v11 }
 0x605   :  { %2741 = vmatpush3.bf16.msra.mxu0 %v4636_v14  ;;  %v1899_v14 = vadd.f32 %v1883_v8, %v4661_v45  ;;  %v1843_v33 = vadd.f32 1e-05, %v1827_v6  ;;  %v1872_v16 = vmul.f32 %v3327_v39, %v4528_v4 }
 0x606   :  { %2742 = vmatprep.subr.bf16.mxu0 %v4641_v27  ;;  %v1828_v27 = vmul.f32 0.0078125, %v1812_v17  ;;  %v1913_v7 = vpack.c.bf16 %v1902_v28, %v1901_v23 }
 0x607   :  { %v1912_v32 = vpack.c.bf16 %v1900_v60, %v1899_v14  ;;  %v1888_v21 = vmul.f32 %v1872_v16, %v4654_v24 }
 0x608   :  { %2079 = vmatmul.mubr.bf16.gmra.mrb[40].mxu0 %v1911_v19  ;;  %v1844_v41 = vadd.f32 1e-05, %v1828_v27 }
 0x609   :  { %2088 = vmatprep.mubr.bf16.mxu0 %v3370_v0  ;;  %2743 = vmatpush3.bf16.msra.mxu0 %v4648_v42  ;;  %v3329_v42 = vpop.eup %3328  ;;  %v1904_v34 = vadd.f32 %v1888_v21, %v4661_v45 }
 0x60a   :  { %v1871_v52 = vmul.f32 %v3329_v42, %v4531_v37  ;;  %3334 = vrsqrt.f32 %v1844_v41 }
 0x60b   :  { %3336 = vrsqrt.f32 %v1843_v33 }
 0x60c   :  { %v3331_v44 = vpop.eup %3330  ;;  %v1887_v61 = vmul.f32 %v1871_v52, %v4654_v24 }
 0x60d   :  { %v3333_v63 = vpop.eup %3332  ;;  %v1874_v4 = vmul.f32 %v3331_v44, %v4538_v18 }
 0x60e   :  { %v1903_v3 = vadd.f32 %v1887_v61, %v4661_v45  ;;  %v1873_v37 = vmul.f32 %v3333_v63, %v4541_v54 }
 0x60f   :  { %v1890_v47 = vmul.f32 %v1874_v4, %v4654_v24 }
 0x610   :  { %2089 = vmatmul.mubr.bf16.gmra.mrb[44].mxu0 %v1912_v32  ;;  %v1914_v38 = vpack.c.bf16 %v1904_v34, %v1903_v3  ;;  %v1889_v20 = vmul.f32 %v1873_v37, %v4654_v24 }
 0x611   :  { %2098 = vmatprep.mubr.bf16.mxu0 %v3370_v0  ;;  %v1906_v49 = vadd.f32 %v1890_v47, %v4661_v45 }
 0x612   :  { %v1905_v57 = vadd.f32 %v1889_v20, %v4661_v45 }
 0x614   :  { %v3335_v31 = vpop.eup %3334  ;;  %v1915_v58 = vpack.c.bf16 %v1906_v49, %v1905_v57 }
 0x615   :  { %v3337_v2 = vpop.eup %3336  ;;  %v1876_v54 = vmul.f32 %v3335_v31, %v4548_v50  ;;  %v3269_v50 = vld [vmem:[%s4822_s7 + $0x28] sm:$0xff]  }
 0x616   :  { %v1875_v59 = vmul.f32 %v3337_v2, %v4551_v35  ;;  %v3268_v35 = vld [vmem:[%s4822_s7 + $0x68] sm:$0xff]  }
 0x617   :  { %v1892_v15 = vmul.f32 %v1876_v54, %v4654_v24  ;;  %2744 = vmatprep.subr.bf16.mxu0 %v3268_v35  ;;  %3187 = vmatprep.subr.bf16.mxu1 %v3268_v35 }
 0x618   :  { %2099 = vmatmul.mubr.bf16.gmra.mrb[48].mxu0 %v1913_v7  ;;  %v1891_v18 = vmul.f32 %v1875_v59, %v4654_v24  ;;  %v3271_v24 = vld [vmem:[%s4822_s7 + $0x30] sm:$0xff]   ;;  %3195 = vmatpush3.bf16.msra.mxu1 %v3269_v50 }
 0x619   :  { %2108 = vmatprep.mubr.bf16.mxu0 %v3370_v0  ;;  %v1908_v55 = vadd.f32 %v1892_v15, %v4661_v45  ;;  %2745 = vmatpush3.bf16.msra.mxu0 %v3269_v50 }
 0x61a   :  { %v1907_v1 = vadd.f32 %v1891_v18, %v4661_v45  ;;  %v3272_v45 = vld [vmem:[%s4822_s7 + $0x78] sm:$0xff]  }
 0x61c   :  { %v1916_v22 = vpack.c.bf16 %v1908_v55, %v1907_v1 }
 0x620   :  { %2109 = vmatmul.mubr.bf16.gmra.mrb[52].mxu0 %v1914_v38 }
 0x621   :  { %2118 = vmatprep.mubr.bf16.mxu0 %v3370_v0 }
 0x628   :  { %2119 = vmatmul.mubr.bf16.gmra.mrb[56].mxu0 %v1915_v58 }
 0x629   :  { %2128 = vmatprep.mubr.bf16.mxu0 %v3370_v0  ;;  %v3270_v0 = vld [vmem:[%s4822_s7 + $0x70] sm:$0xff]  }
 0x62a   :  { %2746 = vmatprep.subr.bf16.mxu0 %v3270_v0  ;;  %3188 = vmatprep.subr.bf16.mxu1 %v3270_v0 }
 0x62b   :  { %2747 = vmatpush3.bf16.msra.mxu0 %v3271_v24  ;;  %3196 = vmatpush3.bf16.msra.mxu1 %v3271_v24 }
 0x62c   :  { %2748 = vmatprep.subr.bf16.mxu0 %v3272_v45  ;;  %3189 = vmatprep.subr.bf16.mxu1 %v3272_v45 }
 0x62f   :  { %2749 = vmatpush3.bf16.msra.mxu0 %v3273_v5  ;;  %3197 = vmatpush3.bf16.msra.mxu1 %v3273_v5 }
 0x630   :  { %2129 = vmatmul.mubr.bf16.gmra.mrb[60].mxu0 %v1916_v22 }
 0x6cb   :  { %v2060_v62 = vpop.f32.mrb[32].mxu0 }
 0x6cc   :  { %v2061_v43 = vadd.f32 %v2060_v62, %v4746_v56  ;;  %v2062_v19 = vpop.f32.mrb[33].mxu0 }
 0x6cd   :  { %v2063_v8 = vadd.f32 %v2062_v19, %v4748_v10  ;;  %v2064_v26 = vpop.f32.mrb[34].mxu0 }
 0x6ce   :  { %v2171_v36 = vmul.f32 0.01, %v2061_v43  ;;  %v2065_v40 = vadd.f32 %v2064_v26, %v4746_v56  ;;  %v2066_v46 = vpop.f32.mrb[35].mxu0  ;;  %vm2139_vm0 = vcmp.ge.f32.partialorder %v2061_v43, 0.0 }
 0x6cf   :  { %v2172_v17 = vmul.f32 0.01, %v2063_v8  ;;  %v2067_v48 = vadd.f32 %v2066_v46, %v4748_v10  ;;  %vm2140_vm1 = vcmp.ge.f32.partialorder %v2063_v8, 0.0 }
 0x6d0   :  { %vm2141_vm2 = vcmp.ge.f32.partialorder %v2065_v40, 0.0  ;;  %v2173_v14 = vmul.f32 0.01, %v2065_v40  ;;  %v2203_v53 = vsel %vm2139_vm0, %v2061_v43, %v2171_v36 }
 0x6d1   :  { %vm2142_vm3 = vcmp.ge.f32.partialorder %v2067_v48, 0.0  ;;  %v2174_v60 = vmul.f32 0.01, %v2067_v48  ;;  %v2204_v39 = vsel %vm2140_vm1, %v2063_v8, %v2172_v17 }
 0x6d2   :  { %v2205_v12 = vsel %vm2141_vm2, %v2065_v40, %v2173_v14 }
 0x6d3   :  { %v2235_v27 = vpack.c.bf16 %v2205_v12, %v2203_v53  ;;  %v2070_v6 = vpop.f32.mrb[36].mxu0  ;;  %v2206_v32 = vsel %vm2142_vm3, %v2067_v48, %v2174_v60 }
 0x6d4   :  { %v2071_v29 = vadd.f32 %v2070_v6, %v4746_v56  ;;  %v2072_v30 = vpop.f32.mrb[37].mxu0  ;;  %v2236_v42 = vpack.c.bf16 %v2206_v32, %v2204_v39 }
 0x6d5   :  { %v2073_v41 = vadd.f32 %v2072_v30, %v4748_v10  ;;  %v2074_v33 = vpop.f32.mrb[38].mxu0 }
 0x6d6   :  { %v2175_v23 = vmul.f32 0.01, %v2071_v29  ;;  %v2075_v28 = vadd.f32 %v2074_v33, %v4746_v56  ;;  %v2076_v52 = vpop.f32.mrb[39].mxu0  ;;  %2412 = vmatprep.mubr.bf16.mxu0 %v2236_v42  ;;  %vm2143_vm4 = vcmp.ge.f32.partialorder %v2071_v29, 0.0 }
 0x6d7   :  { %v2176_v16 = vmul.f32 0.01, %v2073_v41  ;;  %v2077_v44 = vadd.f32 %v2076_v52, %v4748_v10  ;;  %2413 = vmatmul.mubr.bf16.vlgmr.msra.gmra.mrb[64].mxu0 %v2235_v27  ;;  %vm2144_vm5 = vcmp.ge.f32.partialorder %v2073_v41, 0.0 }
 0x6d8   :  { %vm2145_vm6 = vcmp.ge.f32.partialorder %v2075_v28, 0.0  ;;  %v2177_v7 = vmul.f32 0.01, %v2075_v28  ;;  %v2207_v21 = vsel %vm2143_vm4, %v2071_v29, %v2175_v23 }
 0x6d9   :  { %vm2146_vm7 = vcmp.ge.f32.partialorder %v2077_v44, 0.0  ;;  %v2178_v61 = vmul.f32 0.01, %v2077_v44  ;;  %v2208_v34 = vsel %vm2144_vm5, %v2073_v41, %v2176_v16 }
 0x6da   :  { %v2209_v63 = vsel %vm2145_vm6, %v2075_v28, %v2177_v7 }
 0x6db   :  { %v2080_v3 = vpop.f32.mrb[40].mxu0  ;;  %v2210_v37 = vsel %vm2146_vm7, %v2077_v44, %v2178_v61  ;;  %v2237_v4 = vpack.c.bf16 %v2209_v63, %v2207_v21 }
 0x6dc   :  { %v2081_v31 = vadd.f32 %v2080_v3, %v4746_v56  ;;  %v2082_v38 = vpop.f32.mrb[41].mxu0  ;;  %v2238_v20 = vpack.c.bf16 %v2210_v37, %v2208_v34 }
 0x6dd   :  { %v2083_v47 = vadd.f32 %v2082_v38, %v4748_v10  ;;  %v2084_v2 = vpop.f32.mrb[42].mxu0 }
 0x6de   :  { %v2179_v57 = vmul.f32 0.01, %v2081_v31  ;;  %v2085_v49 = vadd.f32 %v2084_v2, %v4746_v56  ;;  %v2086_v59 = vpop.f32.mrb[43].mxu0  ;;  %2420 = vmatprep.mubr.bf16.mxu0 %v2238_v20  ;;  %vm2147_vm8 = vcmp.ge.f32.partialorder %v2081_v31, 0.0 }
 0x6df   :  { %v2180_v54 = vmul.f32 0.01, %v2083_v47  ;;  %v2087_v58 = vadd.f32 %v2086_v59, %v4748_v10  ;;  %2421 = vmatmul.mubr.bf16.gmra.mrb[68].mxu0 %v2237_v4  ;;  %vm2148_vm9 = vcmp.ge.f32.partialorder %v2083_v47, 0.0 }
 0x6e0   :  { %vm2149_vm10 = vcmp.ge.f32.partialorder %v2085_v49, 0.0  ;;  %v2181_v18 = vmul.f32 0.01, %v2085_v49  ;;  %v2211_v1 = vsel %vm2147_vm8, %v2081_v31, %v2179_v57 }
 0x6e1   :  { %vm2150_vm11 = vcmp.ge.f32.partialorder %v2087_v58, 0.0  ;;  %v2182_v15 = vmul.f32 0.01, %v2087_v58  ;;  %v2212_v50 = vsel %vm2148_vm9, %v2083_v47, %v2180_v54 }
 0x6e2   :  { %v2213_v55 = vsel %vm2149_vm10, %v2085_v49, %v2181_v18 }
 0x6e3   :  { %v2239_v22 = vpack.c.bf16 %v2213_v55, %v2211_v1  ;;  %v2090_v35 = vpop.f32.mrb[44].mxu0  ;;  %v2214_v0 = vsel %vm2150_vm11, %v2087_v58, %v2182_v15 }
 0x6e4   :  { %v2091_v24 = vadd.f32 %v2090_v35, %v4746_v56  ;;  %v2092_v45 = vpop.f32.mrb[45].mxu0  ;;  %v2240_v5 = vpack.c.bf16 %v2214_v0, %v2212_v50 }
 0x6e5   :  { %v2093_v25 = vadd.f32 %v2092_v45, %v4748_v10  ;;  %v2094_v13 = vpop.f32.mrb[46].mxu0 }
 0x6e6   :  { %v2183_v9 = vmul.f32 0.01, %v2091_v24  ;;  %v2095_v51 = vadd.f32 %v2094_v13, %v4746_v56  ;;  %v2096_v11 = vpop.f32.mrb[47].mxu0  ;;  %2428 = vmatprep.mubr.bf16.mxu1 %v2240_v5  ;;  %vm2151_vm12 = vcmp.ge.f32.partialorder %v2091_v24, 0.0 }
 0x6e7   :  { %v2184_v62 = vmul.f32 0.01, %v2093_v25  ;;  %v2097_v43 = vadd.f32 %v2096_v11, %v4748_v10  ;;  %2429 = vmatmul.mubr.bf16.vlgmr.msra.gmra.mrb[32].mxu1 %v2239_v22  ;;  %vm2152_vm13 = vcmp.ge.f32.partialorder %v2093_v25, 0.0 }
 0x6e8   :  { %vm2153_vm14 = vcmp.ge.f32.partialorder %v2095_v51, 0.0  ;;  %v2185_v19 = vmul.f32 0.01, %v2095_v51  ;;  %v2215_v26 = vsel %vm2151_vm12, %v2091_v24, %v2183_v9 }
 0x6e9   :  { %vm2154_vm15 = vcmp.ge.f32.partialorder %v2097_v43, 0.0  ;;  %v2186_v8 = vmul.f32 0.01, %v2097_v43  ;;  %v2216_v46 = vsel %vm2152_vm13, %v2093_v25, %v2184_v62 }
 0x6ea   :  { %v2217_v36 = vsel %vm2153_vm14, %v2095_v51, %v2185_v19 }
 0x6eb   :  { %v2100_v40 = vpop.f32.mrb[48].mxu0  ;;  %v2218_v17 = vsel %vm2154_vm15, %v2097_v43, %v2186_v8  ;;  %v2241_v48 = vpack.c.bf16 %v2217_v36, %v2215_v26 }
 0x6ec   :  { %v2101_v14 = vadd.f32 %v2100_v40, %v4746_v56  ;;  %v2102_v60 = vpop.f32.mrb[49].mxu0  ;;  %v2242_v53 = vpack.c.bf16 %v2218_v17, %v2216_v46 }
 0x6ed   :  { %v2103_v12 = vadd.f32 %v2102_v60, %v4748_v10  ;;  %v2104_v27 = vpop.f32.mrb[50].mxu0 }
 0x6ee   :  { %v2187_v6 = vmul.f32 0.01, %v2101_v14  ;;  %v2105_v39 = vadd.f32 %v2104_v27, %v4746_v56  ;;  %v2106_v32 = vpop.f32.mrb[51].mxu0  ;;  %2436 = vmatprep.mubr.bf16.mxu1 %v2242_v53  ;;  %vm2155_vm0 = vcmp.ge.f32.partialorder %v2101_v14, 0.0 }
 0x6ef   :  { %v2188_v29 = vmul.f32 0.01, %v2103_v12  ;;  %v2107_v30 = vadd.f32 %v2106_v32, %v4748_v10  ;;  %2437 = vmatmul.mubr.bf16.gmra.mrb[36].mxu1 %v2241_v48  ;;  %vm2156_vm1 = vcmp.ge.f32.partialorder %v2103_v12, 0.0 }
 0x6f0   :  { %vm2157_vm2 = vcmp.ge.f32.partialorder %v2105_v39, 0.0  ;;  %v2189_v42 = vmul.f32 0.01, %v2105_v39  ;;  %v2219_v33 = vsel %vm2155_vm0, %v2101_v14, %v2187_v6 }
 0x6f1   :  { %vm2158_vm3 = vcmp.ge.f32.partialorder %v2107_v30, 0.0  ;;  %v2190_v41 = vmul.f32 0.01, %v2107_v30  ;;  %v2220_v52 = vsel %vm2156_vm1, %v2103_v12, %v2188_v29 }
 0x6f2   :  { %v2221_v23 = vsel %vm2157_vm2, %v2105_v39, %v2189_v42  ;;  %v4785_v42 = vld [vmem:[%s4823_s8 + $0x15] ss:$0 sm:$0xff]  ;;  %s3371_s8 = smov [#allocation2]  }
 0x6f3   :  { %v2110_v28 = vpop.f32.mrb[52].mxu0  ;;  %v2222_v16 = vsel %vm2158_vm3, %v2107_v30, %v2190_v41  ;;  %v2243_v44 = vpack.c.bf16 %v2221_v23, %v2219_v33  ;;  %s2498_s25 = sshll.u32 %s3371_s8, 4  ;;  %s2499_s25 = int_to_ptr.vmem [resolvable:$true] %s2498_s25 }
 0x6f4   :  { %v2111_v7 = vadd.f32 %v2110_v28, %v4746_v56  ;;  %v2112_v61 = vpop.f32.mrb[53].mxu0  ;;  %v2244_v21 = vpack.c.bf16 %v2222_v16, %v2220_v52  ;;  %s3346_s26 = scalar_lea.vmem %s2499_s25, 2048  ;;  %p3351_p1 = scmp.lt.s32.totalorder %s2499_s25, %s2499_s25 }
 0x6f5   :  { %v2113_v63 = vadd.f32 %v2112_v61, %v4748_v10  ;;  %v2114_v3 = vpop.f32.mrb[54].mxu0  ;;  %p3347_p0 = scmp.ne.s32.totalorder %s2499_s25, %s3346_s26  ;;  %p3352_p2 = scmp.lt.s32.totalorder %s3346_s26, %s3346_s26 }
 0x6f6   :  { %v2191_v34 = vmul.f32 0.01, %v2111_v7  ;;  %v2115_v37 = vadd.f32 %v2114_v3, %v4746_v56  ;;  %v2116_v4 = vpop.f32.mrb[55].mxu0  ;;  %2444 = vmatprep.mubr.bf16.mxu1 %v2244_v21  ;;  %vm2159_vm4 = vcmp.ge.f32.partialorder %v2111_v7, 0.0 }
 0x6f7   :  { %v2192_v31 = vmul.f32 0.01, %v2113_v63  ;;  %v2117_v38 = vadd.f32 %v2116_v4, %v4748_v10  ;;  %2445 = vmatmul.mubr.bf16.gmra.mrb[40].mxu1 %v2243_v44  ;;  %vm2160_vm5 = vcmp.ge.f32.partialorder %v2113_v63, 0.0  ;;  %p3353_p3 = por %p3352_p2, %p3351_p1 }
 0x6f8   :  { %vm2161_vm6 = vcmp.ge.f32.partialorder %v2115_v37, 0.0  ;;  %v2193_v20 = vmul.f32 0.01, %v2115_v37  ;;  %v2223_v2 = vsel %vm2159_vm4, %v2111_v7, %v2191_v34 }
 0x6f9   :  { %vm2162_vm7 = vcmp.ge.f32.partialorder %v2117_v38, 0.0  ;;  %v2194_v47 = vmul.f32 0.01, %v2117_v38  ;;  %v2224_v59 = vsel %vm2160_vm5, %v2113_v63, %v2192_v31  ;;  %p3354_p4 = pnand %p3353_p3, %p3347_p0 }
 0x6fa   :  { %v2225_v57 = vsel %vm2161_vm6, %v2115_v37, %v2193_v20 }
 0x6fb   :  { %v2120_v49 = vpop.f32.mrb[56].mxu0  ;;  %v2226_v54 = vsel %vm2162_vm7, %v2117_v38, %v2194_v47  ;;  %v2245_v58 = vpack.c.bf16 %v2225_v57, %v2223_v2 }
 0x6fc   :  { %v2121_v18 = vadd.f32 %v2120_v49, %v4746_v56  ;;  %v2122_v15 = vpop.f32.mrb[57].mxu0  ;;  %v2246_v1 = vpack.c.bf16 %v2226_v54, %v2224_v59 }
 0x6fd   :  { %v2123_v55 = vadd.f32 %v2122_v15, %v4748_v10  ;;  %v2124_v22 = vpop.f32.mrb[58].mxu0 }
 0x6fe   :  { %v2195_v35 = vmul.f32 0.01, %v2121_v18  ;;  %v2125_v50 = vadd.f32 %v2124_v22, %v4746_v56  ;;  %v2126_v0 = vpop.f32.mrb[59].mxu0  ;;  %2452 = vmatprep.mubr.bf16.mxu1 %v2246_v1  ;;  %vm2163_vm8 = vcmp.ge.f32.partialorder %v2121_v18, 0.0 }
 0x6ff   :  { %v2196_v24 = vmul.f32 0.01, %v2123_v55  ;;  %v2127_v45 = vadd.f32 %v2126_v0, %v4748_v10  ;;  %2453 = vmatmul.mubr.bf16.gmra.mrb[44].mxu1 %v2245_v58  ;;  %vm2164_vm9 = vcmp.ge.f32.partialorder %v2123_v55, 0.0 }
 0x700   :  { %vm2165_vm10 = vcmp.ge.f32.partialorder %v2125_v50, 0.0  ;;  %v2197_v5 = vmul.f32 0.01, %v2125_v50  ;;  %v2227_v13 = vsel %vm2163_vm8, %v2121_v18, %v2195_v35 }
 0x701   :  { %vm2166_vm11 = vcmp.ge.f32.partialorder %v2127_v45, 0.0  ;;  %v2198_v25 = vmul.f32 0.01, %v2127_v45  ;;  %v2228_v11 = vsel %vm2164_vm9, %v2123_v55, %v2196_v24 }
 0x702   :  { %v2229_v9 = vsel %vm2165_vm10, %v2125_v50, %v2197_v5 }
 0x703   :  { %v2130_v51 = vpop.f32.mrb[60].mxu0  ;;  %v2230_v62 = vsel %vm2166_vm11, %v2127_v45, %v2198_v25  ;;  %v2247_v43 = vpack.c.bf16 %v2229_v9, %v2227_v13 }
 0x704   :  { %v2131_v19 = vadd.f32 %v2130_v51, %v4746_v56  ;;  %v2132_v8 = vpop.f32.mrb[61].mxu0  ;;  %v2248_v26 = vpack.c.bf16 %v2230_v62, %v2228_v11 }
 0x705   :  { %v2133_v36 = vadd.f32 %v2132_v8, %v4748_v10  ;;  %v2134_v40 = vpop.f32.mrb[62].mxu0 }
 0x706   :  { %v2199_v46 = vmul.f32 0.01, %v2131_v19  ;;  %v2135_v17 = vadd.f32 %v2134_v40, %v4746_v56  ;;  %v2136_v48 = vpop.f32.mrb[63].mxu0  ;;  %2460 = vmatprep.mubr.bf16.mxu1 %v2248_v26  ;;  %vm2167_vm12 = vcmp.ge.f32.partialorder %v2131_v19, 0.0 }
 0x707   :  { %v2200_v14 = vmul.f32 0.01, %v2133_v36  ;;  %v2137_v60 = vadd.f32 %v2136_v48, %v4748_v10  ;;  %2461 = vmatmul.mubr.bf16.gmra.mrb[48].mxu1 %v2247_v43  ;;  %vm2168_vm13 = vcmp.ge.f32.partialorder %v2133_v36, 0.0 }
 0x708   :  { %vm2169_vm14 = vcmp.ge.f32.partialorder %v2135_v17, 0.0  ;;  %v2201_v53 = vmul.f32 0.01, %v2135_v17  ;;  %v2231_v27 = vsel %vm2167_vm12, %v2131_v19, %v2199_v46 }
 0x709   :  { %vm2170_vm15 = vcmp.ge.f32.partialorder %v2137_v60, 0.0  ;;  %v2202_v12 = vmul.f32 0.01, %v2137_v60  ;;  %v2232_v39 = vsel %vm2168_vm13, %v2133_v36, %v2200_v14 }
 0x70a   :  { %v2233_v6 = vsel %vm2169_vm14, %v2135_v17, %v2201_v53 }
 0x70b   :  { %v2234_v32 = vsel %vm2170_vm15, %v2137_v60, %v2202_v12  ;;  %v2249_v29 = vpack.c.bf16 %v2233_v6, %v2231_v27 }
 0x70c   :  { %v2250_v30 = vpack.c.bf16 %v2234_v32, %v2232_v39 }
 0x70e   :  { %2468 = vmatprep.mubr.bf16.mxu1 %v2250_v30 }
 0x70f   :  { %2469 = vmatmul.mubr.bf16.gmra.mrb[52].mxu1 %v2249_v29 }
 0x7aa   :  { %v2750_v56 = vpop.f32.mrb[64].mxu0 }
 0x7ab   :  { %v2751_v10 = vpop.f32.mrb[65].mxu0 }
 0x7ac   :  { %v2752_v41 = vadd.f32 %v2751_v10, %v2750_v56  ;;  %v2753_v33 = vpop.f32.mrb[66].mxu0 }
 0x7ad   :  { %v2754_v23 = vpop.f32.mrb[67].mxu0 }
 0x7ae   :  { %v2415_v28 = vadd.f32 %v2752_v41, %v4785_v42  ;;  %v2755_v52 = vadd.f32 %v2754_v23, %v2753_v33 }
 0x7b0   :  { %2477 = vst [vmem:[#allocation2] sm:$0xff] %v2415_v28  ;;  %v2418_v16 = vadd.f32 %v2755_v52, %v4785_v42 }
 0x7b2   :  { %2478 = vst [vmem:[#allocation2 + $0x8] sm:$0xff] %v2418_v16  ;;  %v2756_v44 = vpop.f32.mrb[68].mxu0 }
 0x7b3   :  { %v2757_v7 = vpop.f32.mrb[69].mxu0 }
 0x7b4   :  { %v2758_v61 = vadd.f32 %v2757_v7, %v2756_v44  ;;  %v2759_v21 = vpop.f32.mrb[70].mxu0 }
 0x7b5   :  { %v2760_v63 = vpop.f32.mrb[71].mxu0 }
 0x7b6   :  { %v2423_v3 = vadd.f32 %v2758_v61, %v4785_v42  ;;  %v2761_v34 = vadd.f32 %v2760_v63, %v2759_v21 }
 0x7b8   :  { %2479 = vst [vmem:[#allocation2 + $0x10] sm:$0xff] %v2423_v3  ;;  %v2426_v37 = vadd.f32 %v2761_v34, %v4785_v42 }
 0x7ba   :  { %2480 = vst [vmem:[#allocation2 + $0x18] sm:$0xff] %v2426_v37  ;;  %v2762_v4 = vpop.f32.mrb[32].mxu1 }
 0x7bb   :  { %v2763_v31 = vpop.f32.mrb[33].mxu1 }
 0x7bc   :  { %v2764_v38 = vadd.f32 %v2763_v31, %v2762_v4  ;;  %v2765_v20 = vpop.f32.mrb[34].mxu1 }
 0x7bd   :  { %v2766_v47 = vpop.f32.mrb[35].mxu1 }
 0x7be   :  { %v2431_v2 = vadd.f32 %v2764_v38, %v4785_v42  ;;  %v2767_v57 = vadd.f32 %v2766_v47, %v2765_v20 }
 0x7c0   :  { %2481 = vst [vmem:[#allocation2 + $0x20] sm:$0xff] %v2431_v2  ;;  %v2434_v49 = vadd.f32 %v2767_v57, %v4785_v42 }
 0x7c2   :  { %2482 = vst [vmem:[#allocation2 + $0x28] sm:$0xff] %v2434_v49  ;;  %v2768_v59 = vpop.f32.mrb[36].mxu1 }
 0x7c3   :  { %v2769_v54 = vpop.f32.mrb[37].mxu1 }
 0x7c4   :  { %v2770_v58 = vadd.f32 %v2769_v54, %v2768_v59  ;;  %v2771_v18 = vpop.f32.mrb[38].mxu1 }
 0x7c5   :  { %v2772_v15 = vpop.f32.mrb[39].mxu1 }
 0x7c6   :  { %v2439_v1 = vadd.f32 %v2770_v58, %v4785_v42  ;;  %v2773_v55 = vadd.f32 %v2772_v15, %v2771_v18 }
 0x7c8   :  { %2483 = vst [vmem:[#allocation2 + $0x30] sm:$0xff] %v2439_v1  ;;  %v2442_v22 = vadd.f32 %v2773_v55, %v4785_v42 }
 0x7ca   :  { %2484 = vst [vmem:[#allocation2 + $0x38] sm:$0xff] %v2442_v22  ;;  %v2774_v35 = vpop.f32.mrb[40].mxu1 }
 0x7cb   :  { %v2775_v50 = vpop.f32.mrb[41].mxu1 }
 0x7cc   :  { %v2776_v0 = vadd.f32 %v2775_v50, %v2774_v35  ;;  %v2777_v24 = vpop.f32.mrb[42].mxu1 }
 0x7cd   :  { %v2778_v45 = vpop.f32.mrb[43].mxu1 }
 0x7ce   :  { %v2447_v5 = vadd.f32 %v2776_v0, %v4785_v42  ;;  %v2779_v25 = vadd.f32 %v2778_v45, %v2777_v24 }
 0x7d0   :  { %2485 = vst [vmem:[#allocation2 + $0x40] sm:$0xff] %v2447_v5  ;;  %v2450_v13 = vadd.f32 %v2779_v25, %v4785_v42 }
 0x7d2   :  { %2486 = vst [vmem:[#allocation2 + $0x48] sm:$0xff] %v2450_v13  ;;  %v2780_v9 = vpop.f32.mrb[44].mxu1 }
 0x7d3   :  { %v2781_v51 = vpop.f32.mrb[45].mxu1 }
 0x7d4   :  { %v2782_v11 = vadd.f32 %v2781_v51, %v2780_v9  ;;  %v2783_v62 = vpop.f32.mrb[46].mxu1 }
 0x7d5   :  { %v2784_v43 = vpop.f32.mrb[47].mxu1 }
 0x7d6   :  { %v2455_v19 = vadd.f32 %v2782_v11, %v4785_v42  ;;  %v2785_v8 = vadd.f32 %v2784_v43, %v2783_v62 }
 0x7d8   :  { %2487 = vst [vmem:[#allocation2 + $0x50] sm:$0xff] %v2455_v19  ;;  %v2458_v26 = vadd.f32 %v2785_v8, %v4785_v42 }
 0x7da   :  { %2488 = vst [vmem:[#allocation2 + $0x58] sm:$0xff] %v2458_v26  ;;  %v2786_v36 = vpop.f32.mrb[48].mxu1 }
 0x7db   :  { %v2787_v40 = vpop.f32.mrb[49].mxu1 }
 0x7dc   :  { %v2788_v46 = vadd.f32 %v2787_v40, %v2786_v36  ;;  %v2789_v17 = vpop.f32.mrb[50].mxu1 }
 0x7dd   :  { %v2790_v48 = vpop.f32.mrb[51].mxu1 }
 0x7de   :  { %v2463_v14 = vadd.f32 %v2788_v46, %v4785_v42  ;;  %v2791_v60 = vadd.f32 %v2790_v48, %v2789_v17 }
 0x7e0   :  { %2489 = vst [vmem:[#allocation2 + $0x60] sm:$0xff] %v2463_v14  ;;  %v2466_v53 = vadd.f32 %v2791_v60, %v4785_v42 }
 0x7e2   :  { %2490 = vst [vmem:[#allocation2 + $0x68] sm:$0xff] %v2466_v53  ;;  %v2792_v12 = vpop.f32.mrb[52].mxu1 }
 0x7e3   :  { %v2793_v27 = vpop.f32.mrb[53].mxu1 }
 0x7e4   :  { %v2794_v6 = vadd.f32 %v2793_v27, %v2792_v12  ;;  %v2795_v39 = vpop.f32.mrb[54].mxu1 }
 0x7e5   :  { %v2796_v32 = vpop.f32.mrb[55].mxu1 }
 0x7e6   :  { %v2471_v29 = vadd.f32 %v2794_v6, %v4785_v42  ;;  %v2797_v30 = vadd.f32 %v2796_v32, %v2795_v39 }
 0x7e8   :  { %2491 = vst [vmem:[#allocation2 + $0x70] sm:$0xff] %v2471_v29  ;;  %v2474_v56 = vadd.f32 %v2797_v30, %v4785_v42 }
 0x7ea   :  { %2492 = vst [vmem:[#allocation2 + $0x78] sm:$0xff] %v2474_v56 }
 0x7eb   :  { %3357 = shalt.err (!%p3354_p4)
}
 0x7ec   :  { %s3358_s29 = scalar_lea.hbm %s4824_s9, 2048 }
 0x7ed   :  { %p3359_p5 = scmp.ne.s32.totalorder %s4824_s9, %s3358_s29  ;;  %p3362_p6 = scmp.lt.u32.totalorder %s3358_s29, %s4824_s9 }
 0x7ef   :  { %p3364_p7 = pnand %p3362_p6, %p3359_p5 }
 0x7f1   :  { %3367 = shalt.err (!%p3364_p7)
}
 0x7f2   :  { %s3372_s12 = smov 128   ;;  %s3373_s13 = smov 8  }
 0x7f3   :  { %2504 = dma.vmem_to_hbm [thread:$0]  %s2499_s25, 2048, %s4824_s9, [#allocation3], %s3372_s12, %s3372_s12, %s3373_s13  }
 0x7f4   :  { %3368 = dma.done.wait [#allocation3], 2048  }
 0x7f5   :  { %3369 = vsyncadd [#allocation3], 4294965248 }
 0x7f6   :  { %2508 = vsyncpa [#allocation3], 1 }

</bundles_post_ra>
